<compile_context>
chip_gen: v5e
topology: v5e:2x2
jax: 0.10.0
libtpu: 0.0.40
codegen_flags: <defaults>
</compile_context>

<pallas_src>
import functools

import jax
import jax.numpy as jnp
from jax import lax
from jax.experimental import pallas as pl
from jax.experimental.pallas import tpu as pltpu


def _round_up(x, m):
    return ((x + m - 1) // m) * m


def _pick_t_chunk(T, B_blk, H_pad, D_in, D_out_pad, slab_itemsize,
                  budget_bytes=12 << 20):
    """Largest T-chunk whose per-core VMEM working set fits a conservative
    budget (safe under v7x's 64 MiB VMEM / default scoped limits)."""
    t = min(T, 128)

    def need(tc):
        gx = tc * B_blk * 4 * H_pad * slab_itemsize   # gates_x slab
        hs = tc * B_blk * H_pad * slab_itemsize       # h slab
        io = 2 * tc * B_blk * (D_in + D_out_pad) * 4  # double-buffered in/out blocks
        state = 2 * B_blk * H_pad * 4                 # h/c state
        return gx + hs + io + state

    while t > 8 and need(t) > budget_bytes:
        t = max(8, t // 2)
    return t


def _shallow_lstm_kernel(x_ref, wih_ref, whh_ref, b_ref, w1_ref, b1_ref,
                         w2_ref, b2_ref, out_ref,
                         h_sc, c_sc, gx_sc, hs_sc, *, compute_dtype):
    t_idx = pl.program_id(1)                     # axis 0 = batch block, axis 1 = time chunk

    @pl.when(t_idx == 0)
    def _():
        h_sc[...] = jnp.zeros_like(h_sc)
        c_sc[...] = jnp.zeros_like(c_sc)

    Tc, Bp, Din = x_ref.shape
    Hp = h_sc.shape[1]

    # ---- phase 1: input projection for the whole chunk (no sequential dep.)
    x2 = x_ref[...].reshape(Tc * Bp, Din)                        # f32
    if Din < 8:
        # Tiny contraction depth: D_in broadcast FMAs on the VPU beat a
        # 4/128-deep MXU matmul (and keep f32 math — v5e VPU has no bf16).
        wih_f = wih_ref[...].astype(jnp.float32)                 # (Din, 4Hp)
        gx = b_ref[...] + x2[:, 0:1] * wih_f[0:1, :]
        for k in range(1, Din):
            gx = gx + x2[:, k:k + 1] * wih_f[k:k + 1, :]
    else:
        gx = jnp.dot(x2.astype(compute_dtype), wih_ref[...],
                     preferred_element_type=jnp.float32)
        gx = gx + b_ref[...]                                     # b = b_ih + b_hh
    gx_sc[...] = gx.reshape(Tc, Bp, 4 * Hp).astype(gx_sc.dtype)  # rounded once

    # ---- phase 2: LSTM recurrence — the only truly sequential work.
    # h/c live in the fori_loop carry (vregs); W_hh consumed per 128-lane gate
    # block so i/f/g activations start before the o block finishes popping.
    # TODO(synk): weight-stationary MXU driving (pltpu.matmul_push_rhs /
    # matmul_acc_lhs / matmul_pop) if bundle dumps show W_hh re-streamed per step.
    def step(t, carry):
        h, c = carry                                             # f32 (Bp, Hp)
        h_c = h.astype(compute_dtype)
        gx_t = gx_sc[t].astype(jnp.float32)                      # (Bp, 4Hp)

        def gate_pre(g):
            return gx_t[:, g * Hp:(g + 1) * Hp] + jnp.dot(
                h_c, whh_ref[:, g * Hp:(g + 1) * Hp],
                preferred_element_type=jnp.float32)

        i_g = jax.nn.sigmoid(gate_pre(0))                        # PyTorch order
        f_g = jax.nn.sigmoid(gate_pre(1))                        # (i, f, g, o)
        g_g = jnp.tanh(gate_pre(2))
        o_g = jax.nn.sigmoid(gate_pre(3))
        c_new = f_g * c + i_g * g_g
        h_new = o_g * jnp.tanh(c_new)
        hs_sc[t] = h_new.astype(hs_sc.dtype)
        return h_new, c_new

    unroll = Tc if Tc <= 32 else 8
    h_fin, c_fin = lax.fori_loop(0, Tc, step, (h_sc[...], c_sc[...]),
                                 unroll=unroll)
    h_sc[...] = h_fin                                            # persist across chunks
    c_sc[...] = c_fin

    # ---- phase 3: feed-forward head batched over the whole chunk.
    h_all = hs_sc[...].reshape(Tc * Bp, Hp).astype(compute_dtype)
    z = jnp.dot(h_all, w1_ref[...], preferred_element_type=jnp.float32)
    z = jnp.maximum(z + b1_ref[...], 0.0)                        # ReLU
    y = jnp.dot(z.astype(compute_dtype), w2_ref[...],
                preferred_element_type=jnp.float32)
    y = y + b2_ref[...]
    out_ref[...] = y.reshape(Tc, Bp, -1).astype(out_ref.dtype)


def shallow_lstm_forward(seq, params, *, compute_dtype=jnp.bfloat16,
                         t_chunk=None):
    """seq: (B, C_in, T) float32 (PyTorch NCT layout). Returns (B, C_out, T)."""
    B, D_in, T = seq.shape
    H = params["w_hh_t"].shape[0]
    D_out = params["w2_t"].shape[1]

    # Batch-parallel leading grid axis feeds v7x's second TensorCore; at small
    # batch it is pure overhead, so gate it on B (>=16 → 2 blocks of >=8 rows).
    n_bblk = 2 if B >= 16 else 1
    B_pad = _round_up(B, 8 * n_bblk)
    B_blk = B_pad // n_bblk
    H_pad = _round_up(H, 128)          # each gate block 128-lane aligned
    # Lane-dense output store; the ~(128/D_out)x HBM write amplification stays
    # hidden under the serial recurrence (switch to full-dim D_out block if
    # xprof ever shows exposed output DMA).
    D_out_pad = _round_up(D_out, 128)

    slab_dtype = compute_dtype         # gx/h slabs rounded once per chunk
    slab_item = jnp.dtype(slab_dtype).itemsize
    if t_chunk is None:
        t_chunk = _pick_t_chunk(T, B_blk, H_pad, D_in, D_out_pad, slab_item)
    T_pad = _round_up(T, t_chunk)

    # --- pad weights so every gate block starts on a 128-lane boundary ------
    def pad_gate_cols(w):
        parts = []
        for g in range(4):
            blk = w[..., g * H:(g + 1) * H]
            parts.append(jnp.pad(blk, [(0, 0)] * (w.ndim - 1)
                                 + [(0, H_pad - H)]))
        return jnp.concatenate(parts, axis=-1)

    wih = pad_gate_cols(params["w_ih_t"]).astype(compute_dtype)            # (Din, 4Hp)
    whh = jnp.pad(pad_gate_cols(params["w_hh_t"]),
                  ((0, H_pad - H), (0, 0))).astype(compute_dtype)          # (Hp, 4Hp)
    b = pad_gate_cols(params["b"]).astype(jnp.float32)                     # (1, 4Hp)
    w1 = jnp.pad(params["w1_t"],
                 ((0, H_pad - H), (0, 0))).astype(compute_dtype)           # (Hp, 256)
    b1 = params["b1"].astype(jnp.float32)                                  # (1, 256)
    w2 = jnp.pad(params["w2_t"],
                 ((0, 0), (0, D_out_pad - D_out))).astype(compute_dtype)   # (256, Dp)
    b2 = jnp.pad(params["b2"],
                 ((0, 0), (0, D_out_pad - D_out))).astype(jnp.float32)     # (1, Dp)

    # time-major input, padded batch/time (x stays f32 in HBM; gate math is
    # f32, matmul operands cast to compute_dtype inside the kernel).
    x = jnp.transpose(seq, (2, 0, 1)).astype(jnp.float32)                  # (T, B, Din)
    x = jnp.pad(x, ((0, T_pad - T), (0, B_pad - B), (0, 0)))

    def full_spec(arr):
        nd = arr.ndim
        # Grid-invariant weights/biases (same block every step).
        return pl.BlockSpec(arr.shape, lambda bb, tt, _nd=nd: (0,) * _nd)

    kernel = functools.partial(_shallow_lstm_kernel,
                               compute_dtype=compute_dtype)

    out_pad = pl.pallas_call(
        kernel,
        out_shape=jax.ShapeDtypeStruct((T_pad, B_pad, D_out_pad), seq.dtype),
        grid=(n_bblk, T_pad // t_chunk),
        in_specs=[
            pl.BlockSpec((t_chunk, B_blk, D_in), lambda bb, tt: (tt, bb, 0)),
            full_spec(wih), full_spec(whh), full_spec(b),
            full_spec(w1), full_spec(b1), full_spec(w2), full_spec(b2),
        ],
        out_specs=pl.BlockSpec((t_chunk, B_blk, D_out_pad),
                               lambda bb, tt: (tt, bb, 0)),
        scratch_shapes=[
            pltpu.VMEM((B_blk, H_pad), jnp.float32),                 # h state
            pltpu.VMEM((B_blk, H_pad), jnp.float32),                 # c state
            pltpu.VMEM((t_chunk, B_blk, 4 * H_pad), slab_dtype),     # gates_x slab
            pltpu.VMEM((t_chunk, B_blk, H_pad), slab_dtype),         # h slab
        ],
        compiler_params=pltpu.CompilerParams(
            # Batch blocks are independent (parallel); the recurrence across
            # T chunks must run sequentially (arbitrary).
            dimension_semantics=("parallel", "arbitrary"),
            vmem_limit_bytes=32 << 20),
    )(x, wih, whh, b, w1, b1, w2, b2)

    out = out_pad[:T, :B, :D_out]                          # drop padding
    return jnp.transpose(out, (1, 2, 0))                   # (B, C_out, T)


def init_params(key, input_dim, output_dim, hidden_dim):
    """Deterministic, PyTorch-like uniform init for LSTM + 2 Linear layers."""
    ks = jax.random.split(key, 8)
    kl = 1.0 / jnp.sqrt(float(hidden_dim))
    w_ih = jax.random.uniform(ks[0], (4 * hidden_dim, input_dim), jnp.float32, -kl, kl)
    w_hh = jax.random.uniform(ks[1], (4 * hidden_dim, hidden_dim), jnp.float32, -kl, kl)
    b_ih = jax.random.uniform(ks[2], (4 * hidden_dim,), jnp.float32, -kl, kl)
    b_hh = jax.random.uniform(ks[3], (4 * hidden_dim,), jnp.float32, -kl, kl)
    k1 = 1.0 / jnp.sqrt(float(hidden_dim))
    w1 = jax.random.uniform(ks[4], (256, hidden_dim), jnp.float32, -k1, k1)
    b1 = jax.random.uniform(ks[5], (256,), jnp.float32, -k1, k1)
    k2 = 1.0 / jnp.sqrt(256.0)
    w2 = jax.random.uniform(ks[6], (output_dim, 256), jnp.float32, -k2, k2)
    b2 = jax.random.uniform(ks[7], (output_dim,), jnp.float32, -k2, k2)
    return {
        "w_ih_t": w_ih.T,                 # (D_in, 4H)
        "w_hh_t": w_hh.T,                 # (H, 4H)
        "b": (b_ih + b_hh)[None, :],      # (1, 4H)
        "w1_t": w1.T,                     # (H, 256)
        "b1": b1[None, :],                # (1, 256)
        "w2_t": w2.T,                     # (256, D_out)
        "b2": b2[None, :],                # (1, D_out)
    }


def reference_forward(seq, params):
    """Pure-JAX reference matching the PyTorch forward, for validation."""
    x = jnp.transpose(seq, (0, 2, 1))                        # (B, T, D_in)
    B, T, _ = x.shape
    H = params["w_hh_t"].shape[0]

    def step(carry, xt):
        h, c = carry
        gates = xt @ params["w_ih_t"] + h @ params["w_hh_t"] + params["b"]
        i = jax.nn.sigmoid(gates[:, 0 * H:1 * H])
        f = jax.nn.sigmoid(gates[:, 1 * H:2 * H])
        g = jnp.tanh(gates[:, 2 * H:3 * H])
        o = jax.nn.sigmoid(gates[:, 3 * H:4 * H])
        c = f * c + i * g
        h = o * jnp.tanh(c)
        return (h, c), h

    h0 = jnp.zeros((B, H), jnp.float32)
    _, hs = jax.lax.scan(step, (h0, h0), jnp.transpose(x, (1, 0, 2)))
    hs = jnp.transpose(hs, (1, 0, 2))                        # (B, T, H)
    z = jnp.maximum(hs @ params["w1_t"] + params["b1"], 0.0)
    y = z @ params["w2_t"] + params["b2"]
    return jnp.transpose(y, (0, 2, 1))                       # (B, D_out, T)


if __name__ == "__main__":
    B, input_dim, T = 2, 4, 8
    hidden_dim, output_dim = 32, 6

    key = jax.random.PRNGKey(0)
    k_x, k_p = jax.random.split(key)
    seq = jax.random.normal(k_x, (B, input_dim, T), jnp.float32)
    params = init_params(k_p, input_dim, output_dim, hidden_dim)

    ref = jax.block_until_ready(reference_forward(seq, params))

    # f32 operands / f32 slabs (tight check against the pure-JAX reference).
    out_f32 = jax.block_until_ready(
        shallow_lstm_forward(seq, params, compute_dtype=jnp.float32))
    assert out_f32.shape == (B, output_dim, T)
    assert jnp.allclose(out_f32, ref, rtol=1e-4, atol=1e-4)

    # Default path: bf16 MXU operands + bf16 gx/h slabs, f32 accumulation and
    # f32 gate elementwise — loose check.
    out_bf16 = jax.block_until_ready(shallow_lstm_forward(seq, params))
    assert out_bf16.shape == (B, output_dim, T)
    assert jnp.allclose(out_bf16, ref, rtol=5e-2, atol=1e-1)

    print("KERNEL_OK")
</pallas_src>

<mosaic_0001>
module attributes {stable_mosaic.version = 11 : i64} {
  func.func @_shallow_lstm_kernel(%arg0: i32, %arg1: i32, %arg2: memref<8x8x4xf32, #tpu.memory_space<vmem>>, %arg3: memref<4x512xf32, #tpu.memory_space<vmem>>, %arg4: memref<128x512xf32, #tpu.memory_space<vmem>>, %arg5: memref<1x512xf32, #tpu.memory_space<vmem>>, %arg6: memref<128x256xf32, #tpu.memory_space<vmem>>, %arg7: memref<1x256xf32, #tpu.memory_space<vmem>>, %arg8: memref<256x128xf32, #tpu.memory_space<vmem>>, %arg9: memref<1x128xf32, #tpu.memory_space<vmem>>, %arg10: memref<8x8x128xf32, #tpu.memory_space<vmem>>, %arg11: memref<8x128xf32, #tpu.memory_space<vmem>>, %arg12: memref<8x128xf32, #tpu.memory_space<vmem>>, %arg13: memref<8x8x512xf32, #tpu.memory_space<vmem>>, %arg14: memref<8x8x128xf32, #tpu.memory_space<vmem>>) attributes {dimension_semantics = [#tpu.dimension_semantics<parallel>, #tpu.dimension_semantics<arbitrary>], iteration_bounds = array<i64: 1, 1>, scalar_prefetch = 0 : i64, scratch_operands = 4 : i64, tpu.core_type = #tpu.core_type<tc>, window_params = [{transform_indices = @transform_0, window_bounds = array<i64: 8, 8, 4>}, {pipeline_mode = #tpu.pipeline_mode<synchronous>, transform_indices = @transform_1, window_bounds = array<i64: 4, 512>}, {pipeline_mode = #tpu.pipeline_mode<synchronous>, transform_indices = @transform_2, window_bounds = array<i64: 128, 512>}, {pipeline_mode = #tpu.pipeline_mode<synchronous>, transform_indices = @transform_3, window_bounds = array<i64: 1, 512>}, {pipeline_mode = #tpu.pipeline_mode<synchronous>, transform_indices = @transform_4, window_bounds = array<i64: 128, 256>}, {pipeline_mode = #tpu.pipeline_mode<synchronous>, transform_indices = @transform_5, window_bounds = array<i64: 1, 256>}, {pipeline_mode = #tpu.pipeline_mode<synchronous>, transform_indices = @transform_6, window_bounds = array<i64: 256, 128>}, {pipeline_mode = #tpu.pipeline_mode<synchronous>, transform_indices = @transform_7, window_bounds = array<i64: 1, 128>}, {transform_indices = @transform_8, window_bounds = array<i64: 8, 8, 128>}]} {
    %c0_i32 = arith.constant 0 : i32
    %0 = arith.cmpi eq, %arg1, %c0_i32 : i32
    %1 = arith.extui %0 : i1 to i32
    %c0_i32_0 = arith.constant 0 : i32
    %2 = arith.cmpi ne, %1, %c0_i32_0 : i32
    scf.if %2 {
      %cst_184 = arith.constant 0.000000e+00 : f32
      %406 = vector.broadcast %cst_184 : f32 to vector<8x128xf32>
      %c0_185 = arith.constant 0 : index
      %c0_186 = arith.constant 0 : index
      %407 = vector.load %arg11[%c0_185, %c0_186] : memref<8x128xf32, #tpu.memory_space<vmem>>, vector<8x128xf32>
      tpu.vector_store %arg11[%c0_185, %c0_186], %406 {strides = array<i32>} : memref<8x128xf32, #tpu.memory_space<vmem>>, vector<8x128xf32>,
      %cst_187 = arith.constant 0.000000e+00 : f32
      %408 = vector.broadcast %cst_187 : f32 to vector<8x128xf32>
      %c0_188 = arith.constant 0 : index
      %c0_189 = arith.constant 0 : index
      %409 = vector.load %arg12[%c0_188, %c0_189] : memref<8x128xf32, #tpu.memory_space<vmem>>, vector<8x128xf32>
      tpu.vector_store %arg12[%c0_188, %c0_189], %408 {strides = array<i32>} : memref<8x128xf32, #tpu.memory_space<vmem>>, vector<8x128xf32>,
    } else {
    }
    %c0 = arith.constant 0 : index
    %c0_1 = arith.constant 0 : index
    %c0_2 = arith.constant 0 : index
    %3 = vector.load %arg2[%c0, %c0_1, %c0_2] : memref<8x8x4xf32, #tpu.memory_space<vmem>>, vector<8x8x4xf32>
    %4 = vector.shape_cast %3 : vector<8x8x4xf32> to vector<64x4xf32>
    %c0_3 = arith.constant 0 : index
    %c0_4 = arith.constant 0 : index
    %5 = vector.load %arg3[%c0_3, %c0_4] : memref<4x512xf32, #tpu.memory_space<vmem>>, vector<4x512xf32>
    %c0_5 = arith.constant 0 : index
    %c0_6 = arith.constant 0 : index
    %6 = vector.load %arg5[%c0_5, %c0_6] : memref<1x512xf32, #tpu.memory_space<vmem>>, vector<1x512xf32>
    %7 = vector.extract_strided_slice %4 {offsets = [0, 0], sizes = [64, 1], strides = [1, 1]} : vector<64x4xf32> to vector<64x1xf32>
    %8 = vector.extract_strided_slice %5 {offsets = [0, 0], sizes = [1, 512], strides = [1, 1]} : vector<4x512xf32> to vector<1x512xf32>
    %9 = vector.broadcast %7 : vector<64x1xf32> to vector<64x512xf32>
    %10 = vector.broadcast %8 : vector<1x512xf32> to vector<64x512xf32>
    %11 = arith.mulf %9, %10 : vector<64x512xf32>
    %12 = vector.broadcast %6 : vector<1x512xf32> to vector<64x512xf32>
    %13 = arith.addf %12, %11 : vector<64x512xf32>
    %14 = vector.extract_strided_slice %4 {offsets = [0, 1], sizes = [64, 1], strides = [1, 1]} : vector<64x4xf32> to vector<64x1xf32>
    %15 = vector.extract_strided_slice %5 {offsets = [1, 0], sizes = [1, 512], strides = [1, 1]} : vector<4x512xf32> to vector<1x512xf32>
    %16 = vector.broadcast %14 : vector<64x1xf32> to vector<64x512xf32>
    %17 = vector.broadcast %15 : vector<1x512xf32> to vector<64x512xf32>
    %18 = arith.mulf %16, %17 : vector<64x512xf32>
    %19 = arith.addf %13, %18 : vector<64x512xf32>
    %20 = vector.extract_strided_slice %4 {offsets = [0, 2], sizes = [64, 1], strides = [1, 1]} : vector<64x4xf32> to vector<64x1xf32>
    %21 = vector.extract_strided_slice %5 {offsets = [2, 0], sizes = [1, 512], strides = [1, 1]} : vector<4x512xf32> to vector<1x512xf32>
    %22 = vector.broadcast %20 : vector<64x1xf32> to vector<64x512xf32>
    %23 = vector.broadcast %21 : vector<1x512xf32> to vector<64x512xf32>
    %24 = arith.mulf %22, %23 : vector<64x512xf32>
    %25 = arith.addf %19, %24 : vector<64x512xf32>
    %26 = vector.extract_strided_slice %4 {offsets = [0, 3], sizes = [64, 1], strides = [1, 1]} : vector<64x4xf32> to vector<64x1xf32>
    %27 = vector.extract_strided_slice %5 {offsets = [3, 0], sizes = [1, 512], strides = [1, 1]} : vector<4x512xf32> to vector<1x512xf32>
    %28 = vector.broadcast %26 : vector<64x1xf32> to vector<64x512xf32>
    %29 = vector.broadcast %27 : vector<1x512xf32> to vector<64x512xf32>
    %30 = arith.mulf %28, %29 : vector<64x512xf32>
    %31 = arith.addf %25, %30 : vector<64x512xf32>
    %32 = vector.shape_cast %31 : vector<64x512xf32> to vector<8x8x512xf32>
    %c0_7 = arith.constant 0 : index
    %c0_8 = arith.constant 0 : index
    %c0_9 = arith.constant 0 : index
    %33 = vector.load %arg13[%c0_7, %c0_8, %c0_9] : memref<8x8x512xf32, #tpu.memory_space<vmem>>, vector<8x8x512xf32>
    tpu.vector_store %arg13[%c0_7, %c0_8, %c0_9], %32 {strides = array<i32>} : memref<8x8x512xf32, #tpu.memory_space<vmem>>, vector<8x8x512xf32>,
    %c0_10 = arith.constant 0 : index
    %c0_11 = arith.constant 0 : index
    %34 = vector.load %arg11[%c0_10, %c0_11] : memref<8x128xf32, #tpu.memory_space<vmem>>, vector<8x128xf32>
    %c0_12 = arith.constant 0 : index
    %c0_13 = arith.constant 0 : index
    %35 = vector.load %arg12[%c0_12, %c0_13] : memref<8x128xf32, #tpu.memory_space<vmem>>, vector<8x128xf32>
    %c0_i32_14 = arith.constant 0 : i32
    %36 = arith.index_cast %c0_i32_14 : i32 to index
    %c0_15 = arith.constant 0 : index
    %c0_16 = arith.constant 0 : index
    %37 = vector.load %arg13[%36, %c0_15, %c0_16] : memref<8x8x512xf32, #tpu.memory_space<vmem>>, vector<1x8x512xf32>
    %38 = vector.shape_cast %37 : vector<1x8x512xf32> to vector<8x512xf32>
    %39 = vector.extract_strided_slice %38 {offsets = [0, 0], sizes = [8, 128], strides = [1, 1]} : vector<8x512xf32> to vector<8x128xf32>
    %c0_17 = arith.constant 0 : index
    %c0_18 = arith.constant 0 : index
    %40 = vector.load %arg4[%c0_17, %c0_18] : memref<128x512xf32, #tpu.memory_space<vmem>>, vector<128x128xf32>
    %cst = arith.constant dense<0.000000e+00> : vector<8x128xf32>
    %41 = tpu.matmul %34, %40, %cst {dimension_numbers = #tpu.dot_dimension_numbers<[1], [0], [0], [1], [0, 0, 1, 1], [], []>} : vector<8x128xf32>, vector<128x128xf32>, vector<8x128xf32> -> vector<8x128xf32>
    %42 = arith.addf %39, %41 : vector<8x128xf32>
    %43 = arith.negf %42 : vector<8x128xf32>
    %44 = math.exp %43 : vector<8x128xf32>
    %cst_19 = arith.constant 1.000000e+00 : f32
    %45 = vector.broadcast %cst_19 : f32 to vector<8x128xf32>
    %46 = arith.addf %45, %44 : vector<8x128xf32>
    %47 = arith.divf %45, %46 : vector<8x128xf32>
    %48 = vector.extract_strided_slice %38 {offsets = [0, 128], sizes = [8, 128], strides = [1, 1]} : vector<8x512xf32> to vector<8x128xf32>
    %c0_20 = arith.constant 0 : index
    %c128 = arith.constant 128 : index
    %49 = vector.load %arg4[%c0_20, %c128] : memref<128x512xf32, #tpu.memory_space<vmem>>, vector<128x128xf32>
    %cst_21 = arith.constant dense<0.000000e+00> : vector<8x128xf32>
    %50 = tpu.matmul %34, %49, %cst_21 {dimension_numbers = #tpu.dot_dimension_numbers<[1], [0], [0], [1], [0, 0, 1, 1], [], []>} : vector<8x128xf32>, vector<128x128xf32>, vector<8x128xf32> -> vector<8x128xf32>
    %51 = arith.addf %48, %50 : vector<8x128xf32>
    %52 = arith.negf %51 : vector<8x128xf32>
    %53 = math.exp %52 : vector<8x128xf32>
    %cst_22 = arith.constant 1.000000e+00 : f32
    %54 = vector.broadcast %cst_22 : f32 to vector<8x128xf32>
    %55 = arith.addf %54, %53 : vector<8x128xf32>
    %56 = arith.divf %54, %55 : vector<8x128xf32>
    %57 = vector.extract_strided_slice %38 {offsets = [0, 256], sizes = [8, 128], strides = [1, 1]} : vector<8x512xf32> to vector<8x128xf32>
    %c0_23 = arith.constant 0 : index
    %c256 = arith.constant 256 : index
    %58 = vector.load %arg4[%c0_23, %c256] : memref<128x512xf32, #tpu.memory_space<vmem>>, vector<128x128xf32>
    %cst_24 = arith.constant dense<0.000000e+00> : vector<8x128xf32>
    %59 = tpu.matmul %34, %58, %cst_24 {dimension_numbers = #tpu.dot_dimension_numbers<[1], [0], [0], [1], [0, 0, 1, 1], [], []>} : vector<8x128xf32>, vector<128x128xf32>, vector<8x128xf32> -> vector<8x128xf32>
    %60 = arith.addf %57, %59 : vector<8x128xf32>
    %61 = math.tanh %60 : vector<8x128xf32>
    %62 = vector.extract_strided_slice %38 {offsets = [0, 384], sizes = [8, 128], strides = [1, 1]} : vector<8x512xf32> to vector<8x128xf32>
    %c0_25 = arith.constant 0 : index
    %c384 = arith.constant 384 : index
    %63 = vector.load %arg4[%c0_25, %c384] : memref<128x512xf32, #tpu.memory_space<vmem>>, vector<128x128xf32>
    %cst_26 = arith.constant dense<0.000000e+00> : vector<8x128xf32>
    %64 = tpu.matmul %34, %63, %cst_26 {dimension_numbers = #tpu.dot_dimension_numbers<[1], [0], [0], [1], [0, 0, 1, 1], [], []>} : vector<8x128xf32>, vector<128x128xf32>, vector<8x128xf32> -> vector<8x128xf32>
    %65 = arith.addf %62, %64 : vector<8x128xf32>
    %66 = arith.negf %65 : vector<8x128xf32>
    %67 = math.exp %66 : vector<8x128xf32>
    %cst_27 = arith.constant 1.000000e+00 : f32
    %68 = vector.broadcast %cst_27 : f32 to vector<8x128xf32>
    %69 = arith.addf %68, %67 : vector<8x128xf32>
    %70 = arith.divf %68, %69 : vector<8x128xf32>
    %71 = arith.mulf %56, %35 : vector<8x128xf32>
    %72 = arith.mulf %47, %61 : vector<8x128xf32>
    %73 = arith.addf %71, %72 : vector<8x128xf32>
    %74 = math.tanh %73 : vector<8x128xf32>
    %75 = arith.mulf %70, %74 : vector<8x128xf32>
    %76 = arith.index_cast %c0_i32_14 : i32 to index
    %c0_28 = arith.constant 0 : index
    %c0_29 = arith.constant 0 : index
    %77 = vector.load %arg14[%76, %c0_28, %c0_29] : memref<8x8x128xf32, #tpu.memory_space<vmem>>, vector<1x8x128xf32>
    %78 = vector.shape_cast %77 : vector<1x8x128xf32> to vector<8x128xf32>
    %79 = vector.shape_cast %75 : vector<8x128xf32> to vector<1x8x128xf32>
    tpu.vector_store %arg14[%76, %c0_28, %c0_29], %79 {strides = array<i32>} : memref<8x8x128xf32, #tpu.memory_space<vmem>>, vector<1x8x128xf32>,
    %c1_i32 = arith.constant 1 : i32
    %80 = arith.index_cast %c1_i32 : i32 to index
    %c0_30 = arith.constant 0 : index
    %c0_31 = arith.constant 0 : index
    %81 = vector.load %arg13[%80, %c0_30, %c0_31] : memref<8x8x512xf32, #tpu.memory_space<vmem>>, vector<1x8x512xf32>
    %82 = vector.shape_cast %81 : vector<1x8x512xf32> to vector<8x512xf32>
    %83 = vector.extract_strided_slice %82 {offsets = [0, 0], sizes = [8, 128], strides = [1, 1]} : vector<8x512xf32> to vector<8x128xf32>
    %c0_32 = arith.constant 0 : index
    %c0_33 = arith.constant 0 : index
    %84 = vector.load %arg4[%c0_32, %c0_33] : memref<128x512xf32, #tpu.memory_space<vmem>>, vector<128x128xf32>
    %cst_34 = arith.constant dense<0.000000e+00> : vector<8x128xf32>
    %85 = tpu.matmul %75, %84, %cst_34 {dimension_numbers = #tpu.dot_dimension_numbers<[1], [0], [0], [1], [0, 0, 1, 1], [], []>} : vector<8x128xf32>, vector<128x128xf32>, vector<8x128xf32> -> vector<8x128xf32>
    %86 = arith.addf %83, %85 : vector<8x128xf32>
    %87 = arith.negf %86 : vector<8x128xf32>
    %88 = math.exp %87 : vector<8x128xf32>
    %cst_35 = arith.constant 1.000000e+00 : f32
    %89 = vector.broadcast %cst_35 : f32 to vector<8x128xf32>
    %90 = arith.addf %89, %88 : vector<8x128xf32>
    %91 = arith.divf %89, %90 : vector<8x128xf32>
    %92 = vector.extract_strided_slice %82 {offsets = [0, 128], sizes = [8, 128], strides = [1, 1]} : vector<8x512xf32> to vector<8x128xf32>
    %c0_36 = arith.constant 0 : index
    %c128_37 = arith.constant 128 : index
    %93 = vector.load %arg4[%c0_36, %c128_37] : memref<128x512xf32, #tpu.memory_space<vmem>>, vector<128x128xf32>
    %cst_38 = arith.constant dense<0.000000e+00> : vector<8x128xf32>
    %94 = tpu.matmul %75, %93, %cst_38 {dimension_numbers = #tpu.dot_dimension_numbers<[1], [0], [0], [1], [0, 0, 1, 1], [], []>} : vector<8x128xf32>, vector<128x128xf32>, vector<8x128xf32> -> vector<8x128xf32>
    %95 = arith.addf %92, %94 : vector<8x128xf32>
    %96 = arith.negf %95 : vector<8x128xf32>
    %97 = math.exp %96 : vector<8x128xf32>
    %cst_39 = arith.constant 1.000000e+00 : f32
    %98 = vector.broadcast %cst_39 : f32 to vector<8x128xf32>
    %99 = arith.addf %98, %97 : vector<8x128xf32>
    %100 = arith.divf %98, %99 : vector<8x128xf32>
    %101 = vector.extract_strided_slice %82 {offsets = [0, 256], sizes = [8, 128], strides = [1, 1]} : vector<8x512xf32> to vector<8x128xf32>
    %c0_40 = arith.constant 0 : index
    %c256_41 = arith.constant 256 : index
    %102 = vector.load %arg4[%c0_40, %c256_41] : memref<128x512xf32, #tpu.memory_space<vmem>>, vector<128x128xf32>
    %cst_42 = arith.constant dense<0.000000e+00> : vector<8x128xf32>
    %103 = tpu.matmul %75, %102, %cst_42 {dimension_numbers = #tpu.dot_dimension_numbers<[1], [0], [0], [1], [0, 0, 1, 1], [], []>} : vector<8x128xf32>, vector<128x128xf32>, vector<8x128xf32> -> vector<8x128xf32>
    %104 = arith.addf %101, %103 : vector<8x128xf32>
    %105 = math.tanh %104 : vector<8x128xf32>
    %106 = vector.extract_strided_slice %82 {offsets = [0, 384], sizes = [8, 128], strides = [1, 1]} : vector<8x512xf32> to vector<8x128xf32>
    %c0_43 = arith.constant 0 : index
    %c384_44 = arith.constant 384 : index
    %107 = vector.load %arg4[%c0_43, %c384_44] : memref<128x512xf32, #tpu.memory_space<vmem>>, vector<128x128xf32>
    %cst_45 = arith.constant dense<0.000000e+00> : vector<8x128xf32>
    %108 = tpu.matmul %75, %107, %cst_45 {dimension_numbers = #tpu.dot_dimension_numbers<[1], [0], [0], [1], [0, 0, 1, 1], [], []>} : vector<8x128xf32>, vector<128x128xf32>, vector<8x128xf32> -> vector<8x128xf32>
    %109 = arith.addf %106, %108 : vector<8x128xf32>
    %110 = arith.negf %109 : vector<8x128xf32>
    %111 = math.exp %110 : vector<8x128xf32>
    %cst_46 = arith.constant 1.000000e+00 : f32
    %112 = vector.broadcast %cst_46 : f32 to vector<8x128xf32>
    %113 = arith.addf %112, %111 : vector<8x128xf32>
    %114 = arith.divf %112, %113 : vector<8x128xf32>
    %115 = arith.mulf %100, %73 : vector<8x128xf32>
    %116 = arith.mulf %91, %105 : vector<8x128xf32>
    %117 = arith.addf %115, %116 : vector<8x128xf32>
    %118 = math.tanh %117 : vector<8x128xf32>
    %119 = arith.mulf %114, %118 : vector<8x128xf32>
    %120 = arith.index_cast %c1_i32 : i32 to index
    %c0_47 = arith.constant 0 : index
    %c0_48 = arith.constant 0 : index
    %121 = vector.load %arg14[%120, %c0_47, %c0_48] : memref<8x8x128xf32, #tpu.memory_space<vmem>>, vector<1x8x128xf32>
    %122 = vector.shape_cast %121 : vector<1x8x128xf32> to vector<8x128xf32>
    %123 = vector.shape_cast %119 : vector<8x128xf32> to vector<1x8x128xf32>
    tpu.vector_store %arg14[%120, %c0_47, %c0_48], %123 {strides = array<i32>} : memref<8x8x128xf32, #tpu.memory_space<vmem>>, vector<1x8x128xf32>,
    %c2_i32 = arith.constant 2 : i32
    %124 = arith.index_cast %c2_i32 : i32 to index
    %c0_49 = arith.constant 0 : index
    %c0_50 = arith.constant 0 : index
    %125 = vector.load %arg13[%124, %c0_49, %c0_50] : memref<8x8x512xf32, #tpu.memory_space<vmem>>, vector<1x8x512xf32>
    %126 = vector.shape_cast %125 : vector<1x8x512xf32> to vector<8x512xf32>
    %127 = vector.extract_strided_slice %126 {offsets = [0, 0], sizes = [8, 128], strides = [1, 1]} : vector<8x512xf32> to vector<8x128xf32>
    %c0_51 = arith.constant 0 : index
    %c0_52 = arith.constant 0 : index
    %128 = vector.load %arg4[%c0_51, %c0_52] : memref<128x512xf32, #tpu.memory_space<vmem>>, vector<128x128xf32>
    %cst_53 = arith.constant dense<0.000000e+00> : vector<8x128xf32>
    %129 = tpu.matmul %119, %128, %cst_53 {dimension_numbers = #tpu.dot_dimension_numbers<[1], [0], [0], [1], [0, 0, 1, 1], [], []>} : vector<8x128xf32>, vector<128x128xf32>, vector<8x128xf32> -> vector<8x128xf32>
    %130 = arith.addf %127, %129 : vector<8x128xf32>
    %131 = arith.negf %130 : vector<8x128xf32>
    %132 = math.exp %131 : vector<8x128xf32>
    %cst_54 = arith.constant 1.000000e+00 : f32
    %133 = vector.broadcast %cst_54 : f32 to vector<8x128xf32>
    %134 = arith.addf %133, %132 : vector<8x128xf32>
    %135 = arith.divf %133, %134 : vector<8x128xf32>
    %136 = vector.extract_strided_slice %126 {offsets = [0, 128], sizes = [8, 128], strides = [1, 1]} : vector<8x512xf32> to vector<8x128xf32>
    %c0_55 = arith.constant 0 : index
    %c128_56 = arith.constant 128 : index
    %137 = vector.load %arg4[%c0_55, %c128_56] : memref<128x512xf32, #tpu.memory_space<vmem>>, vector<128x128xf32>
    %cst_57 = arith.constant dense<0.000000e+00> : vector<8x128xf32>
    %138 = tpu.matmul %119, %137, %cst_57 {dimension_numbers = #tpu.dot_dimension_numbers<[1], [0], [0], [1], [0, 0, 1, 1], [], []>} : vector<8x128xf32>, vector<128x128xf32>, vector<8x128xf32> -> vector<8x128xf32>
    %139 = arith.addf %136, %138 : vector<8x128xf32>
    %140 = arith.negf %139 : vector<8x128xf32>
    %141 = math.exp %140 : vector<8x128xf32>
    %cst_58 = arith.constant 1.000000e+00 : f32
    %142 = vector.broadcast %cst_58 : f32 to vector<8x128xf32>
    %143 = arith.addf %142, %141 : vector<8x128xf32>
    %144 = arith.divf %142, %143 : vector<8x128xf32>
    %145 = vector.extract_strided_slice %126 {offsets = [0, 256], sizes = [8, 128], strides = [1, 1]} : vector<8x512xf32> to vector<8x128xf32>
    %c0_59 = arith.constant 0 : index
    %c256_60 = arith.constant 256 : index
    %146 = vector.load %arg4[%c0_59, %c256_60] : memref<128x512xf32, #tpu.memory_space<vmem>>, vector<128x128xf32>
    %cst_61 = arith.constant dense<0.000000e+00> : vector<8x128xf32>
    %147 = tpu.matmul %119, %146, %cst_61 {dimension_numbers = #tpu.dot_dimension_numbers<[1], [0], [0], [1], [0, 0, 1, 1], [], []>} : vector<8x128xf32>, vector<128x128xf32>, vector<8x128xf32> -> vector<8x128xf32>
    %148 = arith.addf %145, %147 : vector<8x128xf32>
    %149 = math.tanh %148 : vector<8x128xf32>
    %150 = vector.extract_strided_slice %126 {offsets = [0, 384], sizes = [8, 128], strides = [1, 1]} : vector<8x512xf32> to vector<8x128xf32>
    %c0_62 = arith.constant 0 : index
    %c384_63 = arith.constant 384 : index
    %151 = vector.load %arg4[%c0_62, %c384_63] : memref<128x512xf32, #tpu.memory_space<vmem>>, vector<128x128xf32>
    %cst_64 = arith.constant dense<0.000000e+00> : vector<8x128xf32>
    %152 = tpu.matmul %119, %151, %cst_64 {dimension_numbers = #tpu.dot_dimension_numbers<[1], [0], [0], [1], [0, 0, 1, 1], [], []>} : vector<8x128xf32>, vector<128x128xf32>, vector<8x128xf32> -> vector<8x128xf32>
    %153 = arith.addf %150, %152 : vector<8x128xf32>
    %154 = arith.negf %153 : vector<8x128xf32>
    %155 = math.exp %154 : vector<8x128xf32>
    %cst_65 = arith.constant 1.000000e+00 : f32
    %156 = vector.broadcast %cst_65 : f32 to vector<8x128xf32>
    %157 = arith.addf %156, %155 : vector<8x128xf32>
    %158 = arith.divf %156, %157 : vector<8x128xf32>
    %159 = arith.mulf %144, %117 : vector<8x128xf32>
    %160 = arith.mulf %135, %149 : vector<8x128xf32>
    %161 = arith.addf %159, %160 : vector<8x128xf32>
    %162 = math.tanh %161 : vector<8x128xf32>
    %163 = arith.mulf %158, %162 : vector<8x128xf32>
    %164 = arith.index_cast %c2_i32 : i32 to index
    %c0_66 = arith.constant 0 : index
    %c0_67 = arith.constant 0 : index
    %165 = vector.load %arg14[%164, %c0_66, %c0_67] : memref<8x8x128xf32, #tpu.memory_space<vmem>>, vector<1x8x128xf32>
    %166 = vector.shape_cast %165 : vector<1x8x128xf32> to vector<8x128xf32>
    %167 = vector.shape_cast %163 : vector<8x128xf32> to vector<1x8x128xf32>
    tpu.vector_store %arg14[%164, %c0_66, %c0_67], %167 {strides = array<i32>} : memref<8x8x128xf32, #tpu.memory_space<vmem>>, vector<1x8x128xf32>,
    %c3_i32 = arith.constant 3 : i32
    %168 = arith.index_cast %c3_i32 : i32 to index
    %c0_68 = arith.constant 0 : index
    %c0_69 = arith.constant 0 : index
    %169 = vector.load %arg13[%168, %c0_68, %c0_69] : memref<8x8x512xf32, #tpu.memory_space<vmem>>, vector<1x8x512xf32>
    %170 = vector.shape_cast %169 : vector<1x8x512xf32> to vector<8x512xf32>
    %171 = vector.extract_strided_slice %170 {offsets = [0, 0], sizes = [8, 128], strides = [1, 1]} : vector<8x512xf32> to vector<8x128xf32>
    %c0_70 = arith.constant 0 : index
    %c0_71 = arith.constant 0 : index
    %172 = vector.load %arg4[%c0_70, %c0_71] : memref<128x512xf32, #tpu.memory_space<vmem>>, vector<128x128xf32>
    %cst_72 = arith.constant dense<0.000000e+00> : vector<8x128xf32>
    %173 = tpu.matmul %163, %172, %cst_72 {dimension_numbers = #tpu.dot_dimension_numbers<[1], [0], [0], [1], [0, 0, 1, 1], [], []>} : vector<8x128xf32>, vector<128x128xf32>, vector<8x128xf32> -> vector<8x128xf32>
    %174 = arith.addf %171, %173 : vector<8x128xf32>
    %175 = arith.negf %174 : vector<8x128xf32>
    %176 = math.exp %175 : vector<8x128xf32>
    %cst_73 = arith.constant 1.000000e+00 : f32
    %177 = vector.broadcast %cst_73 : f32 to vector<8x128xf32>
    %178 = arith.addf %177, %176 : vector<8x128xf32>
    %179 = arith.divf %177, %178 : vector<8x128xf32>
    %180 = vector.extract_strided_slice %170 {offsets = [0, 128], sizes = [8, 128], strides = [1, 1]} : vector<8x512xf32> to vector<8x128xf32>
    %c0_74 = arith.constant 0 : index
    %c128_75 = arith.constant 128 : index
    %181 = vector.load %arg4[%c0_74, %c128_75] : memref<128x512xf32, #tpu.memory_space<vmem>>, vector<128x128xf32>
    %cst_76 = arith.constant dense<0.000000e+00> : vector<8x128xf32>
    %182 = tpu.matmul %163, %181, %cst_76 {dimension_numbers = #tpu.dot_dimension_numbers<[1], [0], [0], [1], [0, 0, 1, 1], [], []>} : vector<8x128xf32>, vector<128x128xf32>, vector<8x128xf32> -> vector<8x128xf32>
    %183 = arith.addf %180, %182 : vector<8x128xf32>
    %184 = arith.negf %183 : vector<8x128xf32>
    %185 = math.exp %184 : vector<8x128xf32>
    %cst_77 = arith.constant 1.000000e+00 : f32
    %186 = vector.broadcast %cst_77 : f32 to vector<8x128xf32>
    %187 = arith.addf %186, %185 : vector<8x128xf32>
    %188 = arith.divf %186, %187 : vector<8x128xf32>
    %189 = vector.extract_strided_slice %170 {offsets = [0, 256], sizes = [8, 128], strides = [1, 1]} : vector<8x512xf32> to vector<8x128xf32>
    %c0_78 = arith.constant 0 : index
    %c256_79 = arith.constant 256 : index
    %190 = vector.load %arg4[%c0_78, %c256_79] : memref<128x512xf32, #tpu.memory_space<vmem>>, vector<128x128xf32>
    %cst_80 = arith.constant dense<0.000000e+00> : vector<8x128xf32>
    %191 = tpu.matmul %163, %190, %cst_80 {dimension_numbers = #tpu.dot_dimension_numbers<[1], [0], [0], [1], [0, 0, 1, 1], [], []>} : vector<8x128xf32>, vector<128x128xf32>, vector<8x128xf32> -> vector<8x128xf32>
    %192 = arith.addf %189, %191 : vector<8x128xf32>
    %193 = math.tanh %192 : vector<8x128xf32>
    %194 = vector.extract_strided_slice %170 {offsets = [0, 384], sizes = [8, 128], strides = [1, 1]} : vector<8x512xf32> to vector<8x128xf32>
    %c0_81 = arith.constant 0 : index
    %c384_82 = arith.constant 384 : index
    %195 = vector.load %arg4[%c0_81, %c384_82] : memref<128x512xf32, #tpu.memory_space<vmem>>, vector<128x128xf32>
    %cst_83 = arith.constant dense<0.000000e+00> : vector<8x128xf32>
    %196 = tpu.matmul %163, %195, %cst_83 {dimension_numbers = #tpu.dot_dimension_numbers<[1], [0], [0], [1], [0, 0, 1, 1], [], []>} : vector<8x128xf32>, vector<128x128xf32>, vector<8x128xf32> -> vector<8x128xf32>
    %197 = arith.addf %194, %196 : vector<8x128xf32>
    %198 = arith.negf %197 : vector<8x128xf32>
    %199 = math.exp %198 : vector<8x128xf32>
    %cst_84 = arith.constant 1.000000e+00 : f32
    %200 = vector.broadcast %cst_84 : f32 to vector<8x128xf32>
    %201 = arith.addf %200, %199 : vector<8x128xf32>
    %202 = arith.divf %200, %201 : vector<8x128xf32>
    %203 = arith.mulf %188, %161 : vector<8x128xf32>
    %204 = arith.mulf %179, %193 : vector<8x128xf32>
    %205 = arith.addf %203, %204 : vector<8x128xf32>
    %206 = math.tanh %205 : vector<8x128xf32>
    %207 = arith.mulf %202, %206 : vector<8x128xf32>
    %208 = arith.index_cast %c3_i32 : i32 to index
    %c0_85 = arith.constant 0 : index
    %c0_86 = arith.constant 0 : index
    %209 = vector.load %arg14[%208, %c0_85, %c0_86] : memref<8x8x128xf32, #tpu.memory_space<vmem>>, vector<1x8x128xf32>
    %210 = vector.shape_cast %209 : vector<1x8x128xf32> to vector<8x128xf32>
    %211 = vector.shape_cast %207 : vector<8x128xf32> to vector<1x8x128xf32>
    tpu.vector_store %arg14[%208, %c0_85, %c0_86], %211 {strides = array<i32>} : memref<8x8x128xf32, #tpu.memory_space<vmem>>, vector<1x8x128xf32>,
    %c4_i32 = arith.constant 4 : i32
    %212 = arith.index_cast %c4_i32 : i32 to index
    %c0_87 = arith.constant 0 : index
    %c0_88 = arith.constant 0 : index
    %213 = vector.load %arg13[%212, %c0_87, %c0_88] : memref<8x8x512xf32, #tpu.memory_space<vmem>>, vector<1x8x512xf32>
    %214 = vector.shape_cast %213 : vector<1x8x512xf32> to vector<8x512xf32>
    %215 = vector.extract_strided_slice %214 {offsets = [0, 0], sizes = [8, 128], strides = [1, 1]} : vector<8x512xf32> to vector<8x128xf32>
    %c0_89 = arith.constant 0 : index
    %c0_90 = arith.constant 0 : index
    %216 = vector.load %arg4[%c0_89, %c0_90] : memref<128x512xf32, #tpu.memory_space<vmem>>, vector<128x128xf32>
    %cst_91 = arith.constant dense<0.000000e+00> : vector<8x128xf32>
    %217 = tpu.matmul %207, %216, %cst_91 {dimension_numbers = #tpu.dot_dimension_numbers<[1], [0], [0], [1], [0, 0, 1, 1], [], []>} : vector<8x128xf32>, vector<128x128xf32>, vector<8x128xf32> -> vector<8x128xf32>
    %218 = arith.addf %215, %217 : vector<8x128xf32>
    %219 = arith.negf %218 : vector<8x128xf32>
    %220 = math.exp %219 : vector<8x128xf32>
    %cst_92 = arith.constant 1.000000e+00 : f32
    %221 = vector.broadcast %cst_92 : f32 to vector<8x128xf32>
    %222 = arith.addf %221, %220 : vector<8x128xf32>
    %223 = arith.divf %221, %222 : vector<8x128xf32>
    %224 = vector.extract_strided_slice %214 {offsets = [0, 128], sizes = [8, 128], strides = [1, 1]} : vector<8x512xf32> to vector<8x128xf32>
    %c0_93 = arith.constant 0 : index
    %c128_94 = arith.constant 128 : index
    %225 = vector.load %arg4[%c0_93, %c128_94] : memref<128x512xf32, #tpu.memory_space<vmem>>, vector<128x128xf32>
    %cst_95 = arith.constant dense<0.000000e+00> : vector<8x128xf32>
    %226 = tpu.matmul %207, %225, %cst_95 {dimension_numbers = #tpu.dot_dimension_numbers<[1], [0], [0], [1], [0, 0, 1, 1], [], []>} : vector<8x128xf32>, vector<128x128xf32>, vector<8x128xf32> -> vector<8x128xf32>
    %227 = arith.addf %224, %226 : vector<8x128xf32>
    %228 = arith.negf %227 : vector<8x128xf32>
    %229 = math.exp %228 : vector<8x128xf32>
    %cst_96 = arith.constant 1.000000e+00 : f32
    %230 = vector.broadcast %cst_96 : f32 to vector<8x128xf32>
    %231 = arith.addf %230, %229 : vector<8x128xf32>
    %232 = arith.divf %230, %231 : vector<8x128xf32>
    %233 = vector.extract_strided_slice %214 {offsets = [0, 256], sizes = [8, 128], strides = [1, 1]} : vector<8x512xf32> to vector<8x128xf32>
    %c0_97 = arith.constant 0 : index
    %c256_98 = arith.constant 256 : index
    %234 = vector.load %arg4[%c0_97, %c256_98] : memref<128x512xf32, #tpu.memory_space<vmem>>, vector<128x128xf32>
    %cst_99 = arith.constant dense<0.000000e+00> : vector<8x128xf32>
    %235 = tpu.matmul %207, %234, %cst_99 {dimension_numbers = #tpu.dot_dimension_numbers<[1], [0], [0], [1], [0, 0, 1, 1], [], []>} : vector<8x128xf32>, vector<128x128xf32>, vector<8x128xf32> -> vector<8x128xf32>
    %236 = arith.addf %233, %235 : vector<8x128xf32>
    %237 = math.tanh %236 : vector<8x128xf32>
    %238 = vector.extract_strided_slice %214 {offsets = [0, 384], sizes = [8, 128], strides = [1, 1]} : vector<8x512xf32> to vector<8x128xf32>
    %c0_100 = arith.constant 0 : index
    %c384_101 = arith.constant 384 : index
    %239 = vector.load %arg4[%c0_100, %c384_101] : memref<128x512xf32, #tpu.memory_space<vmem>>, vector<128x128xf32>
    %cst_102 = arith.constant dense<0.000000e+00> : vector<8x128xf32>
    %240 = tpu.matmul %207, %239, %cst_102 {dimension_numbers = #tpu.dot_dimension_numbers<[1], [0], [0], [1], [0, 0, 1, 1], [], []>} : vector<8x128xf32>, vector<128x128xf32>, vector<8x128xf32> -> vector<8x128xf32>
    %241 = arith.addf %238, %240 : vector<8x128xf32>
    %242 = arith.negf %241 : vector<8x128xf32>
    %243 = math.exp %242 : vector<8x128xf32>
    %cst_103 = arith.constant 1.000000e+00 : f32
    %244 = vector.broadcast %cst_103 : f32 to vector<8x128xf32>
    %245 = arith.addf %244, %243 : vector<8x128xf32>
    %246 = arith.divf %244, %245 : vector<8x128xf32>
    %247 = arith.mulf %232, %205 : vector<8x128xf32>
    %248 = arith.mulf %223, %237 : vector<8x128xf32>
    %249 = arith.addf %247, %248 : vector<8x128xf32>
    %250 = math.tanh %249 : vector<8x128xf32>
    %251 = arith.mulf %246, %250 : vector<8x128xf32>
    %252 = arith.index_cast %c4_i32 : i32 to index
    %c0_104 = arith.constant 0 : index
    %c0_105 = arith.constant 0 : index
    %253 = vector.load %arg14[%252, %c0_104, %c0_105] : memref<8x8x128xf32, #tpu.memory_space<vmem>>, vector<1x8x128xf32>
    %254 = vector.shape_cast %253 : vector<1x8x128xf32> to vector<8x128xf32>
    %255 = vector.shape_cast %251 : vector<8x128xf32> to vector<1x8x128xf32>
    tpu.vector_store %arg14[%252, %c0_104, %c0_105], %255 {strides = array<i32>} : memref<8x8x128xf32, #tpu.memory_space<vmem>>, vector<1x8x128xf32>,
    %c5_i32 = arith.constant 5 : i32
    %256 = arith.index_cast %c5_i32 : i32 to index
    %c0_106 = arith.constant 0 : index
    %c0_107 = arith.constant 0 : index
    %257 = vector.load %arg13[%256, %c0_106, %c0_107] : memref<8x8x512xf32, #tpu.memory_space<vmem>>, vector<1x8x512xf32>
    %258 = vector.shape_cast %257 : vector<1x8x512xf32> to vector<8x512xf32>
    %259 = vector.extract_strided_slice %258 {offsets = [0, 0], sizes = [8, 128], strides = [1, 1]} : vector<8x512xf32> to vector<8x128xf32>
    %c0_108 = arith.constant 0 : index
    %c0_109 = arith.constant 0 : index
    %260 = vector.load %arg4[%c0_108, %c0_109] : memref<128x512xf32, #tpu.memory_space<vmem>>, vector<128x128xf32>
    %cst_110 = arith.constant dense<0.000000e+00> : vector<8x128xf32>
    %261 = tpu.matmul %251, %260, %cst_110 {dimension_numbers = #tpu.dot_dimension_numbers<[1], [0], [0], [1], [0, 0, 1, 1], [], []>} : vector<8x128xf32>, vector<128x128xf32>, vector<8x128xf32> -> vector<8x128xf32>
    %262 = arith.addf %259, %261 : vector<8x128xf32>
    %263 = arith.negf %262 : vector<8x128xf32>
    %264 = math.exp %263 : vector<8x128xf32>
    %cst_111 = arith.constant 1.000000e+00 : f32
    %265 = vector.broadcast %cst_111 : f32 to vector<8x128xf32>
    %266 = arith.addf %265, %264 : vector<8x128xf32>
    %267 = arith.divf %265, %266 : vector<8x128xf32>
    %268 = vector.extract_strided_slice %258 {offsets = [0, 128], sizes = [8, 128], strides = [1, 1]} : vector<8x512xf32> to vector<8x128xf32>
    %c0_112 = arith.constant 0 : index
    %c128_113 = arith.constant 128 : index
    %269 = vector.load %arg4[%c0_112, %c128_113] : memref<128x512xf32, #tpu.memory_space<vmem>>, vector<128x128xf32>
    %cst_114 = arith.constant dense<0.000000e+00> : vector<8x128xf32>
    %270 = tpu.matmul %251, %269, %cst_114 {dimension_numbers = #tpu.dot_dimension_numbers<[1], [0], [0], [1], [0, 0, 1, 1], [], []>} : vector<8x128xf32>, vector<128x128xf32>, vector<8x128xf32> -> vector<8x128xf32>
    %271 = arith.addf %268, %270 : vector<8x128xf32>
    %272 = arith.negf %271 : vector<8x128xf32>
    %273 = math.exp %272 : vector<8x128xf32>
    %cst_115 = arith.constant 1.000000e+00 : f32
    %274 = vector.broadcast %cst_115 : f32 to vector<8x128xf32>
    %275 = arith.addf %274, %273 : vector<8x128xf32>
    %276 = arith.divf %274, %275 : vector<8x128xf32>
    %277 = vector.extract_strided_slice %258 {offsets = [0, 256], sizes = [8, 128], strides = [1, 1]} : vector<8x512xf32> to vector<8x128xf32>
    %c0_116 = arith.constant 0 : index
    %c256_117 = arith.constant 256 : index
    %278 = vector.load %arg4[%c0_116, %c256_117] : memref<128x512xf32, #tpu.memory_space<vmem>>, vector<128x128xf32>
    %cst_118 = arith.constant dense<0.000000e+00> : vector<8x128xf32>
    %279 = tpu.matmul %251, %278, %cst_118 {dimension_numbers = #tpu.dot_dimension_numbers<[1], [0], [0], [1], [0, 0, 1, 1], [], []>} : vector<8x128xf32>, vector<128x128xf32>, vector<8x128xf32> -> vector<8x128xf32>
    %280 = arith.addf %277, %279 : vector<8x128xf32>
    %281 = math.tanh %280 : vector<8x128xf32>
    %282 = vector.extract_strided_slice %258 {offsets = [0, 384], sizes = [8, 128], strides = [1, 1]} : vector<8x512xf32> to vector<8x128xf32>
    %c0_119 = arith.constant 0 : index
    %c384_120 = arith.constant 384 : index
    %283 = vector.load %arg4[%c0_119, %c384_120] : memref<128x512xf32, #tpu.memory_space<vmem>>, vector<128x128xf32>
    %cst_121 = arith.constant dense<0.000000e+00> : vector<8x128xf32>
    %284 = tpu.matmul %251, %283, %cst_121 {dimension_numbers = #tpu.dot_dimension_numbers<[1], [0], [0], [1], [0, 0, 1, 1], [], []>} : vector<8x128xf32>, vector<128x128xf32>, vector<8x128xf32> -> vector<8x128xf32>
    %285 = arith.addf %282, %284 : vector<8x128xf32>
    %286 = arith.negf %285 : vector<8x128xf32>
    %287 = math.exp %286 : vector<8x128xf32>
    %cst_122 = arith.constant 1.000000e+00 : f32
    %288 = vector.broadcast %cst_122 : f32 to vector<8x128xf32>
    %289 = arith.addf %288, %287 : vector<8x128xf32>
    %290 = arith.divf %288, %289 : vector<8x128xf32>
    %291 = arith.mulf %276, %249 : vector<8x128xf32>
    %292 = arith.mulf %267, %281 : vector<8x128xf32>
    %293 = arith.addf %291, %292 : vector<8x128xf32>
    %294 = math.tanh %293 : vector<8x128xf32>
    %295 = arith.mulf %290, %294 : vector<8x128xf32>
    %296 = arith.index_cast %c5_i32 : i32 to index
    %c0_123 = arith.constant 0 : index
    %c0_124 = arith.constant 0 : index
    %297 = vector.load %arg14[%296, %c0_123, %c0_124] : memref<8x8x128xf32, #tpu.memory_space<vmem>>, vector<1x8x128xf32>
    %298 = vector.shape_cast %297 : vector<1x8x128xf32> to vector<8x128xf32>
    %299 = vector.shape_cast %295 : vector<8x128xf32> to vector<1x8x128xf32>
    tpu.vector_store %arg14[%296, %c0_123, %c0_124], %299 {strides = array<i32>} : memref<8x8x128xf32, #tpu.memory_space<vmem>>, vector<1x8x128xf32>,
    %c6_i32 = arith.constant 6 : i32
    %300 = arith.index_cast %c6_i32 : i32 to index
    %c0_125 = arith.constant 0 : index
    %c0_126 = arith.constant 0 : index
    %301 = vector.load %arg13[%300, %c0_125, %c0_126] : memref<8x8x512xf32, #tpu.memory_space<vmem>>, vector<1x8x512xf32>
    %302 = vector.shape_cast %301 : vector<1x8x512xf32> to vector<8x512xf32>
    %303 = vector.extract_strided_slice %302 {offsets = [0, 0], sizes = [8, 128], strides = [1, 1]} : vector<8x512xf32> to vector<8x128xf32>
    %c0_127 = arith.constant 0 : index
    %c0_128 = arith.constant 0 : index
    %304 = vector.load %arg4[%c0_127, %c0_128] : memref<128x512xf32, #tpu.memory_space<vmem>>, vector<128x128xf32>
    %cst_129 = arith.constant dense<0.000000e+00> : vector<8x128xf32>
    %305 = tpu.matmul %295, %304, %cst_129 {dimension_numbers = #tpu.dot_dimension_numbers<[1], [0], [0], [1], [0, 0, 1, 1], [], []>} : vector<8x128xf32>, vector<128x128xf32>, vector<8x128xf32> -> vector<8x128xf32>
    %306 = arith.addf %303, %305 : vector<8x128xf32>
    %307 = arith.negf %306 : vector<8x128xf32>
    %308 = math.exp %307 : vector<8x128xf32>
    %cst_130 = arith.constant 1.000000e+00 : f32
    %309 = vector.broadcast %cst_130 : f32 to vector<8x128xf32>
    %310 = arith.addf %309, %308 : vector<8x128xf32>
    %311 = arith.divf %309, %310 : vector<8x128xf32>
    %312 = vector.extract_strided_slice %302 {offsets = [0, 128], sizes = [8, 128], strides = [1, 1]} : vector<8x512xf32> to vector<8x128xf32>
    %c0_131 = arith.constant 0 : index
    %c128_132 = arith.constant 128 : index
    %313 = vector.load %arg4[%c0_131, %c128_132] : memref<128x512xf32, #tpu.memory_space<vmem>>, vector<128x128xf32>
    %cst_133 = arith.constant dense<0.000000e+00> : vector<8x128xf32>
    %314 = tpu.matmul %295, %313, %cst_133 {dimension_numbers = #tpu.dot_dimension_numbers<[1], [0], [0], [1], [0, 0, 1, 1], [], []>} : vector<8x128xf32>, vector<128x128xf32>, vector<8x128xf32> -> vector<8x128xf32>
    %315 = arith.addf %312, %314 : vector<8x128xf32>
    %316 = arith.negf %315 : vector<8x128xf32>
    %317 = math.exp %316 : vector<8x128xf32>
    %cst_134 = arith.constant 1.000000e+00 : f32
    %318 = vector.broadcast %cst_134 : f32 to vector<8x128xf32>
    %319 = arith.addf %318, %317 : vector<8x128xf32>
    %320 = arith.divf %318, %319 : vector<8x128xf32>
    %321 = vector.extract_strided_slice %302 {offsets = [0, 256], sizes = [8, 128], strides = [1, 1]} : vector<8x512xf32> to vector<8x128xf32>
    %c0_135 = arith.constant 0 : index
    %c256_136 = arith.constant 256 : index
    %322 = vector.load %arg4[%c0_135, %c256_136] : memref<128x512xf32, #tpu.memory_space<vmem>>, vector<128x128xf32>
    %cst_137 = arith.constant dense<0.000000e+00> : vector<8x128xf32>
    %323 = tpu.matmul %295, %322, %cst_137 {dimension_numbers = #tpu.dot_dimension_numbers<[1], [0], [0], [1], [0, 0, 1, 1], [], []>} : vector<8x128xf32>, vector<128x128xf32>, vector<8x128xf32> -> vector<8x128xf32>
    %324 = arith.addf %321, %323 : vector<8x128xf32>
    %325 = math.tanh %324 : vector<8x128xf32>
    %326 = vector.extract_strided_slice %302 {offsets = [0, 384], sizes = [8, 128], strides = [1, 1]} : vector<8x512xf32> to vector<8x128xf32>
    %c0_138 = arith.constant 0 : index
    %c384_139 = arith.constant 384 : index
    %327 = vector.load %arg4[%c0_138, %c384_139] : memref<128x512xf32, #tpu.memory_space<vmem>>, vector<128x128xf32>
    %cst_140 = arith.constant dense<0.000000e+00> : vector<8x128xf32>
    %328 = tpu.matmul %295, %327, %cst_140 {dimension_numbers = #tpu.dot_dimension_numbers<[1], [0], [0], [1], [0, 0, 1, 1], [], []>} : vector<8x128xf32>, vector<128x128xf32>, vector<8x128xf32> -> vector<8x128xf32>
    %329 = arith.addf %326, %328 : vector<8x128xf32>
    %330 = arith.negf %329 : vector<8x128xf32>
    %331 = math.exp %330 : vector<8x128xf32>
    %cst_141 = arith.constant 1.000000e+00 : f32
    %332 = vector.broadcast %cst_141 : f32 to vector<8x128xf32>
    %333 = arith.addf %332, %331 : vector<8x128xf32>
    %334 = arith.divf %332, %333 : vector<8x128xf32>
    %335 = arith.mulf %320, %293 : vector<8x128xf32>
    %336 = arith.mulf %311, %325 : vector<8x128xf32>
    %337 = arith.addf %335, %336 : vector<8x128xf32>
    %338 = math.tanh %337 : vector<8x128xf32>
    %339 = arith.mulf %334, %338 : vector<8x128xf32>
    %340 = arith.index_cast %c6_i32 : i32 to index
    %c0_142 = arith.constant 0 : index
    %c0_143 = arith.constant 0 : index
    %341 = vector.load %arg14[%340, %c0_142, %c0_143] : memref<8x8x128xf32, #tpu.memory_space<vmem>>, vector<1x8x128xf32>
    %342 = vector.shape_cast %341 : vector<1x8x128xf32> to vector<8x128xf32>
    %343 = vector.shape_cast %339 : vector<8x128xf32> to vector<1x8x128xf32>
    tpu.vector_store %arg14[%340, %c0_142, %c0_143], %343 {strides = array<i32>} : memref<8x8x128xf32, #tpu.memory_space<vmem>>, vector<1x8x128xf32>,
    %c7_i32 = arith.constant 7 : i32
    %344 = arith.index_cast %c7_i32 : i32 to index
    %c0_144 = arith.constant 0 : index
    %c0_145 = arith.constant 0 : index
    %345 = vector.load %arg13[%344, %c0_144, %c0_145] : memref<8x8x512xf32, #tpu.memory_space<vmem>>, vector<1x8x512xf32>
    %346 = vector.shape_cast %345 : vector<1x8x512xf32> to vector<8x512xf32>
    %347 = vector.extract_strided_slice %346 {offsets = [0, 0], sizes = [8, 128], strides = [1, 1]} : vector<8x512xf32> to vector<8x128xf32>
    %c0_146 = arith.constant 0 : index
    %c0_147 = arith.constant 0 : index
    %348 = vector.load %arg4[%c0_146, %c0_147] : memref<128x512xf32, #tpu.memory_space<vmem>>, vector<128x128xf32>
    %cst_148 = arith.constant dense<0.000000e+00> : vector<8x128xf32>
    %349 = tpu.matmul %339, %348, %cst_148 {dimension_numbers = #tpu.dot_dimension_numbers<[1], [0], [0], [1], [0, 0, 1, 1], [], []>} : vector<8x128xf32>, vector<128x128xf32>, vector<8x128xf32> -> vector<8x128xf32>
    %350 = arith.addf %347, %349 : vector<8x128xf32>
    %351 = arith.negf %350 : vector<8x128xf32>
    %352 = math.exp %351 : vector<8x128xf32>
    %cst_149 = arith.constant 1.000000e+00 : f32
    %353 = vector.broadcast %cst_149 : f32 to vector<8x128xf32>
    %354 = arith.addf %353, %352 : vector<8x128xf32>
    %355 = arith.divf %353, %354 : vector<8x128xf32>
    %356 = vector.extract_strided_slice %346 {offsets = [0, 128], sizes = [8, 128], strides = [1, 1]} : vector<8x512xf32> to vector<8x128xf32>
    %c0_150 = arith.constant 0 : index
    %c128_151 = arith.constant 128 : index
    %357 = vector.load %arg4[%c0_150, %c128_151] : memref<128x512xf32, #tpu.memory_space<vmem>>, vector<128x128xf32>
    %cst_152 = arith.constant dense<0.000000e+00> : vector<8x128xf32>
    %358 = tpu.matmul %339, %357, %cst_152 {dimension_numbers = #tpu.dot_dimension_numbers<[1], [0], [0], [1], [0, 0, 1, 1], [], []>} : vector<8x128xf32>, vector<128x128xf32>, vector<8x128xf32> -> vector<8x128xf32>
    %359 = arith.addf %356, %358 : vector<8x128xf32>
    %360 = arith.negf %359 : vector<8x128xf32>
    %361 = math.exp %360 : vector<8x128xf32>
    %cst_153 = arith.constant 1.000000e+00 : f32
    %362 = vector.broadcast %cst_153 : f32 to vector<8x128xf32>
    %363 = arith.addf %362, %361 : vector<8x128xf32>
    %364 = arith.divf %362, %363 : vector<8x128xf32>
    %365 = vector.extract_strided_slice %346 {offsets = [0, 256], sizes = [8, 128], strides = [1, 1]} : vector<8x512xf32> to vector<8x128xf32>
    %c0_154 = arith.constant 0 : index
    %c256_155 = arith.constant 256 : index
    %366 = vector.load %arg4[%c0_154, %c256_155] : memref<128x512xf32, #tpu.memory_space<vmem>>, vector<128x128xf32>
    %cst_156 = arith.constant dense<0.000000e+00> : vector<8x128xf32>
    %367 = tpu.matmul %339, %366, %cst_156 {dimension_numbers = #tpu.dot_dimension_numbers<[1], [0], [0], [1], [0, 0, 1, 1], [], []>} : vector<8x128xf32>, vector<128x128xf32>, vector<8x128xf32> -> vector<8x128xf32>
    %368 = arith.addf %365, %367 : vector<8x128xf32>
    %369 = math.tanh %368 : vector<8x128xf32>
    %370 = vector.extract_strided_slice %346 {offsets = [0, 384], sizes = [8, 128], strides = [1, 1]} : vector<8x512xf32> to vector<8x128xf32>
    %c0_157 = arith.constant 0 : index
    %c384_158 = arith.constant 384 : index
    %371 = vector.load %arg4[%c0_157, %c384_158] : memref<128x512xf32, #tpu.memory_space<vmem>>, vector<128x128xf32>
    %cst_159 = arith.constant dense<0.000000e+00> : vector<8x128xf32>
    %372 = tpu.matmul %339, %371, %cst_159 {dimension_numbers = #tpu.dot_dimension_numbers<[1], [0], [0], [1], [0, 0, 1, 1], [], []>} : vector<8x128xf32>, vector<128x128xf32>, vector<8x128xf32> -> vector<8x128xf32>
    %373 = arith.addf %370, %372 : vector<8x128xf32>
    %374 = arith.negf %373 : vector<8x128xf32>
    %375 = math.exp %374 : vector<8x128xf32>
    %cst_160 = arith.constant 1.000000e+00 : f32
    %376 = vector.broadcast %cst_160 : f32 to vector<8x128xf32>
    %377 = arith.addf %376, %375 : vector<8x128xf32>
    %378 = arith.divf %376, %377 : vector<8x128xf32>
    %379 = arith.mulf %364, %337 : vector<8x128xf32>
    %380 = arith.mulf %355, %369 : vector<8x128xf32>
    %381 = arith.addf %379, %380 : vector<8x128xf32>
    %382 = math.tanh %381 : vector<8x128xf32>
    %383 = arith.mulf %378, %382 : vector<8x128xf32>
    %384 = arith.index_cast %c7_i32 : i32 to index
    %c0_161 = arith.constant 0 : index
    %c0_162 = arith.constant 0 : index
    %385 = vector.load %arg14[%384, %c0_161, %c0_162] : memref<8x8x128xf32, #tpu.memory_space<vmem>>, vector<1x8x128xf32>
    %386 = vector.shape_cast %385 : vector<1x8x128xf32> to vector<8x128xf32>
    %387 = vector.shape_cast %383 : vector<8x128xf32> to vector<1x8x128xf32>
    tpu.vector_store %arg14[%384, %c0_161, %c0_162], %387 {strides = array<i32>} : memref<8x8x128xf32, #tpu.memory_space<vmem>>, vector<1x8x128xf32>,
    %c8_i32 = arith.constant 8 : i32
    %c0_163 = arith.constant 0 : index
    %c0_164 = arith.constant 0 : index
    %388 = vector.load %arg11[%c0_163, %c0_164] : memref<8x128xf32, #tpu.memory_space<vmem>>, vector<8x128xf32>
    tpu.vector_store %arg11[%c0_163, %c0_164], %383 {strides = array<i32>} : memref<8x128xf32, #tpu.memory_space<vmem>>, vector<8x128xf32>,
    %c0_165 = arith.constant 0 : index
    %c0_166 = arith.constant 0 : index
    %389 = vector.load %arg12[%c0_165, %c0_166] : memref<8x128xf32, #tpu.memory_space<vmem>>, vector<8x128xf32>
    tpu.vector_store %arg12[%c0_165, %c0_166], %381 {strides = array<i32>} : memref<8x128xf32, #tpu.memory_space<vmem>>, vector<8x128xf32>,
    %c0_167 = arith.constant 0 : index
    %c0_168 = arith.constant 0 : index
    %c0_169 = arith.constant 0 : index
    %390 = vector.load %arg14[%c0_167, %c0_168, %c0_169] : memref<8x8x128xf32, #tpu.memory_space<vmem>>, vector<8x8x128xf32>
    %391 = vector.shape_cast %390 : vector<8x8x128xf32> to vector<64x128xf32>
    %c0_170 = arith.constant 0 : index
    %c0_171 = arith.constant 0 : index
    %392 = vector.load %arg6[%c0_170, %c0_171] : memref<128x256xf32, #tpu.memory_space<vmem>>, vector<128x256xf32>
    %cst_172 = arith.constant dense<0.000000e+00> : vector<64x256xf32>
    %393 = tpu.matmul %391, %392, %cst_172 {dimension_numbers = #tpu.dot_dimension_numbers<[1], [0], [0], [1], [0, 0, 1, 1], [], []>} : vector<64x128xf32>, vector<128x256xf32>, vector<64x256xf32> -> vector<64x256xf32>
    %c0_173 = arith.constant 0 : index
    %c0_174 = arith.constant 0 : index
    %394 = vector.load %arg7[%c0_173, %c0_174] : memref<1x256xf32, #tpu.memory_space<vmem>>, vector<1x256xf32>
    %395 = vector.broadcast %394 : vector<1x256xf32> to vector<64x256xf32>
    %396 = arith.addf %393, %395 : vector<64x256xf32>
    %cst_175 = arith.constant 0.000000e+00 : f32
    %397 = vector.broadcast %cst_175 : f32 to vector<64x256xf32>
    %398 = arith.maximumf %396, %397 : vector<64x256xf32>
    %c0_176 = arith.constant 0 : index
    %c0_177 = arith.constant 0 : index
    %399 = vector.load %arg8[%c0_176, %c0_177] : memref<256x128xf32, #tpu.memory_space<vmem>>, vector<256x128xf32>
    %cst_178 = arith.constant dense<0.000000e+00> : vector<64x128xf32>
    %400 = tpu.matmul %398, %399, %cst_178 {dimension_numbers = #tpu.dot_dimension_numbers<[1], [0], [0], [1], [0, 0, 1, 1], [], []>} : vector<64x256xf32>, vector<256x128xf32>, vector<64x128xf32> -> vector<64x128xf32>
    %c0_179 = arith.constant 0 : index
    %c0_180 = arith.constant 0 : index
    %401 = vector.load %arg9[%c0_179, %c0_180] : memref<1x128xf32, #tpu.memory_space<vmem>>, vector<1x128xf32>
    %402 = vector.broadcast %401 : vector<1x128xf32> to vector<64x128xf32>
    %403 = arith.addf %400, %402 : vector<64x128xf32>
    %404 = vector.shape_cast %403 : vector<64x128xf32> to vector<8x8x128xf32>
    %c0_181 = arith.constant 0 : index
    %c0_182 = arith.constant 0 : index
    %c0_183 = arith.constant 0 : index
    %405 = vector.load %arg10[%c0_181, %c0_182, %c0_183] : memref<8x8x128xf32, #tpu.memory_space<vmem>>, vector<8x8x128xf32>
    tpu.vector_store %arg10[%c0_181, %c0_182, %c0_183], %404 {strides = array<i32>} : memref<8x8x128xf32, #tpu.memory_space<vmem>>, vector<8x8x128xf32>,
    return
  }
  func.func @transform_0(%arg0: i32, %arg1: i32) -> (i32, i32, i32) {
    %c0_i32 = arith.constant 0 : i32
    %c0_i32_0 = arith.constant 0 : i32
    return %arg1, %arg0, %c0_i32 : i32, i32, i32
  }
  func.func @transform_1(%arg0: i32, %arg1: i32) -> (i32, i32) {
    %c0_i32 = arith.constant 0 : i32
    %c0_i32_0 = arith.constant 0 : i32
    %c0_i32_1 = arith.constant 0 : i32
    return %c0_i32, %c0_i32_0 : i32, i32
  }
  func.func @transform_2(%arg0: i32, %arg1: i32) -> (i32, i32) {
    %c0_i32 = arith.constant 0 : i32
    %c0_i32_0 = arith.constant 0 : i32
    %c0_i32_1 = arith.constant 0 : i32
    return %c0_i32, %c0_i32_0 : i32, i32
  }
  func.func @transform_3(%arg0: i32, %arg1: i32) -> (i32, i32) {
    %c0_i32 = arith.constant 0 : i32
    %c0_i32_0 = arith.constant 0 : i32
    %c0_i32_1 = arith.constant 0 : i32
    return %c0_i32, %c0_i32_0 : i32, i32
  }
  func.func @transform_4(%arg0: i32, %arg1: i32) -> (i32, i32) {
    %c0_i32 = arith.constant 0 : i32
    %c0_i32_0 = arith.constant 0 : i32
    %c0_i32_1 = arith.constant 0 : i32
    return %c0_i32, %c0_i32_0 : i32, i32
  }
  func.func @transform_5(%arg0: i32, %arg1: i32) -> (i32, i32) {
    %c0_i32 = arith.constant 0 : i32
    %c0_i32_0 = arith.constant 0 : i32
    %c0_i32_1 = arith.constant 0 : i32
    return %c0_i32, %c0_i32_0 : i32, i32
  }
  func.func @transform_6(%arg0: i32, %arg1: i32) -> (i32, i32) {
    %c0_i32 = arith.constant 0 : i32
    %c0_i32_0 = arith.constant 0 : i32
    %c0_i32_1 = arith.constant 0 : i32
    return %c0_i32, %c0_i32_0 : i32, i32
  }
  func.func @transform_7(%arg0: i32, %arg1: i32) -> (i32, i32) {
    %c0_i32 = arith.constant 0 : i32
    %c0_i32_0 = arith.constant 0 : i32
    %c0_i32_1 = arith.constant 0 : i32
    return %c0_i32, %c0_i32_0 : i32, i32
  }
  func.func @transform_8(%arg0: i32, %arg1: i32) -> (i32, i32, i32) {
    %c0_i32 = arith.constant 0 : i32
    %c0_i32_0 = arith.constant 0 : i32
    return %arg1, %arg0, %c0_i32 : i32, i32, i32
  }
}

</mosaic_0001>

<bundles_post_ra>
// kernel: tpu_custom_call.1
= control target key start
LH: loop header
LB: loop body
LE: loop exit
PB: predicated region body
PF: predicated region fallthrough
CT: control target
= control target key end

     0   :  { %13 = vsyncpa [#allocation7], 0  ;;  %s4408_s0 = inlined_call_operand.vmem [shape: f32[8,8,4], index: 0, kind: input, shape index: {}]   ;;  %s4409_s1 = inlined_call_operand.vmem [shape: f32[4,512], index: 1, kind: input, shape index: {}]   ;;  %s4410_s2 = inlined_call_operand.hbm [shape: f32[128,512], index: 2, kind: input, shape index: {}]   ;;  %s4411_s3 = inlined_call_operand.vmem [shape: f32[1,512], index: 3, kind: input, shape index: {}]   ;;  %s4412_s4 = inlined_call_operand.hbm [shape: f32[128,256], index: 4, kind: input, shape index: {}]   ;;  %s4413_s5 = inlined_call_operand.vmem [shape: f32[1,256], index: 5, kind: input, shape index: {}]   ;;  %s4414_s6 = inlined_call_operand.hbm [shape: f32[256,128], index: 6, kind: input, shape index: {}]   ;;  %s4415_s7 = inlined_call_operand.vmem [shape: f32[1,128], index: 7, kind: input, shape index: {}]   ;;  %s4416_s8 = inlined_call_operand.hbm [shape: f32[8,8,128], index: 8, kind: output, shape index: {}]  }
   0x1   :  { %14 = vsyncpa [#allocation10], 0  ;;  %s39_s29 = sshll.u32 %s4412_s4, 4  ;;  %s40_s29 = int_to_ptr.hbm [resolvable:$true] %s39_s29 }
   0x2   :  { %15 = vsyncpa [#allocation8], 0  ;;  %s2916_s30 = smov [#allocation9]   ;;  %s24_s12 = sshll.u32 %s4410_s2, 4  ;;  %s25_s12 = int_to_ptr.hbm [resolvable:$true] %s24_s12 }
   0x3   :  { %s41_s9 = sshll.u32 %s2916_s30, 4  ;;  %s2917_s13 = smov 256   ;;  %s42_s9 = int_to_ptr.vmem [resolvable:$true] %s41_s9 }
   0x4   :  { %s2918_s14 = smov 16   ;;  %s2919_s15 = smov [#allocation6]  }
   0x5   :  { %47 = dma.hbm_to_vmem [thread:$0]  %s40_s29, 4096, %s42_s9, [#allocation10], %s2917_s13, %s2917_s13, %s2918_s14  }
   0x6   :  { %s26_s16 = sshll.u32 %s2919_s15, 4  ;;  %s2920_s17 = smov 512   ;;  %s27_s16 = int_to_ptr.vmem [resolvable:$true] %s26_s16 }
   0x7   :  { %s2921_s18 = smov 32   ;;  %s54_s20 = sshll.u32 %s4414_s6, 4  ;;  %s55_s20 = int_to_ptr.hbm [resolvable:$true] %s54_s20 }
   0x8   :  { %32 = dma.hbm_to_vmem [thread:$0]  %s25_s12, 8192, %s27_s16, [#allocation7], %s2920_s17, %s2920_s17, %s2921_s18  }
   0x9   :  { %s2922_s21 = smov [#allocation11]   ;;  %s2923_s23 = smov 128  }
   0xa   :  { %s56_s22 = sshll.u32 %s2922_s21, 4  ;;  %s2924_s2 = smov 8   ;;  %s57_s22 = int_to_ptr.vmem [resolvable:$true] %s56_s22 }
   0xb   :  { %62 = dma.hbm_to_vmem [thread:$0]  %s55_s20, 4096, %s57_s22, [#allocation10], %s2923_s23, %s2923_s23, %s2924_s2  }
   0xc   :  { %2910 = dma.done.wait [#allocation7], 8192  }
   0xd   :  { %2911 = vsyncadd [#allocation7], 4294959104 }
   0xe   :  { %2912 = dma.done.wait [#allocation10], 8192  }
   0xf   :  { %2913 = vsyncadd [#allocation10], 4294959104  ;;  %v4417_v0 = vmov 0   ;;  %v4419_v1 = vmov 2   ;;  %v2991_v2 = vld [vmem:[#allocation6 + $0x1e0] sm:$0xff]  ;;  %v2993_v3 = vld [vmem:[#allocation6 + $0x1e8] sm:$0xff] }
  0x10   :  { %2652 = vset.pattern.permute.xlu0 %v4417_v0  ;;  %2654 = vset.pattern.permute.xlu1 %v4419_v1  ;;  %v2995_v4 = vld [vmem:[#allocation6 + $0x1f0] sm:$0xff]  ;;  %v2999_v5 = vld [vmem:[#allocation6 + $0x1f8] sm:$0xff]  ;;  %v3001_v6 = vld [vmem:[#allocation6 + $0x1c0] sm:$0xff]  ;;  %v4423_v63 = vmov 1   ;;  %s2599_s25 = sshll.u32 %s4416_s8, 4  ;;  %s2600_s25 = int_to_ptr.hbm [resolvable:$true] %s2599_s25 }
  0x11   :  { %2656 = vset.pattern.permute.xlu2 %v4417_v0  ;;  %599 = vmatpush.msra.mxu0 %v2991_v2  ;;  %v3003_v7 = vld [vmem:[#allocation6 + $0x1c8] sm:$0xff]  ;;  %v3007_v8 = vld [vmem:[#allocation6 + $0x1d0] sm:$0xff]  ;;  %v3009_v9 = vld [vmem:[#allocation6 + $0x1d8] sm:$0xff] }
  0x12   :  { %655 = vmatpush.msra.mxu1 %v2993_v3  ;;  %711 = vmatpush.msra.mxu2 %v2995_v4  ;;  %v3011_v10 = vld [vmem:[#allocation6 + $0x1a0] sm:$0xff]  ;;  %v3015_v11 = vld [vmem:[#allocation6 + $0x1a8] sm:$0xff]  ;;  %v3017_v12 = vld [vmem:[#allocation6 + $0x1b0] sm:$0xff] }
  0x13   :  { %749 = vmatpush.msra.mxu3 %v2999_v5  ;;  %600 = vmatpush.msra.mxu0 %v3001_v6  ;;  %v3019_v13 = vld [vmem:[#allocation6 + $0x1b8] sm:$0xff]  ;;  %v3023_v14 = vld [vmem:[#allocation6 + $0x180] sm:$0xff]  ;;  %v3025_v15 = vld [vmem:[#allocation6 + $0x188] sm:$0xff] }
  0x14   :  { %656 = vmatpush.msra.mxu1 %v3003_v7  ;;  %712 = vmatpush.msra.mxu2 %v3007_v8  ;;  %v3029_v16 = vld [vmem:[#allocation6 + $0x190] sm:$0xff]  ;;  %v3031_v17 = vld [vmem:[#allocation6 + $0x198] sm:$0xff]  ;;  %v3035_v18 = vld [vmem:[#allocation6 + $0x160] sm:$0xff] }
  0x15   :  { %750 = vmatpush.msra.mxu3 %v3009_v9  ;;  %601 = vmatpush.msra.mxu0 %v3011_v10  ;;  %v3037_v19 = vld [vmem:[#allocation6 + $0x168] sm:$0xff]  ;;  %v3041_v20 = vld [vmem:[#allocation6 + $0x170] sm:$0xff]  ;;  %v3043_v21 = vld [vmem:[#allocation6 + $0x178] sm:$0xff] }
  0x16   :  { %657 = vmatpush.msra.mxu1 %v3015_v11  ;;  %713 = vmatpush.msra.mxu2 %v3017_v12  ;;  %v3047_v22 = vld [vmem:[#allocation6 + $0x140] sm:$0xff]  ;;  %v3049_v23 = vld [vmem:[#allocation6 + $0x148] sm:$0xff]  ;;  %v3053_v24 = vld [vmem:[#allocation6 + $0x150] sm:$0xff] }
  0x17   :  { %751 = vmatpush.msra.mxu3 %v3019_v13  ;;  %602 = vmatpush.msra.mxu0 %v3023_v14  ;;  %v3055_v25 = vld [vmem:[#allocation6 + $0x158] sm:$0xff]  ;;  %v3059_v26 = vld [vmem:[#allocation6 + $0x120] sm:$0xff]  ;;  %v3061_v27 = vld [vmem:[#allocation6 + $0x128] sm:$0xff] }
  0x18   :  { %658 = vmatpush.msra.mxu1 %v3025_v15  ;;  %714 = vmatpush.msra.mxu2 %v3029_v16  ;;  %v3065_v28 = vld [vmem:[#allocation6 + $0x130] sm:$0xff]  ;;  %v3067_v29 = vld [vmem:[#allocation6 + $0x138] sm:$0xff]  ;;  %v3071_v30 = vld [vmem:[#allocation6 + $0x100] sm:$0xff] }
  0x19   :  { %752 = vmatpush.msra.mxu3 %v3031_v17  ;;  %603 = vmatpush.msra.mxu0 %v3035_v18  ;;  %v3073_v31 = vld [vmem:[#allocation6 + $0x108] sm:$0xff]  ;;  %v3077_v32 = vld [vmem:[#allocation6 + $0x110] sm:$0xff]  ;;  %v3079_v33 = vld [vmem:[#allocation6 + $0x118] sm:$0xff] }
  0x1a   :  { %659 = vmatpush.msra.mxu1 %v3037_v19  ;;  %715 = vmatpush.msra.mxu2 %v3041_v20  ;;  %v3083_v34 = vld [vmem:[#allocation6 + $0xe0] sm:$0xff]  ;;  %v3085_v35 = vld [vmem:[#allocation6 + $0xe8] sm:$0xff]  ;;  %v3089_v36 = vld [vmem:[#allocation6 + $0xf0] sm:$0xff] }
  0x1b   :  { %753 = vmatpush.msra.mxu3 %v3043_v21  ;;  %604 = vmatpush.msra.mxu0 %v3047_v22  ;;  %v3091_v37 = vld [vmem:[#allocation6 + $0xf8] sm:$0xff]  ;;  %v3095_v38 = vld [vmem:[#allocation6 + $0xc0] sm:$0xff]  ;;  %v3097_v39 = vld [vmem:[#allocation6 + $0xc8] sm:$0xff] }
  0x1c   :  { %660 = vmatpush.msra.mxu1 %v3049_v23  ;;  %716 = vmatpush.msra.mxu2 %v3053_v24  ;;  %v3101_v40 = vld [vmem:[#allocation6 + $0xd0] sm:$0xff]  ;;  %v3103_v41 = vld [vmem:[#allocation6 + $0xd8] sm:$0xff]  ;;  %v3110_v42 = vld [vmem:[%s4408_s0] sm:$0xff] }
  0x1d   :  { %754 = vmatpush.msra.mxu3 %v3055_v25  ;;  %605 = vmatpush.msra.mxu0 %v3059_v26  ;;  %v3112_v43 = vld [vmem:[#allocation6 + $0xa0] sm:$0xff]  ;;  %v3116_v44 = vld [vmem:[#allocation6 + $0xa8] sm:$0xff]  ;;  %v3118_v45 = vld [vmem:[#allocation6 + $0xb0] sm:$0xff] }
  0x1e   :  { %661 = vmatpush.msra.mxu1 %v3061_v27  ;;  %717 = vmatpush.msra.mxu2 %v3065_v28  ;;  %v3122_v46 = vld [vmem:[#allocation6 + $0xb8] sm:$0xff]  ;;  %v3124_v47 = vld [vmem:[#allocation6 + $0x80] sm:$0xff]  ;;  %v3128_v48 = vld [vmem:[#allocation6 + $0x88] sm:$0xff] }
  0x1f   :  { %755 = vmatpush.msra.mxu3 %v3067_v29  ;;  %606 = vmatpush.msra.mxu0 %v3071_v30  ;;  %v3130_v49 = vld [vmem:[#allocation6 + $0x90] sm:$0xff]  ;;  %v3134_v50 = vld [vmem:[#allocation6 + $0x98] sm:$0xff]  ;;  %v3138_v51 = vld [vmem:[#allocation6 + $0x60] sm:$0xff] }
  0x20   :  { %662 = vmatpush.msra.mxu1 %v3073_v31  ;;  %718 = vmatpush.msra.mxu2 %v3077_v32  ;;  %v3140_v52 = vld [vmem:[#allocation6 + $0x68] sm:$0xff]  ;;  %v3144_v53 = vld [vmem:[#allocation6 + $0x70] sm:$0xff]  ;;  %v3146_v54 = vld [vmem:[#allocation6 + $0x78] sm:$0xff] }
  0x21   :  { %756 = vmatpush.msra.mxu3 %v3079_v33  ;;  %607 = vmatpush.msra.mxu0 %v3083_v34  ;;  %v3150_v55 = vld [vmem:[#allocation6 + $0x40] sm:$0xff]  ;;  %v3152_v56 = vld [vmem:[#allocation6 + $0x48] sm:$0xff]  ;;  %v3156_v57 = vld [vmem:[#allocation6 + $0x50] sm:$0xff] }
  0x22   :  { %663 = vmatpush.msra.mxu1 %v3085_v35  ;;  %719 = vmatpush.msra.mxu2 %v3089_v36  ;;  %4558 = vst [vmem:[#allocation16_spill] sm:$0xff] %v3156_v57  ;;  %v3158_v58 = vld [vmem:[#allocation6 + $0x58] sm:$0xff]  ;;  %v3162_v59 = vld [vmem:[#allocation6 + $0x20] sm:$0xff]  ;;  %v3166_v60 = vld [vmem:[#allocation6 + $0x28] sm:$0xff] }
  0x23   :  { %757 = vmatpush.msra.mxu3 %v3091_v37  ;;  %608 = vmatpush.msra.mxu0 %v3095_v38  ;;  %4559 = vst [vmem:[#allocation17_spill] sm:$0xff] %v3158_v58  ;;  %v3170_v61 = vld [vmem:[#allocation6 + $0x30] sm:$0xff]  ;;  %v3172_v62 = vld [vmem:[#allocation6 + $0x38] sm:$0xff]  ;;  %v3176_v0 = vld [vmem:[#allocation6] sm:$0xff] }
  0x24   :  { %664 = vmatpush.msra.mxu1 %v3097_v39  ;;  %720 = vmatpush.msra.mxu2 %v3101_v40  ;;  %4560 = vst [vmem:[#allocation18_spill] sm:$0xff] %v3166_v60  ;;  %v3178_v1 = vld [vmem:[#allocation6 + $0x8] sm:$0xff] }
  0x25   :  { %758 = vmatpush.msra.mxu3 %v3103_v41  ;;  %96 = vperm.xlu0 %2652, %v3110_v42  }
  0x26   :  { %609 = vmatpush.msra.mxu0 %v3112_v43  ;;  %665 = vmatpush.msra.mxu1 %v3116_v44 }
  0x27   :  { %721 = vmatpush.msra.mxu2 %v3118_v45  ;;  %759 = vmatpush.msra.mxu3 %v3122_v46 }
  0x28   :  { %610 = vmatpush.msra.mxu0 %v3124_v47  ;;  %666 = vmatpush.msra.mxu1 %v3128_v48 }
  0x29   :  { %722 = vmatpush.msra.mxu2 %v3130_v49  ;;  %760 = vmatpush.msra.mxu3 %v3134_v50 }
  0x2a   :  { %330 = vperm.xlu1 %2654, %v3110_v42   ;;  %611 = vmatpush.msra.mxu0 %v3138_v51 }
  0x2b   :  { %667 = vmatpush.msra.mxu1 %v3140_v52  ;;  %723 = vmatpush.msra.mxu2 %v3144_v53 }
  0x2c   :  { %761 = vmatpush.msra.mxu3 %v3146_v54  ;;  %612 = vmatpush.msra.mxu0 %v3150_v55 }
  0x2d   :  { %668 = vmatpush.msra.mxu1 %v3152_v56  ;;  %724 = vmatpush.msra.mxu2 %v3156_v57  ;;  %v3182_v57 = vld [vmem:[#allocation6 + $0x10] sm:$0xff] }
  0x2e   :  { %762 = vmatpush.msra.mxu3 %v3158_v58  ;;  %2653 = vset.pattern.permute.xlu0 %v4423_v63  ;;  %v3184_v58 = vld [vmem:[#allocation6 + $0x18] sm:$0xff]  ;;  %v4426_v63 = vmov 3  }
  0x2f   :  { %613 = vmatpush.msra.mxu0 %v3162_v59  ;;  %222 = vperm.xlu0 %2653, %v3110_v42  }
  0x30   :  { %669 = vmatpush.msra.mxu1 %v3166_v60  ;;  %725 = vmatpush.msra.mxu2 %v3170_v61  ;;  %v2929_v60 = vmov 0.0  }
  0x31   :  { %763 = vmatpush.msra.mxu3 %v3172_v62  ;;  %614 = vmatpush.msra.mxu0 %v3176_v0 }
  0x32   :  { %670 = vmatpush.msra.mxu1 %v3178_v1  ;;  %726 = vmatpush.msra.mxu2 %v3182_v57 }
  0x33   :  { %764 = vmatpush.msra.mxu3 %v3184_v58  ;;  %2655 = vset.pattern.permute.xlu1 %v4426_v63 }
  0x34   :  { %615 = vmatmul.f32.vlgmr.msra.gmra.mxu0 %v2929_v60  ;;  %671 = vmatmul.f32.vlgmr.msra.gmra.mxu1 %v2929_v60 }
  0x35   :  { %727 = vmatmul.f32.vlgmr.msra.gmra.mxu2 %v2929_v60  ;;  %765 = vmatmul.f32.vlgmr.msra.gmra.mxu3 %v2929_v60 }
  0x36   :  { %438 = vperm.xlu1 %2655, %v3110_v42   ;;  %816 = vmatpush.msrb.mxu0 %v2991_v2  ;;  %v4561_v2 = vmov 2  }
  0x37   :  { %872 = vmatpush.msrb.mxu1 %v2993_v3  ;;  %928 = vmatpush.msrb.mxu2 %v2995_v4  ;;  %v4562_v3 = vld [vmem:[#allocation16_spill] sm:$0xff]  ;;  %v4563_v4 = vld [vmem:[#allocation17_spill] sm:$0xff] }
  0x38   :  { %966 = vmatpush.msrb.mxu3 %v2999_v5  ;;  %817 = vmatpush.msrb.mxu0 %v3001_v6  ;;  %v4564_v5 = vld [vmem:[#allocation18_spill] sm:$0xff]  ;;  %v4565_v6 = vmov 0  }
  0x39   :  { %873 = vmatpush.msrb.mxu1 %v3003_v7  ;;  %929 = vmatpush.msrb.mxu2 %v3007_v8  ;;  %v91_v7 = vld [vmem:[%s4409_s1] sm:$0xff] }
  0x3a   :  { %967 = vmatpush.msrb.mxu3 %v3009_v9  ;;  %818 = vmatpush.msrb.mxu0 %v3011_v10  ;;  %v136_v8 = vperm.slane %v91_v7, 0  ;;  %v137_v10 = vperm.slane %v91_v7, 4 }
  0x3b   :  { %874 = vmatpush.msrb.mxu1 %v3015_v11  ;;  %930 = vmatpush.msrb.mxu2 %v3017_v12  ;;  %v3266_v11 = vld [vmem:[%s4409_s1 + $0x8] sm:$0xff]  ;;  %v93_v12 = vld [vmem:[%s4411_s3] sm:$0xf] }
  0x3c   :  { %968 = vmatpush.msrb.mxu3 %v3019_v13  ;;  %819 = vmatpush.msrb.mxu0 %v3023_v14  ;;  %v3273_v13 = vperm.slane %v137_v10, 0  ;;  %v254_v14 = vperm.slane %v91_v7, 5 }
  0x3d   :  { %875 = vmatpush.msrb.mxu1 %v3025_v15  ;;  %931 = vmatpush.msrb.mxu2 %v3029_v16  ;;  %v139_v15 = vperm.slane %v3266_v11, 4 }
  0x3e   :  { %969 = vmatpush.msrb.mxu3 %v3031_v17  ;;  %820 = vmatpush.msrb.mxu0 %v3035_v18  ;;  %4567 = vst [vmem:[#allocation17_spill] sm:$0xff] %v3273_v13  ;;  %v3278_v17 = vperm.slane %v93_v12, 0 }
  0x3f   :  { %876 = vmatpush.msrb.mxu1 %v3037_v19  ;;  %932 = vmatpush.msrb.mxu2 %v3041_v20  ;;  %v361_v19 = vperm.slane %v91_v7, 2 }
  0x40   :  { %970 = vmatpush.msrb.mxu3 %v3043_v21  ;;  %821 = vmatpush.msrb.mxu0 %v3047_v22  ;;  %4568 = vst [vmem:[#allocation18_spill] sm:$0xff] %v3278_v17  ;;  %v3283_v21 = vperm.slane %v93_v12, 1 }
  0x41   :  { %877 = vmatpush.msrb.mxu1 %v3049_v23  ;;  %933 = vmatpush.msrb.mxu2 %v3053_v24  ;;  %v362_v23 = vperm.slane %v91_v7, 6  ;;  %v3286_v24 = vperm.slane %v254_v14, 1 }
  0x42   :  { %971 = vmatpush.msrb.mxu3 %v3055_v25  ;;  %822 = vmatpush.msrb.mxu0 %v3059_v26  ;;  %4570 = vst [vmem:[#allocation20_spill] sm:$0xff] %v3283_v21  ;;  %v3288_v26 = vperm.slane %v139_v15, 0 }
  0x43   :  { %878 = vmatpush.msrb.mxu1 %v3061_v27  ;;  %934 = vmatpush.msrb.mxu2 %v3065_v28  ;;  %4571 = vst [vmem:[#allocation21_spill] sm:$0xff] %v3286_v24  ;;  %v256_v27 = vperm.slane %v3266_v11, 5 }
  0x44   :  { %972 = vmatpush.msrb.mxu3 %v3067_v29  ;;  %823 = vmatpush.msrb.mxu0 %v3071_v30  ;;  %4572 = vst [vmem:[#allocation22_spill] sm:$0xff] %v3288_v26  ;;  %v3292_v29 = vperm.slane %v361_v19, 2 }
  0x45   :  { %879 = vmatpush.msrb.mxu1 %v3073_v31  ;;  %935 = vmatpush.msrb.mxu2 %v3077_v32  ;;  %v469_v31 = vperm.slane %v91_v7, 3 }
  0x46   :  { %973 = vmatpush.msrb.mxu3 %v3079_v33  ;;  %824 = vmatpush.msrb.mxu0 %v3083_v34  ;;  %4573 = vst [vmem:[#allocation23_spill] sm:$0xff] %v3292_v29  ;;  %v3296_v33 = vperm.slane %v362_v23, 2 }
  0x47   :  { %880 = vmatpush.msrb.mxu1 %v3085_v35  ;;  %936 = vmatpush.msrb.mxu2 %v3089_v36  ;;  %v470_v35 = vperm.slane %v91_v7, 7  ;;  %v3299_v36 = vperm.slane %v93_v12, 3  ;;  %v3307_v42 = vperm.slane %v469_v31, 3 }
  0x48   :  { %974 = vmatpush.msrb.mxu3 %v3091_v37  ;;  %825 = vmatpush.msrb.mxu0 %v3095_v38  ;;  %4574 = vst [vmem:[#allocation24_spill] sm:$0xff] %v3296_v33  ;;  %v364_v37 = vperm.slane %v3266_v11, 6  ;;  %v3302_v38 = vperm.slane %v256_v27, 1  ;;  %v84_v27 = vld [vmem:[%s4408_s0 + $0x8] sm:$0xff] }
  0x49   :  { %881 = vmatpush.msrb.mxu1 %v3097_v39  ;;  %937 = vmatpush.msrb.mxu2 %v3101_v40  ;;  %4575 = vst [vmem:[#allocation25_spill] sm:$0xff] %v3299_v36 }
  0x4a   :  { %975 = vmatpush.msrb.mxu3 %v3103_v41  ;;  %826 = vmatpush.msrb.mxu0 %v3112_v43  ;;  %4576 = vst [vmem:[#allocation26_spill] sm:$0xff] %v3302_v38 }
  0x4b   :  { %882 = vmatpush.msrb.mxu1 %v3116_v44  ;;  %938 = vmatpush.msrb.mxu2 %v3118_v45  ;;  %4577 = vst [vmem:[#allocation27_spill] sm:$0xff] %v3307_v42 }
  0x4c   :  { %976 = vmatpush.msrb.mxu3 %v3122_v46  ;;  %827 = vmatpush.msrb.mxu0 %v3124_v47  ;;  %v3311_v46 = vperm.slane %v470_v35, 3  ;;  %v138_v47 = vperm.slane %v3266_v11, 0 }
  0x4d   :  { %883 = vmatpush.msrb.mxu1 %v3128_v48  ;;  %939 = vmatpush.msrb.mxu2 %v3130_v49  ;;  %v3314_v48 = vperm.slane %v364_v37, 2  ;;  %v472_v49 = vperm.slane %v3266_v11, 7 }
  0x4e   :  { %977 = vmatpush.msrb.mxu3 %v3134_v50  ;;  %2658 = vset.pattern.permute.xlu1 %v4561_v2  ;;  %4578 = vst [vmem:[#allocation28_spill] sm:$0xff] %v3311_v46 }
  0x4f   :  { %828 = vmatpush.msrb.mxu0 %v3138_v51  ;;  %884 = vmatpush.msrb.mxu1 %v3140_v52  ;;  %4579 = vst [vmem:[#allocation29_spill] sm:$0xff] %v3314_v48 }
  0x50   :  { %940 = vmatpush.msrb.mxu2 %v3144_v53  ;;  %978 = vmatpush.msrb.mxu3 %v3146_v54 }
  0x51   :  { %829 = vmatpush.msrb.mxu0 %v3150_v55  ;;  %885 = vmatpush.msrb.mxu1 %v3152_v56  ;;  %v3321_v56 = vperm.slane %v138_v47, 0  ;;  %v4586_v47 = vmov 1  }
  0x52   :  { %941 = vmatpush.msrb.mxu2 %v4562_v3  ;;  %979 = vmatpush.msrb.mxu3 %v4563_v4  ;;  %v363_v4 = vperm.slane %v3266_v11, 2 }
  0x53   :  { %830 = vmatpush.msrb.mxu0 %v3162_v59  ;;  %886 = vmatpush.msrb.mxu1 %v4564_v5  ;;  %4580 = vst [vmem:[#allocation30_spill] sm:$0xff] %v3321_v56 }
  0x54   :  { %942 = vmatpush.msrb.mxu2 %v3170_v61  ;;  %980 = vmatpush.msrb.mxu3 %v3172_v62  ;;  %v3326_v61 = vperm.slane %v472_v49, 3  ;;  %v3335_v23 = vperm.slane %v363_v4, 2 }
  0x55   :  { %831 = vmatpush.msrb.mxu0 %v3176_v0  ;;  %887 = vmatpush.msrb.mxu1 %v3178_v1  ;;  %v3268_v0 = vperm.slane %v136_v8, 0  ;;  %v253_v1 = vperm.slane %v91_v7, 1  ;;  %v3329_v8 = vperm.slane %v93_v12, 2 }
  0x56   :  { %943 = vmatpush.msrb.mxu2 %v3182_v57  ;;  %981 = vmatpush.msrb.mxu3 %v3184_v58  ;;  %v255_v57 = vperm.slane %v3266_v11, 1  ;;  %4581 = vst [vmem:[#allocation31_spill] sm:$0xff] %v3326_v61 }
  0x57   :  { %2660 = vset.pattern.permute.xlu0 %v4565_v6  ;;  %4566 = vst [vmem:[#allocation16_spill] sm:$0xff] %v3268_v0  ;;  %v3281_v20 = vperm.slane %v253_v1, 1  ;;  %334 = vperm.xlu1 %2658, %v84_v27  }
  0x58   :  { %4582 = vst [vmem:[#allocation32_spill] sm:$0xff] %v3329_v8  ;;  %v3332_v1 = vperm.slane %v255_v57, 1  ;;  %101 = vperm.xlu2 %2656, %v84_v27  }
  0x59   :  { %4569 = vst [vmem:[#allocation19_spill] sm:$0xff] %v3281_v20 }
  0x5a   :  { %4583 = vst [vmem:[#allocation33_spill] sm:$0xff] %v3332_v1 }
  0x5b   :  { %4584 = vst [vmem:[#allocation34_spill] sm:$0xff] %v3335_v23 }
  0x5f   :  { %2661 = vset.pattern.permute.xlu1 %v4586_v47 }
  0x60   :  { %2657 = vset.pattern.permute.xlu2 %v4586_v47 }
  0x61   :  { %226 = vperm.xlu2 %2657, %v84_v27  }
  0x69   :  { %2659 = vset.pattern.permute.xlu2 %v4426_v63  ;;  %v3466_v63 = vld [vmem:[#allocation6 + $0x130] sm:$0xff] }
  0x6a   :  { %442 = vperm.xlu2 %2659, %v84_v27  }
  0x72   :  { %2662 = vset.pattern.permute.xlu2 %v4561_v2  ;;  %v3518_v2 = vld [vmem:[#allocation6 + $0xa0] sm:$0xff] }
  0x97   :  { %v97_v9 = vpop.permute.xlu0 %96 }
  0x98   :  { %v148_v18 = vmul.f32 %v3268_v0, %v97_v9  ;;  %v149_v22 = vmul.f32 %v3273_v13, %v97_v9  ;;  %v151_v39 = vmul.f32 %v3288_v26, %v97_v9  ;;  %v150_v10 = vmul.f32 %v3321_v56, %v97_v9 }
  0x99   :  { %v471_v9 = vperm.slane %v3266_v11, 3 }
  0x9a   :  { %v189_v28 = vadd.f32 %v3278_v17, %v148_v18  ;;  %v190_v32 = vadd.f32 %v3283_v21, %v149_v22  ;;  %v192_v50 = vadd.f32 %v3299_v36, %v151_v39  ;;  %v191_v12 = vadd.f32 %v3329_v8, %v150_v10 }
  0x9b   :  { %v3345_v37 = vperm.slane %v471_v9, 3 }
  0x9c   :  { %v3276_v16 = vpop.permute.xlu1 %330 }
  0x9d   :  { %v373_v40 = vmul.f32 %v3292_v29, %v3276_v16  ;;  %v374_v43 = vmul.f32 %v3296_v33, %v3276_v16  ;;  %v376_v58 = vmul.f32 %v3314_v48, %v3276_v16  ;;  %4585 = vst [vmem:[#allocation35_spill] sm:$0xff] %v3345_v37 }
  0xa1   :  { %v223_v25 = vpop.permute.xlu0 %222 }
  0xa2   :  { %v265_v30 = vmul.f32 %v3281_v20, %v223_v25  ;;  %v266_v34 = vmul.f32 %v3286_v24, %v223_v25  ;;  %v268_v51 = vmul.f32 %v3302_v38, %v223_v25 }
  0xa4   :  { %v297_v41 = vadd.f32 %v265_v30, %v189_v28  ;;  %v298_v45 = vadd.f32 %v266_v34, %v190_v32  ;;  %v300_v60 = vadd.f32 %v268_v51, %v192_v50  ;;  %v267_v28 = vmul.f32 %v3332_v1, %v223_v25 }
  0xa5   :  { %v375_v34 = vmul.f32 %v3335_v23, %v3276_v16 }
  0xa6   :  { %v405_v52 = vadd.f32 %v373_v40, %v297_v41  ;;  %v406_v54 = vadd.f32 %v374_v43, %v298_v45  ;;  %v408_v18 = vadd.f32 %v376_v58, %v300_v60  ;;  %v299_v35 = vadd.f32 %v267_v28, %v191_v12 }
  0xa8   :  { %v439_v44 = vpop.permute.xlu1 %438  ;;  %v407_v25 = vadd.f32 %v375_v34, %v299_v35 }
  0xa9   :  { %v481_v53 = vmul.f32 %v3307_v42, %v439_v44  ;;  %v482_v55 = vmul.f32 %v3311_v46, %v439_v44  ;;  %v484_v19 = vmul.f32 %v3326_v61, %v439_v44  ;;  %v483_v11 = vmul.f32 %v3345_v37, %v439_v44 }
  0xab   :  { %v513_v59 = vadd.f32 %v481_v53, %v405_v52  ;;  %v514_v3 = vadd.f32 %v482_v55, %v406_v54  ;;  %v516_v30 = vadd.f32 %v484_v19, %v408_v18  ;;  %v515_v49 = vadd.f32 %v483_v11, %v407_v25 }
  0xb1   :  { %v616_v62 = vpop.f32.mrf.mxu0  ;;  %v672_v7 = vpop.f32.mrf.mxu1 }
  0xb2   :  { %v619_v5 = vadd.f32 %v616_v62, %v513_v59  ;;  %v675_v14 = vadd.f32 %v672_v7, %v514_v3 }
  0xb4   :  { %v2613_v15 = vmul.f32 -1.442695, %v619_v5  ;;  %v2614_v22 = vmul.f32 -1.442695, %v675_v14 }
  0xb6   :  { %2686 = vpow2.f32 %v2613_v15 }
  0xb7   :  { %2688 = vpow2.f32 %v2614_v22 }
  0xb8   :  { %v766_v31 = vpop.f32.mrf.mxu3  ;;  %v728_v16 = vpop.f32.mrf.mxu2 }
  0xb9   :  { %v769_v32 = vadd.f32 %v766_v31, %v516_v30  ;;  %v731_v52 = vadd.f32 %v728_v16, %v515_v49  ;;  %v3361_v49 = vpop.permute.xlu2 %101 }
  0xbb   :  { %v2615_v40 = vmul.f32 -1.442695, %v769_v32 }
  0xbc   :  { %v2687_v39 = vpop.eup %2686 }
  0xbd   :  { %v2689_v41 = vpop.eup %2688  ;;  %v623_v43 = vadd.f32 1.0, %v2687_v39  ;;  %2690 = vpow2.f32 %v2615_v40 }
  0xbe   :  { %v679_v45 = vadd.f32 1.0, %v2689_v41 }
  0xbf   :  { %2692 = vrcp.f32 %v623_v43  ;;  %v635_v59 = vand.u32 2147483648, %v623_v43  ;;  %v633_v3 = vand.u32 2147483647, %v623_v43  ;;  %vm629_vm2 = vweird.f32 %v623_v43 }
  0xc0   :  { %2694 = vrcp.f32 %v679_v45  ;;  %v691_v60 = vand.u32 2147483648, %v679_v45  ;;  %v689_v5 = vand.u32 2147483647, %v679_v45  ;;  %vm685_vm3 = vweird.f32 %v679_v45 }
  0xc1   :  { %v636_v14 = vor.u32 1.1754944e-38, %v635_v59  ;;  %vm634_vm5 = vcmp.eq.f32.partialorder %v633_v3, 8.507059e+37  ;;  %v3385_v59 = vld [vmem:[#allocation6 + $0x1d0] sm:$0xff] }
  0xc2   :  { %v692_v18 = vor.u32 1.1754944e-38, %v691_v60  ;;  %vm690_vm7 = vcmp.eq.f32.partialorder %v689_v5, 8.507059e+37  ;;  %v3389_v60 = vld [vmem:[#allocation6 + $0x1d8] sm:$0xff]  ;;  %v3398_v5 = vld [vmem:[#allocation6 + $0x1a8] sm:$0xff] }
  0xc3   :  { %v2691_v50 = vpop.eup %2690  ;;  %4589 = vst [vmem:[#allocation38_spill] sm:$0xff] %v3398_v5 }
  0xc4   :  { %v773_v53 = vadd.f32 1.0, %v2691_v50  ;;  %v3363_v50 = vpop.permute.xlu2 %226 }
  0xc5   :  { %v2693_v51 = vpop.eup %2692  ;;  %v269_v3 = vmul.f32 %v3281_v20, %v3363_v50  ;;  %v3504_v20 = vld [vmem:[#allocation6 + $0xc8] sm:$0xff] }
  0xc6   :  { %v2695_v54 = vpop.eup %2694  ;;  %v625_v55 = vmul.f32 %v2693_v51, %v623_v43  ;;  %2696 = vrcp.f32 %v773_v53  ;;  %vm630_vm0 = vweird.f32 %v2693_v51  ;;  %v785_v40 = vand.u32 2147483648, %v773_v53 }
  0xc7   :  { %v681_v57 = vmul.f32 %v2695_v54, %v679_v45  ;;  %2698 = vtanh.f32 %v731_v52  ;;  %vm686_vm1 = vweird.f32 %v2695_v54  ;;  %vm631_vm4 = vmor %vm629_vm2, %vm630_vm0  ;;  %vm779_vm9 = vweird.f32 %v773_v53  ;;  %v3367_v52 = vld [vmem:[#allocation6 + $0x1e0] sm:$0xff] }
  0xc8   :  { %v626_v58 = vsub.f32 1.0, %v625_v55  ;;  %vm687_vm6 = vmor %vm685_vm3, %vm686_vm1  ;;  %v783_v41 = vand.u32 2147483647, %v773_v53  ;;  %v786_v45 = vor.u32 1.1754944e-38, %v785_v40  ;;  %v153_v55 = vmul.f32 %v3273_v13, %v3361_v49  ;;  %1034 = vmatpush.msra.mxu0 %v3367_v52  ;;  %v3506_v13 = vld [vmem:[#allocation6 + $0xd0] sm:$0xff] }
  0xc9   :  { %v682_v44 = vsub.f32 1.0, %v681_v57  ;;  %v3377_v57 = vld [vmem:[#allocation6 + $0x1f8] sm:$0xff] }
  0xca   :  { %v627_v62 = vmul.f32 %v2693_v51, %v626_v58  ;;  %vm784_vm11 = vcmp.eq.f32.partialorder %v783_v41, 8.507059e+37  ;;  %1184 = vmatpush.msra.mxu3 %v3377_v57  ;;  %v3381_v58 = vld [vmem:[#allocation6 + $0x1c0] sm:$0xff] }
  0xcb   :  { %v683_v4 = vmul.f32 %v2695_v54, %v682_v44  ;;  %v3383_v44 = vld [vmem:[#allocation6 + $0x1c8] sm:$0xff]  ;;  %1035 = vmatpush.msra.mxu0 %v3381_v58 }
  0xcc   :  { %v628_v7 = vadd.f32 %v2693_v51, %v627_v62  ;;  %v2697_v10 = vpop.eup %2696  ;;  %1185 = vmatpush.msra.mxu3 %v3389_v60  ;;  %v3437_v40 = vpop.permute.xlu2 %442 }
  0xcd   :  { %v684_v15 = vadd.f32 %v2695_v54, %v683_v4  ;;  %v775_v22 = vmul.f32 %v2697_v10, %v773_v53  ;;  %v2699_v27 = vpop.eup %2698  ;;  %vm780_vm8 = vweird.f32 %v2697_v10  ;;  %v3369_v53 = vld [vmem:[#allocation6 + $0x1e8] sm:$0xff]  ;;  %v3396_v4 = vld [vmem:[#allocation6 + $0x1a0] sm:$0xff]  ;;  %v488_v6 = vmul.f32 %v3326_v61, %v3437_v40  ;;  %v3534_v61 = vld [vmem:[#allocation6 + $0x90] sm:$0xff] }
  0xce   :  { %v632_v19 = vsel %vm631_vm4, %v2693_v51, %v628_v7  ;;  %vm781_vm10 = vmor %vm779_vm9, %vm780_vm8  ;;  %v152_v51 = vmul.f32 %v3268_v0, %v3361_v49  ;;  %4588 = vst [vmem:[#allocation37_spill] sm:$0xff] %v3369_v53  ;;  %1090 = vmatpush.msra.mxu1 %v3369_v53  ;;  %v3400_v7 = vld [vmem:[#allocation6 + $0x1b0] sm:$0xff]  ;;  %1036 = vmatpush.msra.mxu0 %v3396_v4 }
  0xcf   :  { %v637_v12 = vsel %vm634_vm5, %v636_v14, %v632_v19  ;;  %v688_v28 = vsel %vm687_vm6, %v2695_v54, %v684_v15  ;;  %v776_v31 = vsub.f32 1.0, %v775_v22  ;;  %v3371_v54 = vld [vmem:[#allocation6 + $0x1f0] sm:$0xff]  ;;  %v270_v14 = vmul.f32 %v3286_v24, %v3363_v50  ;;  %v3407_v15 = vld [vmem:[#allocation6 + $0x1b8] sm:$0xff]  ;;  %v3413_v19 = vld [vmem:[#allocation6 + $0x180] sm:$0xff]  ;;  %4600 = vst [vmem:[#allocation49_spill] sm:$0xff] %v3534_v61 }
  0xd0   :  { %v693_v9 = vsel %vm690_vm7, %v692_v18, %v688_v28  ;;  %v790_v30 = vmul.f32 %v2699_v27, %v637_v12  ;;  %1146 = vmatpush.msra.mxu2 %v3371_v54  ;;  %1091 = vmatpush.msra.mxu1 %v3383_v44  ;;  %v193_v62 = vadd.f32 %v3278_v17, %v152_v51  ;;  %v3409_v18 = vpop.permute.xlu1 %334  ;;  %v3415_v22 = vld [vmem:[#allocation6 + $0x188] sm:$0xff]  ;;  %v3417_v27 = vld [vmem:[#allocation6 + $0x190] sm:$0xff]  ;;  %v3421_v12 = vld [vmem:[#allocation6 + $0x198] sm:$0xff] }
  0xd1   :  { %v789_v32 = vmul.f32 0.0, %v693_v9  ;;  %v777_v34 = vmul.f32 %v2697_v10, %v776_v31  ;;  %1186 = vmatpush.msra.mxu3 %v3407_v15  ;;  %4590 = vst [vmem:[#allocation39_spill] sm:$0xff] %v3417_v27  ;;  %1037 = vmatpush.msra.mxu0 %v3413_v19  ;;  %v155_v28 = vmul.f32 %v3288_v26, %v3361_v49  ;;  %v3429_v31 = vld [vmem:[#allocation6 + $0x168] sm:$0xff]  ;;  %v3453_v51 = vld [vmem:[#allocation6 + $0x158] sm:$0xff]  ;;  %v3494_v26 = vld [vmem:[#allocation6 + $0xf0] sm:$0xff] }
  0xd2   :  { %1147 = vmatpush.msra.mxu2 %v3385_v59  ;;  %1092 = vmatpush.msra.mxu1 %v3398_v5  ;;  %v301_v9 = vadd.f32 %v269_v3, %v193_v62  ;;  %4591 = vst [vmem:[#allocation40_spill] sm:$0xff] %v3429_v31  ;;  %v272_v62 = vmul.f32 %v3302_v38, %v3363_v50  ;;  %v3478_v38 = vld [vmem:[#allocation6 + $0x108] sm:$0xff]  ;;  %v3498_v24 = vld [vmem:[#allocation6 + $0xf8] sm:$0xff] }
  0xd3   :  { %v3352_v35 = vadd.f32 %v790_v30, %v789_v32  ;;  %v778_v39 = vadd.f32 %v2697_v10, %v777_v34  ;;  %1187 = vmatpush.msra.mxu3 %v3421_v12  ;;  %v3427_v30 = vld [vmem:[#allocation6 + $0x160] sm:$0xff]  ;;  %v3431_v32 = vld [vmem:[#allocation6 + $0x170] sm:$0xff]  ;;  %v377_v34 = vmul.f32 %v3292_v29, %v3409_v18  ;;  %v485_v3 = vmul.f32 %v3307_v42, %v3437_v40  ;;  %v3472_v42 = vld [vmem:[#allocation6 + $0x138] sm:$0xff] }
  0xd4   :  { %1148 = vmatpush.msra.mxu2 %v3400_v7  ;;  %1093 = vmatpush.msra.mxu1 %v3415_v22  ;;  %v3480_v29 = vld [vmem:[#allocation6 + $0x110] sm:$0xff] }
  0xd5   :  { %2700 = vtanh.f32 %v3352_v35  ;;  %v782_v43 = vsel %vm781_vm10, %v2697_v10, %v778_v39  ;;  %v194_v10 = vadd.f32 %v3283_v21, %v153_v55  ;;  %v378_v39 = vmul.f32 %v3296_v33, %v3409_v18  ;;  %1038 = vmatpush.msra.mxu0 %v3427_v30 }
  0xd6   :  { %v787_v11 = vsel %vm784_vm11, %v786_v45, %v782_v43  ;;  %1149 = vmatpush.msra.mxu2 %v3417_v27  ;;  %1094 = vmatpush.msra.mxu1 %v3429_v31  ;;  %v3441_v43 = vld [vmem:[#allocation6 + $0x178] sm:$0xff]  ;;  %v3445_v45 = vld [vmem:[#allocation6 + $0x140] sm:$0xff]  ;;  %v196_v55 = vadd.f32 %v3299_v36, %v155_v28  ;;  %v486_v28 = vmul.f32 %v3311_v46, %v3437_v40  ;;  %v3492_v46 = vld [vmem:[#allocation6 + $0xe8] sm:$0xff] }
  0xd7   :  { %v302_v41 = vadd.f32 %v270_v14, %v194_v10  ;;  %1188 = vmatpush.msra.mxu3 %v3441_v43  ;;  %4592 = vst [vmem:[#allocation41_spill] sm:$0xff] %v3445_v45  ;;  %1039 = vmatpush.msra.mxu0 %v3445_v45  ;;  %v3462_v10 = vld [vmem:[#allocation6 + $0x120] sm:$0xff]  ;;  %v3464_v14 = vld [vmem:[#allocation6 + $0x128] sm:$0xff] }
  0xd8   :  { %1150 = vmatpush.msra.mxu2 %v3431_v32  ;;  %v3476_v36 = vld [vmem:[#allocation6 + $0x100] sm:$0xff] }
  0xd9   :  { %1189 = vmatpush.msra.mxu3 %v3453_v51  ;;  %v410_v33 = vadd.f32 %v378_v39, %v302_v41  ;;  %1040 = vmatpush.msra.mxu0 %v3462_v10  ;;  %v304_v39 = vadd.f32 %v272_v62, %v196_v55  ;;  %v3490_v41 = vld [vmem:[#allocation6 + $0xe0] sm:$0xff] }
  0xda   :  { %v3502_v62 = vld [vmem:[#allocation6 + $0xc0] sm:$0xff] }
  0xdb   :  { %v2701_v25 = vpop.eup %2700  ;;  %1190 = vmatpush.msra.mxu3 %v3472_v42  ;;  %1041 = vmatpush.msra.mxu0 %v3476_v36  ;;  %v518_v17 = vadd.f32 %v486_v28, %v410_v33  ;;  %v154_v28 = vmul.f32 %v3321_v56, %v3361_v49  ;;  %v3526_v49 = vld [vmem:[#allocation6 + $0xb8] sm:$0xff]  ;;  %v3542_v56 = vld [vmem:[#allocation6 + $0x68] sm:$0xff] }
  0xdc   :  { %v3355_v16 = vmul.f32 %v2701_v25, %v787_v11  ;;  %v3447_v25 = vld [vmem:[#allocation6 + $0x148] sm:$0xff]  ;;  %v3449_v11 = vld [vmem:[#allocation6 + $0x150] sm:$0xff]  ;;  %4597 = vst [vmem:[#allocation46_spill] sm:$0xff] %v3526_v49 }
  0xdd   :  { %4593 = vst [vmem:[#allocation42_spill] sm:$0xff] %v3447_v25  ;;  %1095 = vmatpush.msra.mxu1 %v3447_v25  ;;  %1151 = vmatpush.msra.mxu2 %v3449_v11  ;;  %v195_v47 = vadd.f32 %v3329_v8, %v154_v28  ;;  %v3569_v8 = vld [vmem:[#allocation6 + $0x20] sm:$0xff] }
  0xde   :  { %4587 = vst [vmem:[#allocation36_spill] sm:$0xff] %v3355_v16  ;;  %832 = vmatmul.f32.vlgmr.msrb.gmra.mxu0 %v3355_v16  ;;  %888 = vmatmul.f32.vlgmr.msrb.gmra.mxu1 %v3355_v16 }
  0xdf   :  { %944 = vmatmul.f32.vlgmr.msrb.gmra.mxu2 %v3355_v16  ;;  %982 = vmatmul.f32.vlgmr.msrb.gmra.mxu3 %v3355_v16  ;;  %4594 = vst [vmem:[#allocation43_spill] sm:$0xff] %v3449_v11  ;;  %v409_v16 = vadd.f32 %v377_v34, %v301_v9  ;;  %v3484_v9 = vld [vmem:[#allocation6 + $0x118] sm:$0xff]  ;;  %v380_v34 = vmul.f32 %v3314_v48, %v3409_v18 }
  0xe0   :  { %1096 = vmatpush.msra.mxu1 %v3464_v14  ;;  %1152 = vmatpush.msra.mxu2 %v3466_v63  ;;  %4603 = vst [vmem:[#allocation52_spill] sm:$0xff] %v3542_v56 }
  0xe1   :  { %1191 = vmatpush.msra.mxu3 %v3484_v9  ;;  %v517_v21 = vadd.f32 %v485_v3, %v409_v16  ;;  %1042 = vmatpush.msra.mxu0 %v3490_v41  ;;  %v3510_v3 = vld [vmem:[#allocation6 + $0xd8] sm:$0xff]  ;;  %v412_v0 = vadd.f32 %v380_v34, %v304_v39  ;;  %v3530_v34 = vld [vmem:[#allocation6 + $0x80] sm:$0xff]  ;;  %v3532_v39 = vld [vmem:[#allocation6 + $0x88] sm:$0xff] }
  0xe2   :  { %1097 = vmatpush.msra.mxu1 %v3478_v38  ;;  %1153 = vmatpush.msra.mxu2 %v3480_v29  ;;  %4598 = vst [vmem:[#allocation47_spill] sm:$0xff] %v3530_v34 }
  0xe3   :  { %1192 = vmatpush.msra.mxu3 %v3498_v24  ;;  %1043 = vmatpush.msra.mxu0 %v3502_v62  ;;  %4599 = vst [vmem:[#allocation48_spill] sm:$0xff] %v3532_v39 }
  0xe4   :  { %1098 = vmatpush.msra.mxu1 %v3492_v46  ;;  %1154 = vmatpush.msra.mxu2 %v3494_v26 }
  0xe5   :  { %1193 = vmatpush.msra.mxu3 %v3510_v3  ;;  %1044 = vmatpush.msra.mxu0 %v3518_v2 }
  0xe6   :  { %1099 = vmatpush.msra.mxu1 %v3504_v20  ;;  %1155 = vmatpush.msra.mxu2 %v3506_v13 }
  0xe7   :  { %1194 = vmatpush.msra.mxu3 %v3526_v49  ;;  %1045 = vmatpush.msra.mxu0 %v3530_v34  ;;  %v271_v49 = vmul.f32 %v3332_v1, %v3363_v50  ;;  %v85_v34 = vld [vmem:[%s4408_s0 + $0x10] sm:$0xff]  ;;  %v3558_v50 = vld [vmem:[#allocation6 + $0x40] sm:$0xff]  ;;  %v3571_v1 = vld [vmem:[#allocation6 + $0x28] sm:$0xff] }
  0xe8   :  { %4606 = vst [vmem:[#allocation55_spill] sm:$0xff] %v3558_v50  ;;  %230 = vperm.xlu1 %2661, %v85_v34   ;;  %106 = vperm.xlu0 %2660, %v85_v34  }
  0xe9   :  { %338 = vperm.xlu2 %2662, %v85_v34  }
 0x15b   :  { %v833_v48 = vpop.f32.mrf.mxu0  ;;  %v889_v55 = vpop.f32.mrf.mxu1 }
 0x15c   :  { %v836_v16 = vadd.f32 %v833_v48, %v517_v21  ;;  %v892_v33 = vadd.f32 %v889_v55, %v518_v17  ;;  %v3520_v17 = vld [vmem:[#allocation6 + $0xa8] sm:$0xff]  ;;  %v3522_v21 = vld [vmem:[#allocation6 + $0xb0] sm:$0xff] }
 0x15d   :  { %4595 = vst [vmem:[#allocation44_spill] sm:$0xff] %v3520_v17  ;;  %1100 = vmatpush.msra.mxu1 %v3520_v17  ;;  %1156 = vmatpush.msra.mxu2 %v3522_v21 }
 0x15e   :  { %4596 = vst [vmem:[#allocation45_spill] sm:$0xff] %v3522_v21  ;;  %v2616_v48 = vmul.f32 -1.442695, %v836_v16  ;;  %v2617_v55 = vmul.f32 -1.442695, %v892_v33  ;;  %v3538_v16 = vld [vmem:[#allocation6 + $0x98] sm:$0xff]  ;;  %v520_v21 = vadd.f32 %v488_v6, %v412_v0 }
 0x15f   :  { %1101 = vmatpush.msra.mxu1 %v3532_v39  ;;  %4601 = vst [vmem:[#allocation50_spill] sm:$0xff] %v3538_v16  ;;  %v3540_v33 = vld [vmem:[#allocation6 + $0x60] sm:$0xff]  ;;  %1157 = vmatpush.msra.mxu2 %v3534_v61  ;;  %v3551_v39 = vld [vmem:[#allocation6 + $0x78] sm:$0xff]  ;;  %v3560_v6 = vld [vmem:[#allocation6 + $0x48] sm:$0xff] }
 0x160   :  { %2702 = vpow2.f32 %v2616_v48  ;;  %4602 = vst [vmem:[#allocation51_spill] sm:$0xff] %v3540_v33  ;;  %1195 = vmatpush.msra.mxu3 %v3538_v16  ;;  %v3549_v48 = vld [vmem:[#allocation6 + $0x70] sm:$0xff]  ;;  %1046 = vmatpush.msra.mxu0 %v3540_v33  ;;  %v303_v33 = vadd.f32 %v271_v49, %v195_v47  ;;  %v3592_v49 = vld [vmem:[#allocation6 + $0x18] sm:$0xff] }
 0x161   :  { %2704 = vpow2.f32 %v2617_v55  ;;  %4604 = vst [vmem:[#allocation53_spill] sm:$0xff] %v3549_v48  ;;  %1102 = vmatpush.msra.mxu1 %v3542_v56  ;;  %v3562_v0 = vld [vmem:[#allocation6 + $0x50] sm:$0xff]  ;;  %1158 = vmatpush.msra.mxu2 %v3549_v48  ;;  %v3566_v55 = vld [vmem:[#allocation6 + $0x58] sm:$0xff]  ;;  %v379_v56 = vmul.f32 %v3335_v23, %v3409_v18  ;;  %v3584_v48 = vld [vmem:[#allocation6 + $0x8] sm:$0xff] }
 0x162   :  { %4605 = vst [vmem:[#allocation54_spill] sm:$0xff] %v3551_v39  ;;  %v983_v17 = vpop.f32.mrf.mxu3  ;;  %1196 = vmatpush.msra.mxu3 %v3551_v39  ;;  %1047 = vmatpush.msra.mxu0 %v3558_v50  ;;  %v3582_v50 = vld [vmem:[#allocation6] sm:$0xff]  ;;  %v3590_v47 = vld [vmem:[#allocation6 + $0x10] sm:$0xff] }
 0x163   :  { %v986_v28 = vadd.f32 %v983_v17, %v520_v21  ;;  %1103 = vmatpush.msra.mxu1 %v3560_v6  ;;  %1159 = vmatpush.msra.mxu2 %v3562_v0  ;;  %v3577_v17 = vld [vmem:[#allocation6 + $0x30] sm:$0xff]  ;;  %v3579_v21 = vld [vmem:[#allocation6 + $0x38] sm:$0xff]  ;;  %4607 = vst [vmem:[#allocation56_spill] sm:$0xff] %v3592_v49  ;;  %v411_v23 = vadd.f32 %v379_v56, %v303_v33 }
 0x164   :  { %1197 = vmatpush.msra.mxu3 %v3566_v55  ;;  %1048 = vmatpush.msra.mxu0 %v3569_v8 }
 0x165   :  { %v2618_v16 = vmul.f32 -1.442695, %v986_v28  ;;  %1104 = vmatpush.msra.mxu1 %v3571_v1  ;;  %1160 = vmatpush.msra.mxu2 %v3577_v17 }
 0x166   :  { %v2703_v39 = vpop.eup %2702  ;;  %1198 = vmatpush.msra.mxu3 %v3579_v21  ;;  %1049 = vmatpush.msra.mxu0 %v3582_v50 }
 0x167   :  { %v2705_v61 = vpop.eup %2704  ;;  %v3586_v18 = vadd.f32 1.0, %v2703_v39  ;;  %2706 = vpow2.f32 %v2618_v16  ;;  %v487_v39 = vmul.f32 %v3345_v37, %v3437_v40  ;;  %1105 = vmatpush.msra.mxu1 %v3584_v48  ;;  %1161 = vmatpush.msra.mxu2 %v3590_v47  ;;  %v4608_v16 = vmov 3  }
 0x168   :  { %v3594_v28 = vadd.f32 1.0, %v2705_v61  ;;  %1199 = vmatpush.msra.mxu3 %v3592_v49  ;;  %1252 = vmatpush.msrb.mxu0 %v3367_v52  ;;  %v945_v61 = vpop.f32.mrf.mxu2 }
 0x169   :  { %2708 = vrcp.f32 %v3586_v18  ;;  %2663 = vset.pattern.permute.xlu1 %v4608_v16  ;;  %1308 = vmatpush.msrb.mxu1 %v3369_v53  ;;  %v519_v40 = vadd.f32 %v487_v39, %v411_v23  ;;  %vm846_vm14 = vweird.f32 %v3586_v18 }
 0x16a   :  { %2710 = vrcp.f32 %v3594_v28  ;;  %446 = vperm.xlu1 %2663, %v85_v34   ;;  %1364 = vmatpush.msrb.mxu2 %v3371_v54  ;;  %vm902_vm15 = vweird.f32 %v3594_v28 }
 0x16b   :  { %1402 = vmatpush.msrb.mxu3 %v3377_v57  ;;  %1253 = vmatpush.msrb.mxu0 %v3381_v58  ;;  %v948_v49 = vadd.f32 %v945_v61, %v519_v40  ;;  %v852_v61 = vand.u32 2147483648, %v3586_v18 }
 0x16c   :  { %1309 = vmatpush.msrb.mxu1 %v3383_v44  ;;  %1365 = vmatpush.msrb.mxu2 %v3385_v59 }
 0x16d   :  { %v2707_v56 = vpop.eup %2706  ;;  %1403 = vmatpush.msrb.mxu3 %v3389_v60  ;;  %1254 = vmatpush.msrb.mxu0 %v3396_v4 }
 0x16e   :  { %v3610_v33 = vadd.f32 1.0, %v2707_v56  ;;  %1310 = vmatpush.msrb.mxu1 %v3398_v5  ;;  %1366 = vmatpush.msrb.mxu2 %v3400_v7  ;;  %v908_v56 = vand.u32 2147483648, %v3594_v28  ;;  %v850_v5 = vand.u32 2147483647, %v3586_v18 }
 0x16f   :  { %v2709_v37 = vpop.eup %2708  ;;  %1404 = vmatpush.msrb.mxu3 %v3407_v15  ;;  %1255 = vmatpush.msrb.mxu0 %v3413_v19 }
 0x170   :  { %v2711_v16 = vpop.eup %2710  ;;  %v842_v53 = vmul.f32 %v2709_v37, %v3586_v18  ;;  %2712 = vrcp.f32 %v3610_v33  ;;  %1311 = vmatpush.msrb.mxu1 %v3415_v22  ;;  %1367 = vmatpush.msrb.mxu2 %v3417_v27  ;;  %vm847_vm12 = vweird.f32 %v2709_v37  ;;  %v909_v18 = vor.u32 1.1754944e-38, %v908_v56  ;;  %v4611_v56 = vld [vmem:[#allocation46_spill] sm:$0xff] }
 0x171   :  { %v898_v23 = vmul.f32 %v2711_v16, %v3594_v28  ;;  %2714 = vtanh.f32 %v948_v49  ;;  %1405 = vmatpush.msrb.mxu3 %v3421_v12  ;;  %1256 = vmatpush.msrb.mxu0 %v3427_v30  ;;  %vm903_vm13 = vweird.f32 %v2711_v16  ;;  %vm848_vm0 = vmor %vm846_vm14, %vm847_vm12  ;;  %vm851_vm2 = vcmp.eq.f32.partialorder %v850_v5, 8.507059e+37 }
 0x172   :  { %v843_v34 = vsub.f32 1.0, %v842_v53  ;;  %1312 = vmatpush.msrb.mxu1 %v3429_v31  ;;  %1368 = vmatpush.msrb.mxu2 %v3431_v32  ;;  %vm904_vm1 = vmor %vm902_vm15, %vm903_vm13  ;;  %vm996_vm5 = vweird.f32 %v3610_v33 }
 0x173   :  { %v899_v39 = vsub.f32 1.0, %v898_v23  ;;  %v906_v23 = vand.u32 2147483647, %v3594_v28  ;;  %1406 = vmatpush.msrb.mxu3 %v3441_v43  ;;  %1257 = vmatpush.msrb.mxu0 %v3445_v45 }
 0x174   :  { %v844_v40 = vmul.f32 %v2709_v37, %v843_v34  ;;  %v853_v34 = vor.u32 1.1754944e-38, %v852_v61  ;;  %1313 = vmatpush.msrb.mxu1 %v3447_v25  ;;  %1369 = vmatpush.msrb.mxu2 %v3449_v11 }
 0x175   :  { %v900_v53 = vmul.f32 %v2711_v16, %v899_v39  ;;  %1407 = vmatpush.msrb.mxu3 %v3453_v51  ;;  %1258 = vmatpush.msrb.mxu0 %v3462_v10  ;;  %vm907_vm3 = vcmp.eq.f32.partialorder %v906_v23, 8.507059e+37  ;;  %v4612_v23 = vld [vmem:[#allocation47_spill] sm:$0xff] }
 0x176   :  { %v3635_v49 = vpop.eup %2712  ;;  %v845_v27 = vadd.f32 %v2709_v37, %v844_v40  ;;  %1314 = vmatpush.msrb.mxu1 %v3464_v14  ;;  %1370 = vmatpush.msrb.mxu2 %v3466_v63 }
 0x177   :  { %v901_v39 = vadd.f32 %v2711_v16, %v900_v53  ;;  %v992_v31 = vmul.f32 %v3635_v49, %v3610_v33  ;;  %v2715_v28 = vpop.eup %2714  ;;  %1408 = vmatpush.msrb.mxu3 %v3472_v42  ;;  %1259 = vmatpush.msrb.mxu0 %v3476_v36  ;;  %vm997_vm4 = vweird.f32 %v3635_v49 }
 0x178   :  { %v849_v40 = vsel %vm848_vm0, %v2709_v37, %v845_v27  ;;  %1315 = vmatpush.msrb.mxu1 %v3478_v38  ;;  %1371 = vmatpush.msrb.mxu2 %v3480_v29  ;;  %vm998_vm6 = vmor %vm996_vm5, %vm997_vm4 }
 0x179   :  { %v854_v45 = vsel %vm851_vm2, %v853_v34, %v849_v40  ;;  %v905_v61 = vsel %vm904_vm1, %v2711_v16, %v901_v39  ;;  %v993_v53 = vsub.f32 1.0, %v992_v31  ;;  %1409 = vmatpush.msrb.mxu3 %v3484_v9  ;;  %1260 = vmatpush.msrb.mxu0 %v3490_v41  ;;  %v4613_v39 = vld [vmem:[#allocation48_spill] sm:$0xff]  ;;  %v4616_v40 = vld [vmem:[#allocation51_spill] sm:$0xff] }
 0x17a   :  { %v910_v25 = vsel %vm907_vm3, %v909_v18, %v905_v61  ;;  %v1007_v11 = vmul.f32 %v2715_v28, %v854_v45  ;;  %1316 = vmatpush.msrb.mxu1 %v3492_v46  ;;  %1372 = vmatpush.msrb.mxu2 %v3494_v26  ;;  %v1000_v45 = vand.u32 2147483647, %v3610_v33  ;;  %v4614_v18 = vld [vmem:[#allocation49_spill] sm:$0xff] }
 0x17b   :  { %v1006_v37 = vmul.f32 %v910_v25, %v3352_v35  ;;  %v994_v5 = vmul.f32 %v3635_v49, %v993_v53  ;;  %1410 = vmatpush.msrb.mxu3 %v3498_v24  ;;  %1261 = vmatpush.msrb.mxu0 %v3502_v62  ;;  %v1002_v35 = vand.u32 2147483648, %v3610_v33  ;;  %v4609_v25 = vld [vmem:[#allocation44_spill] sm:$0xff]  ;;  %v4615_v33 = vld [vmem:[#allocation50_spill] sm:$0xff] }
 0x17c   :  { %1317 = vmatpush.msrb.mxu1 %v3504_v20  ;;  %1373 = vmatpush.msrb.mxu2 %v3506_v13  ;;  %vm1001_vm7 = vcmp.eq.f32.partialorder %v1000_v45, 8.507059e+37  ;;  %v4617_v53 = vld [vmem:[#allocation52_spill] sm:$0xff] }
 0x17d   :  { %v3659_v27 = vadd.f32 %v1007_v11, %v1006_v37  ;;  %v995_v31 = vadd.f32 %v3635_v49, %v994_v5  ;;  %1411 = vmatpush.msrb.mxu3 %v3510_v3  ;;  %1262 = vmatpush.msrb.mxu0 %v3518_v2  ;;  %v4610_v11 = vld [vmem:[#allocation45_spill] sm:$0xff]  ;;  %v1003_v34 = vor.u32 1.1754944e-38, %v1002_v35  ;;  %v4620_v5 = vld [vmem:[#allocation54_spill] sm:$0xff]  ;;  %v4622_v35 = vmov 1   ;;  %v4623_v45 = vld [vmem:[#allocation56_spill] sm:$0xff] }
 0x17e   :  { %1318 = vmatpush.msrb.mxu1 %v4609_v25  ;;  %1374 = vmatpush.msrb.mxu2 %v4610_v11  ;;  %v4618_v37 = vld [vmem:[#allocation53_spill] sm:$0xff] }
 0x17f   :  { %2716 = vtanh.f32 %v3659_v27  ;;  %v999_v16 = vsel %vm998_vm6, %v3635_v49, %v995_v31  ;;  %1412 = vmatpush.msrb.mxu3 %v4611_v56  ;;  %1263 = vmatpush.msrb.mxu0 %v4612_v23  ;;  %v4621_v31 = vld [vmem:[#allocation55_spill] sm:$0xff] }
 0x180   :  { %1319 = vmatpush.msrb.mxu1 %v4613_v39  ;;  %1375 = vmatpush.msrb.mxu2 %v4614_v18  ;;  %v1004_v61 = vsel %vm1001_vm7, %v1003_v34, %v999_v16  ;;  %v4624_v16 = vmov 2   ;;  %v4625_v34 = vmov 0  }
 0x181   :  { %1413 = vmatpush.msrb.mxu3 %v4615_v33  ;;  %1264 = vmatpush.msrb.mxu0 %v4616_v40 }
 0x182   :  { %1320 = vmatpush.msrb.mxu1 %v4617_v53  ;;  %1376 = vmatpush.msrb.mxu2 %v4618_v37 }
 0x183   :  { %1414 = vmatpush.msrb.mxu3 %v4620_v5  ;;  %1265 = vmatpush.msrb.mxu0 %v4621_v31 }
 0x184   :  { %1321 = vmatpush.msrb.mxu1 %v3560_v6  ;;  %1377 = vmatpush.msrb.mxu2 %v3562_v0 }
 0x185   :  { %v2717_v28 = vpop.eup %2716  ;;  %1415 = vmatpush.msrb.mxu3 %v3566_v55  ;;  %1266 = vmatpush.msrb.mxu0 %v3569_v8 }
 0x186   :  { %v3686_v49 = vmul.f32 %v2717_v28, %v1004_v61  ;;  %1322 = vmatpush.msrb.mxu1 %v3571_v1  ;;  %1378 = vmatpush.msrb.mxu2 %v3577_v17  ;;  %v4626_v28 = vld [vmem:[#allocation37_spill] sm:$0xff]  ;;  %v4627_v61 = vld [vmem:[#allocation38_spill] sm:$0xff] }
 0x187   :  { %1416 = vmatpush.msrb.mxu3 %v3579_v21  ;;  %2665 = vset.pattern.permute.xlu0 %v4622_v35 }
 0x188   :  { %4619 = vst [vmem:[#allocation44_spill] sm:$0xff] %v3686_v49  ;;  %1050 = vmatmul.f32.vlgmr.msra.gmra.mxu0 %v3686_v49  ;;  %1106 = vmatmul.f32.vlgmr.msra.gmra.mxu1 %v3686_v49 }
 0x189   :  { %1162 = vmatmul.f32.vlgmr.msra.gmra.mxu2 %v3686_v49  ;;  %1200 = vmatmul.f32.vlgmr.msra.gmra.mxu3 %v3686_v49  ;;  %v3949_v49 = vld [vmem:[#allocation6 + $0x130] sm:$0xff] }
 0x18a   :  { %1267 = vmatpush.msrb.mxu0 %v3582_v50  ;;  %1323 = vmatpush.msrb.mxu1 %v3584_v48 }
 0x18b   :  { %1379 = vmatpush.msrb.mxu2 %v3590_v47  ;;  %1417 = vmatpush.msrb.mxu3 %v4623_v45 }
 0x18c   :  { %2666 = vset.pattern.permute.xlu1 %v4624_v16  ;;  %2664 = vset.pattern.permute.xlu2 %v4625_v34 }
 0x18d   :  { %1470 = vmatpush.msra.mxu0 %v3367_v52  ;;  %1526 = vmatpush.msra.mxu1 %v4626_v28  ;;  %v4628_v52 = vld [vmem:[#allocation39_spill] sm:$0xff] }
 0x18e   :  { %1582 = vmatpush.msra.mxu2 %v3371_v54  ;;  %1620 = vmatpush.msra.mxu3 %v3377_v57  ;;  %v4629_v54 = vld [vmem:[#allocation40_spill] sm:$0xff]  ;;  %v4630_v57 = vld [vmem:[#allocation41_spill] sm:$0xff] }
 0x18f   :  { %1471 = vmatpush.msra.mxu0 %v3381_v58  ;;  %1527 = vmatpush.msra.mxu1 %v3383_v44  ;;  %v4631_v58 = vld [vmem:[#allocation42_spill] sm:$0xff]  ;;  %v4632_v44 = vld [vmem:[#allocation43_spill] sm:$0xff] }
 0x190   :  { %1583 = vmatpush.msra.mxu2 %v3385_v59  ;;  %1621 = vmatpush.msra.mxu3 %v3389_v60  ;;  %v339_v60 = vpop.permute.xlu2 %338 }
 0x191   :  { %1472 = vmatpush.msra.mxu0 %v3396_v4  ;;  %1528 = vmatpush.msra.mxu1 %v4627_v61  ;;  %v4639_v4 = vld [vmem:[#allocation22_spill] sm:$0xff]  ;;  %v4650_v61 = vld [vmem:[#allocation32_spill] sm:$0xff] }
 0x192   :  { %1584 = vmatpush.msra.mxu2 %v3400_v7  ;;  %1622 = vmatpush.msra.mxu3 %v3407_v15  ;;  %v4640_v15 = vld [vmem:[#allocation23_spill] sm:$0xff] }
 0x193   :  { %1473 = vmatpush.msra.mxu0 %v3413_v19  ;;  %1529 = vmatpush.msra.mxu1 %v3415_v22  ;;  %v381_v19 = vmul.f32 %v4640_v15, %v339_v60  ;;  %v4641_v22 = vld [vmem:[#allocation24_spill] sm:$0xff] }
 0x194   :  { %1585 = vmatpush.msra.mxu2 %v4628_v52  ;;  %1623 = vmatpush.msra.mxu3 %v3421_v12  ;;  %v382_v12 = vmul.f32 %v4641_v22, %v339_v60 }
 0x195   :  { %1474 = vmatpush.msra.mxu0 %v3427_v30  ;;  %1530 = vmatpush.msra.mxu1 %v4629_v54 }
 0x196   :  { %1586 = vmatpush.msra.mxu2 %v3431_v32  ;;  %1624 = vmatpush.msra.mxu3 %v3441_v43 }
 0x197   :  { %1475 = vmatpush.msra.mxu0 %v4630_v57  ;;  %1531 = vmatpush.msra.mxu1 %v4631_v58 }
 0x198   :  { %1587 = vmatpush.msra.mxu2 %v4632_v44  ;;  %1625 = vmatpush.msra.mxu3 %v3453_v51  ;;  %v4642_v51 = vld [vmem:[#allocation26_spill] sm:$0xff] }
 0x199   :  { %1476 = vmatpush.msra.mxu0 %v3462_v10  ;;  %1532 = vmatpush.msra.mxu1 %v3464_v14  ;;  %v4643_v14 = vld [vmem:[#allocation25_spill] sm:$0xff]  ;;  %v4651_v44 = vld [vmem:[#allocation34_spill] sm:$0xff] }
 0x19a   :  { %1588 = vmatpush.msra.mxu2 %v3466_v63  ;;  %1626 = vmatpush.msra.mxu3 %v3472_v42  ;;  %v107_v63 = vpop.permute.xlu0 %106 }
 0x19b   :  { %1477 = vmatpush.msra.mxu0 %v3476_v36  ;;  %1533 = vmatpush.msra.mxu1 %v3478_v38  ;;  %v4636_v38 = vld [vmem:[#allocation21_spill] sm:$0xff]  ;;  %v159_v7 = vmul.f32 %v4639_v4, %v107_v63 }
 0x19c   :  { %1589 = vmatpush.msra.mxu2 %v3480_v29  ;;  %1627 = vmatpush.msra.mxu3 %v3484_v9  ;;  %v4635_v29 = vld [vmem:[#allocation19_spill] sm:$0xff] }
 0x19d   :  { %1478 = vmatpush.msra.mxu0 %v3490_v41  ;;  %1534 = vmatpush.msra.mxu1 %v3492_v46  ;;  %v4637_v46 = vld [vmem:[#allocation18_spill] sm:$0xff]  ;;  %v200_v9 = vadd.f32 %v4643_v14, %v159_v7  ;;  %v4652_v7 = vld [vmem:[#allocation35_spill] sm:$0xff] }
 0x19e   :  { %1590 = vmatpush.msra.mxu2 %v3494_v26  ;;  %1628 = vmatpush.msra.mxu3 %v3498_v24  ;;  %v4634_v24 = vld [vmem:[#allocation17_spill] sm:$0xff] }
 0x19f   :  { %1479 = vmatpush.msra.mxu0 %v3502_v62  ;;  %1535 = vmatpush.msra.mxu1 %v3504_v20  ;;  %v157_v26 = vmul.f32 %v4634_v24, %v107_v63  ;;  %v4644_v62 = vld [vmem:[#allocation27_spill] sm:$0xff] }
 0x1a0   :  { %1591 = vmatpush.msra.mxu2 %v3506_v13  ;;  %1629 = vmatpush.msra.mxu3 %v3510_v3  ;;  %v4633_v13 = vld [vmem:[#allocation16_spill] sm:$0xff] }
 0x1a1   :  { %1480 = vmatpush.msra.mxu0 %v3518_v2  ;;  %1536 = vmatpush.msra.mxu1 %v4609_v25  ;;  %v231_v2 = vpop.permute.xlu1 %230  ;;  %v156_v20 = vmul.f32 %v4633_v13, %v107_v63 }
 0x1a2   :  { %1592 = vmatpush.msra.mxu2 %v4610_v11  ;;  %1630 = vmatpush.msra.mxu3 %v4611_v56  ;;  %v273_v36 = vmul.f32 %v4635_v29, %v231_v2  ;;  %v274_v42 = vmul.f32 %v4636_v38, %v231_v2  ;;  %v276_v10 = vmul.f32 %v4642_v51, %v231_v2 }
 0x1a3   :  { %1481 = vmatpush.msra.mxu0 %v4612_v23  ;;  %1537 = vmatpush.msra.mxu1 %v4613_v39  ;;  %v4647_v39 = vld [vmem:[#allocation30_spill] sm:$0xff] }
 0x1a4   :  { %1593 = vmatpush.msra.mxu2 %v4614_v18  ;;  %1631 = vmatpush.msra.mxu3 %v4615_v33  ;;  %v158_v18 = vmul.f32 %v4647_v39, %v107_v63  ;;  %v383_v63 = vmul.f32 %v4651_v44, %v339_v60 }
 0x1a5   :  { %1482 = vmatpush.msra.mxu0 %v4616_v40  ;;  %1538 = vmatpush.msra.mxu1 %v4617_v53  ;;  %v4648_v40 = vld [vmem:[#allocation31_spill] sm:$0xff] }
 0x1a6   :  { %1594 = vmatpush.msra.mxu2 %v4618_v37  ;;  %1632 = vmatpush.msra.mxu3 %v4620_v5  ;;  %v199_v52 = vadd.f32 %v4650_v61, %v158_v18 }
 0x1a7   :  { %1483 = vmatpush.msra.mxu0 %v4621_v31  ;;  %1539 = vmatpush.msra.mxu1 %v3560_v6  ;;  %v86_v31 = vld [vmem:[%s4408_s0 + $0x18] sm:$0xff] }
 0x1a8   :  { %1595 = vmatpush.msra.mxu2 %v3562_v0  ;;  %1633 = vmatpush.msra.mxu3 %v3566_v55  ;;  %v4646_v0 = vld [vmem:[#allocation29_spill] sm:$0xff] }
 0x1a9   :  { %1484 = vmatpush.msra.mxu0 %v3569_v8  ;;  %1540 = vmatpush.msra.mxu1 %v3571_v1  ;;  %v197_v8 = vadd.f32 %v4637_v46, %v156_v20  ;;  %v4638_v1 = vld [vmem:[#allocation20_spill] sm:$0xff]  ;;  %v384_v55 = vmul.f32 %v4646_v0, %v339_v60 }
 0x1aa   :  { %1596 = vmatpush.msra.mxu2 %v3577_v17  ;;  %1634 = vmatpush.msra.mxu3 %v3579_v21  ;;  %v198_v59 = vadd.f32 %v4638_v1, %v157_v26  ;;  %v308_v17 = vadd.f32 %v276_v10, %v200_v9 }
 0x1ab   :  { %1485 = vmatpush.msra.mxu0 %v3582_v50  ;;  %1541 = vmatpush.msra.mxu1 %v3584_v48  ;;  %v305_v30 = vadd.f32 %v273_v36, %v197_v8  ;;  %v4645_v50 = vld [vmem:[#allocation28_spill] sm:$0xff] }
 0x1ac   :  { %1597 = vmatpush.msra.mxu2 %v3590_v47  ;;  %1635 = vmatpush.msra.mxu3 %v4623_v45  ;;  %v306_v32 = vadd.f32 %v274_v42, %v198_v59  ;;  %v416_v33 = vadd.f32 %v384_v55, %v308_v17  ;;  %v4649_v45 = vld [vmem:[#allocation33_spill] sm:$0xff] }
 0x1ad   :  { %v413_v41 = vadd.f32 %v381_v19, %v305_v30  ;;  %234 = vperm.xlu0 %2665, %v86_v31   ;;  %342 = vperm.xlu1 %2666, %v86_v31   ;;  %v275_v28 = vmul.f32 %v4649_v45, %v231_v2 }
 0x1ae   :  { %v414_v48 = vadd.f32 %v382_v12, %v306_v32  ;;  %111 = vperm.xlu2 %2664, %v86_v31   ;;  %v4653_v12 = vmov 3  }
 0x1af   :  { %v307_v20 = vadd.f32 %v275_v28, %v199_v52 }
 0x1b1   :  { %v415_v2 = vadd.f32 %v383_v63, %v307_v20 }
 0x1b5   :  { %2668 = vset.pattern.permute.xlu1 %v4625_v34  ;;  %2670 = vset.pattern.permute.xlu0 %v4624_v16 }
 0x1b6   :  { %2667 = vset.pattern.permute.xlu2 %v4653_v12 }
 0x1b7   :  { %450 = vperm.xlu2 %2667, %v86_v31  }
 0x1bf   :  { %2669 = vset.pattern.permute.xlu2 %v4622_v35 }
 0x1dc   :  { %v447_v43 = vpop.permute.xlu1 %446 }
 0x1dd   :  { %v489_v3 = vmul.f32 %v4644_v62, %v447_v43  ;;  %v490_v6 = vmul.f32 %v4645_v50, %v447_v43  ;;  %v492_v53 = vmul.f32 %v4648_v40, %v447_v43  ;;  %v491_v19 = vmul.f32 %v4652_v7, %v447_v43 }
 0x1df   :  { %v521_v21 = vadd.f32 %v489_v3, %v413_v41  ;;  %v522_v47 = vadd.f32 %v490_v6, %v414_v48  ;;  %v524_v54 = vadd.f32 %v492_v53, %v416_v33  ;;  %v523_v32 = vadd.f32 %v491_v19, %v415_v2 }
 0x205   :  { %v1051_v25 = vpop.f32.mrf.mxu0  ;;  %v1107_v11 = vpop.f32.mrf.mxu1 }
 0x206   :  { %v1054_v56 = vadd.f32 %v1051_v25, %v521_v21  ;;  %v1110_v23 = vadd.f32 %v1107_v11, %v522_v47 }
 0x208   :  { %v2619_v37 = vmul.f32 -1.442695, %v1054_v56  ;;  %v2620_v5 = vmul.f32 -1.442695, %v1110_v23 }
 0x20a   :  { %2718 = vpow2.f32 %v2619_v37 }
 0x20b   :  { %2720 = vpow2.f32 %v2620_v5 }
 0x20c   :  { %v1201_v57 = vpop.f32.mrf.mxu3  ;;  %v1163_v60 = vpop.f32.mrf.mxu2 }
 0x20d   :  { %v1204_v58 = vadd.f32 %v1201_v57, %v524_v54  ;;  %v1166_v41 = vadd.f32 %v1163_v60, %v523_v32 }
 0x20f   :  { %v2621_v26 = vmul.f32 -1.442695, %v1204_v58 }
 0x210   :  { %v2719_v36 = vpop.eup %2718 }
 0x211   :  { %v2721_v42 = vpop.eup %2720  ;;  %v1058_v8 = vadd.f32 1.0, %v2719_v36  ;;  %2722 = vpow2.f32 %v2621_v26 }
 0x212   :  { %v1114_v59 = vadd.f32 1.0, %v2721_v42 }
 0x213   :  { %2724 = vrcp.f32 %v1058_v8  ;;  %v1070_v21 = vand.u32 2147483648, %v1058_v8  ;;  %v1068_v25 = vand.u32 2147483647, %v1058_v8  ;;  %vm1064_vm10 = vweird.f32 %v1058_v8 }
 0x214   :  { %2726 = vrcp.f32 %v1114_v59  ;;  %v1126_v43 = vand.u32 2147483648, %v1114_v59  ;;  %v1124_v56 = vand.u32 2147483647, %v1114_v59  ;;  %vm1120_vm11 = vweird.f32 %v1114_v59 }
 0x215   :  { %v1071_v33 = vor.u32 1.1754944e-38, %v1070_v21  ;;  %vm1069_vm14 = vcmp.eq.f32.partialorder %v1068_v25, 8.507059e+37 }
 0x216   :  { %v1127_v5 = vor.u32 1.1754944e-38, %v1126_v43  ;;  %vm1125_vm15 = vcmp.eq.f32.partialorder %v1124_v56, 8.507059e+37 }
 0x217   :  { %v2723_v30 = vpop.eup %2722 }
 0x218   :  { %v1208_v10 = vadd.f32 1.0, %v2723_v30 }
 0x219   :  { %v2725_v9 = vpop.eup %2724 }
 0x21a   :  { %v2727_v3 = vpop.eup %2726  ;;  %v1060_v48 = vmul.f32 %v2725_v9, %v1058_v8  ;;  %2728 = vrcp.f32 %v1208_v10  ;;  %vm1065_vm8 = vweird.f32 %v2725_v9  ;;  %v1220_v8 = vand.u32 2147483648, %v1208_v10 }
 0x21b   :  { %v1116_v6 = vmul.f32 %v2727_v3, %v1114_v59  ;;  %2730 = vtanh.f32 %v1166_v41  ;;  %vm1121_vm9 = vweird.f32 %v2727_v3  ;;  %vm1066_vm12 = vmor %vm1064_vm10, %vm1065_vm8  ;;  %vm1214_vm1 = vweird.f32 %v1208_v10 }
 0x21c   :  { %v1061_v55 = vsub.f32 1.0, %v1060_v48  ;;  %vm1122_vm13 = vmor %vm1120_vm11, %vm1121_vm9  ;;  %v1218_v59 = vand.u32 2147483647, %v1208_v10  ;;  %v1221_v19 = vor.u32 1.1754944e-38, %v1220_v8 }
 0x21d   :  { %v1117_v17 = vsub.f32 1.0, %v1116_v6 }
 0x21e   :  { %v1062_v47 = vmul.f32 %v2725_v9, %v1061_v55  ;;  %vm1219_vm3 = vcmp.eq.f32.partialorder %v1218_v59, 8.507059e+37 }
 0x21f   :  { %v1118_v11 = vmul.f32 %v2727_v3, %v1117_v17  ;;  %v235_v41 = vpop.permute.xlu0 %234  ;;  %v343_v17 = vpop.permute.xlu1 %342 }
 0x220   :  { %v2729_v23 = vpop.eup %2728  ;;  %v1063_v18 = vadd.f32 %v2725_v9, %v1062_v47  ;;  %v277_v6 = vmul.f32 %v4635_v29, %v235_v41  ;;  %v278_v55 = vmul.f32 %v4636_v38, %v235_v41  ;;  %v385_v43 = vmul.f32 %v4640_v15, %v343_v17 }
 0x221   :  { %v1119_v53 = vadd.f32 %v2727_v3, %v1118_v11  ;;  %v1210_v37 = vmul.f32 %v2729_v23, %v1208_v10  ;;  %v2731_v28 = vpop.eup %2730  ;;  %vm1215_vm0 = vweird.f32 %v2729_v23  ;;  %v386_v47 = vmul.f32 %v4641_v22, %v343_v17 }
 0x222   :  { %v1067_v31 = vsel %vm1066_vm12, %v2725_v9, %v1063_v18  ;;  %vm1216_vm2 = vmor %vm1214_vm1, %vm1215_vm0  ;;  %v280_v18 = vmul.f32 %v4642_v51, %v235_v41 }
 0x223   :  { %v1072_v52 = vsel %vm1069_vm14, %v1071_v33, %v1067_v31  ;;  %v1123_v54 = vsel %vm1122_vm13, %v2727_v3, %v1119_v53  ;;  %v1211_v57 = vsub.f32 1.0, %v1210_v37  ;;  %v388_v31 = vmul.f32 %v4646_v0, %v343_v17 }
 0x224   :  { %v1128_v58 = vsel %vm1125_vm15, %v1127_v5, %v1123_v54  ;;  %v1225_v63 = vmul.f32 %v2731_v28, %v1072_v52 }
 0x225   :  { %v1224_v20 = vmul.f32 %v1128_v58, %v3659_v27  ;;  %v1212_v26 = vmul.f32 %v2729_v23, %v1211_v57  ;;  %v112_v27 = vpop.permute.xlu2 %111 }
 0x226   :  { %v160_v9 = vmul.f32 %v4633_v13, %v112_v27  ;;  %v161_v10 = vmul.f32 %v4634_v24, %v112_v27  ;;  %v163_v21 = vmul.f32 %v4639_v4, %v112_v27 }
 0x227   :  { %v3800_v36 = vadd.f32 %v1225_v63, %v1224_v20  ;;  %v1213_v42 = vadd.f32 %v2729_v23, %v1212_v26  ;;  %v162_v26 = vmul.f32 %v4647_v39, %v112_v27 }
 0x228   :  { %v201_v3 = vadd.f32 %v4637_v46, %v160_v9  ;;  %v202_v48 = vadd.f32 %v4638_v1, %v161_v10 }
 0x229   :  { %2732 = vtanh.f32 %v3800_v36  ;;  %v1217_v2 = vsel %vm1216_vm2, %v2729_v23, %v1213_v42  ;;  %v204_v23 = vadd.f32 %v4643_v14, %v163_v21 }
 0x22a   :  { %v1222_v30 = vsel %vm1219_vm3, %v1221_v19, %v1217_v2  ;;  %v309_v25 = vadd.f32 %v277_v6, %v201_v3  ;;  %v310_v11 = vadd.f32 %v278_v55, %v202_v48  ;;  %v87_v19 = vld [vmem:[%s4408_s0 + $0x20] sm:$0xff]  ;;  %v387_v3 = vmul.f32 %v4651_v44, %v343_v17 }
 0x22b   :  { %v312_v28 = vadd.f32 %v280_v18, %v204_v23  ;;  %116 = vperm.xlu1 %2668, %v87_v19   ;;  %346 = vperm.xlu0 %2670, %v87_v19  }
 0x22c   :  { %v417_v33 = vadd.f32 %v385_v43, %v309_v25  ;;  %v418_v37 = vadd.f32 %v386_v47, %v310_v11  ;;  %238 = vperm.xlu2 %2669, %v87_v19  }
 0x22d   :  { %v451_v56 = vpop.permute.xlu2 %450  ;;  %v420_v42 = vadd.f32 %v388_v31, %v312_v28 }
 0x22e   :  { %v493_v53 = vmul.f32 %v4644_v62, %v451_v56  ;;  %v494_v5 = vmul.f32 %v4645_v50, %v451_v56  ;;  %v496_v8 = vmul.f32 %v4648_v40, %v451_v56  ;;  %v495_v25 = vmul.f32 %v4652_v7, %v451_v56 }
 0x22f   :  { %v2733_v60 = vpop.eup %2732 }
 0x230   :  { %v3803_v32 = vmul.f32 %v2733_v60, %v1222_v30  ;;  %v525_v52 = vadd.f32 %v493_v53, %v417_v33  ;;  %v526_v54 = vadd.f32 %v494_v5, %v418_v37  ;;  %v203_v60 = vadd.f32 %v4650_v61, %v162_v26 }
 0x231   :  { %v279_v30 = vmul.f32 %v4649_v45, %v235_v41  ;;  %v528_v9 = vadd.f32 %v496_v8, %v420_v42 }
 0x232   :  { %4654 = vst [vmem:[#allocation45_spill] sm:$0xff] %v3803_v32  ;;  %1268 = vmatmul.f32.vlgmr.msrb.gmra.mxu0 %v3803_v32  ;;  %1324 = vmatmul.f32.vlgmr.msrb.gmra.mxu1 %v3803_v32 }
 0x233   :  { %1380 = vmatmul.f32.vlgmr.msrb.gmra.mxu2 %v3803_v32  ;;  %1418 = vmatmul.f32.vlgmr.msrb.gmra.mxu3 %v3803_v32  ;;  %v311_v48 = vadd.f32 %v279_v30, %v203_v60  ;;  %v3947_v32 = vld [vmem:[#allocation6 + $0x128] sm:$0xff] }
 0x234   :  { %2671 = vset.pattern.permute.xlu1 %v4653_v12  ;;  %2675 = vset.pattern.permute.xlu0 %v4653_v12 }
 0x235   :  { %v419_v41 = vadd.f32 %v387_v3, %v311_v48  ;;  %454 = vperm.xlu1 %2671, %v87_v19   ;;  %2672 = vset.pattern.permute.xlu2 %v4625_v34  ;;  %v4003_v34 = vld [vmem:[#allocation6 + $0xa0] sm:$0xff] }
 0x236   :  { %4656 = vst [vmem:[#allocation47_spill] sm:$0xff] %v4003_v34 }
 0x237   :  { %v527_v23 = vadd.f32 %v495_v25, %v419_v41 }
 0x23d   :  { %2673 = vset.pattern.permute.xlu1 %v4622_v35 }
 0x2af   :  { %v1269_v57 = vpop.f32.mrf.mxu0  ;;  %v1325_v58 = vpop.f32.mrf.mxu1 }
 0x2b0   :  { %v1272_v63 = vadd.f32 %v1269_v57, %v525_v52  ;;  %v1328_v20 = vadd.f32 %v1325_v58, %v526_v54 }
 0x2b2   :  { %v2622_v59 = vmul.f32 -1.442695, %v1272_v63  ;;  %v2623_v2 = vmul.f32 -1.442695, %v1328_v20 }
 0x2b4   :  { %2734 = vpow2.f32 %v2622_v59 }
 0x2b5   :  { %2736 = vpow2.f32 %v2623_v2 }
 0x2b6   :  { %v1419_v27 = vpop.f32.mrf.mxu3  ;;  %v1381_v17 = vpop.f32.mrf.mxu2 }
 0x2b7   :  { %v1422_v10 = vadd.f32 %v1419_v27, %v528_v9  ;;  %v1384_v53 = vadd.f32 %v1381_v17, %v527_v23 }
 0x2b9   :  { %v2624_v6 = vmul.f32 -1.442695, %v1422_v10 }
 0x2ba   :  { %v2735_v55 = vpop.eup %2734 }
 0x2bb   :  { %v2737_v21 = vpop.eup %2736  ;;  %v1276_v43 = vadd.f32 1.0, %v2735_v55  ;;  %2738 = vpow2.f32 %v2624_v6 }
 0x2bc   :  { %v1332_v47 = vadd.f32 1.0, %v2737_v21 }
 0x2bd   :  { %2740 = vrcp.f32 %v1276_v43  ;;  %v1288_v54 = vand.u32 2147483648, %v1276_v43  ;;  %v1286_v58 = vand.u32 2147483647, %v1276_v43  ;;  %vm1282_vm6 = vweird.f32 %v1276_v43 }
 0x2be   :  { %2742 = vrcp.f32 %v1332_v47  ;;  %v1344_v56 = vand.u32 2147483648, %v1332_v47  ;;  %v1342_v20 = vand.u32 2147483647, %v1332_v47  ;;  %vm1338_vm7 = vweird.f32 %v1332_v47 }
 0x2bf   :  { %v1289_v8 = vor.u32 1.1754944e-38, %v1288_v54  ;;  %vm1287_vm10 = vcmp.eq.f32.partialorder %v1286_v58, 8.507059e+37  ;;  %v3866_v54 = vld [vmem:[#allocation6 + $0x1c0] sm:$0xff]  ;;  %v3874_v58 = vld [vmem:[#allocation6 + $0x1d8] sm:$0xff] }
 0x2c0   :  { %v1345_v19 = vor.u32 1.1754944e-38, %v1344_v56  ;;  %vm1343_vm11 = vcmp.eq.f32.partialorder %v1342_v20, 8.507059e+37  ;;  %v3868_v56 = vld [vmem:[#allocation6 + $0x1c8] sm:$0xff] }
 0x2c1   :  { %v2739_v11 = vpop.eup %2738 }
 0x2c2   :  { %v1426_v18 = vadd.f32 1.0, %v2739_v11 }
 0x2c3   :  { %v2741_v33 = vpop.eup %2740 }
 0x2c4   :  { %v2743_v37 = vpop.eup %2742  ;;  %v1278_v5 = vmul.f32 %v2741_v33, %v1276_v43  ;;  %2744 = vrcp.f32 %v1426_v18  ;;  %vm1283_vm4 = vweird.f32 %v2741_v33  ;;  %vm1432_vm13 = vweird.f32 %v1426_v18 }
 0x2c5   :  { %v1334_v31 = vmul.f32 %v2743_v37, %v1332_v47  ;;  %2746 = vtanh.f32 %v1384_v53  ;;  %vm1339_vm5 = vweird.f32 %v2743_v37  ;;  %vm1284_vm8 = vmor %vm1282_vm6, %vm1283_vm4  ;;  %v1438_v47 = vand.u32 2147483648, %v1426_v18  ;;  %v3850_v53 = vld [vmem:[#allocation6 + $0x1e0] sm:$0xff] }
 0x2c6   :  { %v1279_v28 = vsub.f32 1.0, %v1278_v5  ;;  %vm1340_vm9 = vmor %vm1338_vm7, %vm1339_vm5  ;;  %v1436_v41 = vand.u32 2147483647, %v1426_v18  ;;  %v3854_v5 = vld [vmem:[#allocation6 + $0x1f0] sm:$0xff]  ;;  %1688 = vmatpush.msrb.mxu0 %v3850_v53 }
 0x2c7   :  { %v1335_v52 = vsub.f32 1.0, %v1334_v31  ;;  %v1439_v17 = vor.u32 1.1754944e-38, %v1438_v47  ;;  %1800 = vmatpush.msrb.mxu2 %v3854_v5  ;;  %v3918_v47 = vld [vmem:[#allocation6 + $0x170] sm:$0xff] }
 0x2c8   :  { %v1280_v57 = vmul.f32 %v2741_v33, %v1279_v28  ;;  %vm1437_vm15 = vcmp.eq.f32.partialorder %v1436_v41, 8.507059e+37  ;;  %v3858_v28 = vpop.permute.xlu2 %238  ;;  %1689 = vmatpush.msrb.mxu0 %v3866_v54 }
 0x2c9   :  { %v1336_v63 = vmul.f32 %v2743_v37, %v1335_v52  ;;  %v3862_v52 = vld [vmem:[#allocation6 + $0x1f8] sm:$0xff]  ;;  %v281_v20 = vmul.f32 %v4635_v29, %v3858_v28 }
 0x2ca   :  { %v2745_v26 = vpop.eup %2744  ;;  %v1281_v42 = vadd.f32 %v2741_v33, %v1280_v57  ;;  %1838 = vmatpush.msrb.mxu3 %v3862_v52  ;;  %v3870_v57 = vld [vmem:[#allocation6 + $0x1d0] sm:$0xff] }
 0x2cb   :  { %v1337_v59 = vadd.f32 %v2743_v37, %v1336_v63  ;;  %v1428_v2 = vmul.f32 %v2745_v26, %v1426_v18  ;;  %v2747_v30 = vpop.eup %2746  ;;  %vm1433_vm12 = vweird.f32 %v2745_v26  ;;  %1801 = vmatpush.msrb.mxu2 %v3870_v57 }
 0x2cc   :  { %v1285_v60 = vsel %vm1284_vm8, %v2741_v33, %v1281_v42  ;;  %vm1434_vm14 = vmor %vm1432_vm13, %vm1433_vm12  ;;  %1839 = vmatpush.msrb.mxu3 %v3874_v58  ;;  %v3883_v42 = vld [vmem:[#allocation6 + $0x1a8] sm:$0xff] }
 0x2cd   :  { %v1290_v9 = vsel %vm1287_vm10, %v1289_v8, %v1285_v60  ;;  %v1341_v27 = vsel %vm1340_vm9, %v2743_v37, %v1337_v59  ;;  %v1429_v10 = vsub.f32 1.0, %v1428_v2  ;;  %v3852_v37 = vld [vmem:[#allocation6 + $0x1e8] sm:$0xff]  ;;  %v3885_v8 = vld [vmem:[#allocation6 + $0x1b0] sm:$0xff]  ;;  %v282_v2 = vmul.f32 %v4636_v38, %v3858_v28  ;;  %v3894_v60 = vld [vmem:[#allocation6 + $0x1b8] sm:$0xff] }
 0x2ce   :  { %v1346_v3 = vsel %vm1343_vm11, %v1345_v19, %v1341_v27  ;;  %v1443_v48 = vmul.f32 %v2747_v30, %v1290_v9  ;;  %1744 = vmatpush.msrb.mxu1 %v3852_v37  ;;  %v3890_v19 = vpop.permute.xlu0 %346  ;;  %1802 = vmatpush.msrb.mxu2 %v3885_v8  ;;  %v3898_v30 = vld [vmem:[#allocation6 + $0x180] sm:$0xff]  ;;  %v3900_v9 = vld [vmem:[#allocation6 + $0x188] sm:$0xff]  ;;  %v3902_v27 = vld [vmem:[#allocation6 + $0x190] sm:$0xff] }
 0x2cf   :  { %v1442_v6 = vmul.f32 %v1346_v3, %v3800_v36  ;;  %v1430_v55 = vmul.f32 %v2745_v26, %v1429_v10  ;;  %v3846_v36 = vpop.permute.xlu1 %116  ;;  %1840 = vmatpush.msrb.mxu3 %v3894_v60  ;;  %v3906_v10 = vld [vmem:[#allocation6 + $0x198] sm:$0xff]  ;;  %v390_v41 = vmul.f32 %v4641_v22, %v3890_v19 }
 0x2d0   :  { %v164_v18 = vmul.f32 %v4633_v13, %v3846_v36  ;;  %v165_v31 = vmul.f32 %v4634_v24, %v3846_v36  ;;  %1745 = vmatpush.msrb.mxu1 %v3868_v56  ;;  %v167_v3 = vmul.f32 %v4639_v4, %v3846_v36  ;;  %1803 = vmatpush.msrb.mxu2 %v3902_v27  ;;  %v3979_v4 = vld [vmem:[#allocation6 + $0xf0] sm:$0xff] }
 0x2d1   :  { %v3837_v21 = vadd.f32 %v1443_v48, %v1442_v6  ;;  %v1431_v43 = vadd.f32 %v2745_v26, %v1430_v55  ;;  %v389_v48 = vmul.f32 %v4640_v15, %v3890_v19  ;;  %1841 = vmatpush.msrb.mxu3 %v3906_v10  ;;  %v3914_v55 = vld [vmem:[#allocation6 + $0x160] sm:$0xff]  ;;  %v3977_v15 = vld [vmem:[#allocation6 + $0xe8] sm:$0xff]  ;;  %v3991_v24 = vld [vmem:[#allocation6 + $0xd0] sm:$0xff] }
 0x2d2   :  { %v205_v63 = vadd.f32 %v4637_v46, %v164_v18  ;;  %v206_v59 = vadd.f32 %v4638_v1, %v165_v31  ;;  %1746 = vmatpush.msrb.mxu1 %v3883_v42  ;;  %1804 = vmatpush.msrb.mxu2 %v3918_v47  ;;  %v3932_v18 = vld [vmem:[#allocation6 + $0x148] sm:$0xff]  ;;  %v3934_v31 = vld [vmem:[#allocation6 + $0x150] sm:$0xff]  ;;  %v3983_v1 = vld [vmem:[#allocation6 + $0xf8] sm:$0xff] }
 0x2d3   :  { %2748 = vtanh.f32 %v3837_v21  ;;  %v1435_v25 = vsel %vm1434_vm14, %v2745_v26, %v1431_v43  ;;  %v3881_v26 = vld [vmem:[#allocation6 + $0x1a0] sm:$0xff]  ;;  %v3916_v43 = vld [vmem:[#allocation6 + $0x168] sm:$0xff] }
 0x2d4   :  { %v1440_v23 = vsel %vm1437_vm15, %v1439_v17, %v1435_v25  ;;  %1690 = vmatpush.msrb.mxu0 %v3881_v26  ;;  %1747 = vmatpush.msrb.mxu1 %v3900_v9  ;;  %v313_v6 = vadd.f32 %v281_v20, %v205_v63  ;;  %v314_v25 = vadd.f32 %v282_v2, %v206_v59  ;;  %v3924_v17 = vld [vmem:[#allocation6 + $0x178] sm:$0xff]  ;;  %v3989_v46 = vld [vmem:[#allocation6 + $0xc8] sm:$0xff] }
 0x2d5   :  { %1842 = vmatpush.msrb.mxu3 %v3924_v17  ;;  %v3938_v63 = vld [vmem:[#allocation6 + $0x158] sm:$0xff]  ;;  %v208_v20 = vadd.f32 %v4643_v14, %v167_v3  ;;  %v284_v59 = vmul.f32 %v4642_v51, %v3858_v28  ;;  %1805 = vmatpush.msrb.mxu2 %v3934_v31  ;;  %v3963_v51 = vld [vmem:[#allocation6 + $0x108] sm:$0xff]  ;;  %v3965_v14 = vld [vmem:[#allocation6 + $0x110] sm:$0xff] }
 0x2d6   :  { %1691 = vmatpush.msrb.mxu0 %v3898_v30  ;;  %1748 = vmatpush.msrb.mxu1 %v3916_v43  ;;  %v421_v2 = vadd.f32 %v389_v48, %v313_v6  ;;  %v422_v22 = vadd.f32 %v390_v41, %v314_v25  ;;  %v3957_v48 = vld [vmem:[#allocation6 + $0x138] sm:$0xff]  ;;  %v3961_v6 = vld [vmem:[#allocation6 + $0x100] sm:$0xff]  ;;  %v392_v25 = vmul.f32 %v4646_v0, %v3890_v19 }
 0x2d7   :  { %1843 = vmatpush.msrb.mxu3 %v3938_v63  ;;  %1806 = vmatpush.msrb.mxu2 %v3949_v49  ;;  %v3969_v41 = vld [vmem:[#allocation6 + $0x118] sm:$0xff] }
 0x2d8   :  { %1692 = vmatpush.msrb.mxu0 %v3914_v55  ;;  %1749 = vmatpush.msrb.mxu1 %v3932_v18 }
 0x2d9   :  { %v2749_v11 = vpop.eup %2748  ;;  %1844 = vmatpush.msrb.mxu3 %v3957_v48  ;;  %1807 = vmatpush.msrb.mxu2 %v3965_v14 }
 0x2da   :  { %v3840_v33 = vmul.f32 %v2749_v11, %v1440_v23  ;;  %v3926_v11 = vpop.permute.xlu1 %454  ;;  %v3930_v23 = vld [vmem:[#allocation6 + $0x140] sm:$0xff]  ;;  %1750 = vmatpush.msrb.mxu1 %v3947_v32 }
 0x2db   :  { %1693 = vmatpush.msrb.mxu0 %v3930_v23  ;;  %v497_v12 = vmul.f32 %v4644_v62, %v3926_v11  ;;  %v498_v3 = vmul.f32 %v4645_v50, %v3926_v11  ;;  %v316_v50 = vadd.f32 %v284_v59, %v208_v20  ;;  %1845 = vmatpush.msrb.mxu3 %v3969_v41  ;;  %v3975_v62 = vld [vmem:[#allocation6 + $0xe0] sm:$0xff] }
 0x2dc   :  { %4655 = vst [vmem:[#allocation46_spill] sm:$0xff] %v3840_v33  ;;  %1486 = vmatmul.f32.vlgmr.msra.gmra.mxu0 %v3840_v33  ;;  %1542 = vmatmul.f32.vlgmr.msra.gmra.mxu1 %v3840_v33  ;;  %v3987_v59 = vld [vmem:[#allocation6 + $0xc0] sm:$0xff]  ;;  %v500_v35 = vmul.f32 %v4648_v40, %v3926_v11  ;;  %v4019_v40 = vld [vmem:[#allocation6 + $0x90] sm:$0xff] }
 0x2dd   :  { %1598 = vmatmul.f32.vlgmr.msra.gmra.mxu2 %v3840_v33  ;;  %1636 = vmatmul.f32.vlgmr.msra.gmra.mxu3 %v3840_v33  ;;  %v3945_v33 = vld [vmem:[#allocation6 + $0x120] sm:$0xff]  ;;  %v529_v38 = vadd.f32 %v497_v12, %v421_v2  ;;  %v530_v29 = vadd.f32 %v498_v3, %v422_v22  ;;  %v3995_v2 = vld [vmem:[#allocation6 + $0xd8] sm:$0xff]  ;;  %v166_v3 = vmul.f32 %v4647_v39, %v3846_v36  ;;  %v4027_v39 = vld [vmem:[#allocation6 + $0x68] sm:$0xff] }
 0x2de   :  { %1694 = vmatpush.msrb.mxu0 %v3945_v33  ;;  %1751 = vmatpush.msrb.mxu1 %v3963_v51  ;;  %v424_v13 = vadd.f32 %v392_v25, %v316_v50  ;;  %v4011_v50 = vld [vmem:[#allocation6 + $0xb8] sm:$0xff]  ;;  %v4015_v36 = vld [vmem:[#allocation6 + $0x80] sm:$0xff]  ;;  %v4017_v25 = vld [vmem:[#allocation6 + $0x88] sm:$0xff]  ;;  %4663 = vst [vmem:[#allocation54_spill] sm:$0xff] %v4027_v39 }
 0x2df   :  { %1808 = vmatpush.msrb.mxu2 %v3979_v4  ;;  %1846 = vmatpush.msrb.mxu3 %v3983_v1  ;;  %4659 = vst [vmem:[#allocation50_spill] sm:$0xff] %v4011_v50 }
 0x2e0   :  { %1695 = vmatpush.msrb.mxu0 %v3961_v6  ;;  %1752 = vmatpush.msrb.mxu1 %v3977_v15  ;;  %4660 = vst [vmem:[#allocation51_spill] sm:$0xff] %v4015_v36 }
 0x2e1   :  { %1809 = vmatpush.msrb.mxu2 %v3991_v24  ;;  %1847 = vmatpush.msrb.mxu3 %v3995_v2  ;;  %4661 = vst [vmem:[#allocation52_spill] sm:$0xff] %v4017_v25 }
 0x2e2   :  { %1696 = vmatpush.msrb.mxu0 %v3975_v62  ;;  %1753 = vmatpush.msrb.mxu1 %v3989_v46 }
 0x2e3   :  { %1848 = vmatpush.msrb.mxu3 %v4011_v50  ;;  %v283_v50 = vmul.f32 %v4649_v45, %v3858_v28  ;;  %v4044_v28 = vld [vmem:[#allocation6 + $0x50] sm:$0xff]  ;;  %v4052_v45 = vld [vmem:[#allocation6 + $0x28] sm:$0xff] }
 0x2e4   :  { %1697 = vmatpush.msrb.mxu0 %v3987_v59  ;;  %4669 = vst [vmem:[#allocation40_spill] sm:$0xff] %v4052_v45 }
 0x2e6   :  { %1698 = vmatpush.msrb.mxu0 %v4003_v34 }
 0x2e8   :  { %1699 = vmatpush.msrb.mxu0 %v4015_v36  ;;  %v4038_v36 = vld [vmem:[#allocation6 + $0x40] sm:$0xff] }
 0x2e9   :  { %4666 = vst [vmem:[#allocation37_spill] sm:$0xff] %v4038_v36 }
 0x359   :  { %v1487_v0 = vpop.f32.mrf.mxu0  ;;  %v1543_v20 = vpop.f32.mrf.mxu1 }
 0x35a   :  { %v1490_v12 = vadd.f32 %v1487_v0, %v529_v38  ;;  %v1546_v22 = vadd.f32 %v1543_v20, %v530_v29  ;;  %v4005_v29 = vld [vmem:[#allocation6 + $0xa8] sm:$0xff]  ;;  %v4007_v38 = vld [vmem:[#allocation6 + $0xb0] sm:$0xff] }
 0x35b   :  { %4657 = vst [vmem:[#allocation48_spill] sm:$0xff] %v4005_v29  ;;  %1754 = vmatpush.msrb.mxu1 %v4005_v29  ;;  %1810 = vmatpush.msrb.mxu2 %v4007_v38  ;;  %v532_v29 = vadd.f32 %v500_v35, %v424_v13  ;;  %v4046_v35 = vld [vmem:[#allocation6 + $0x58] sm:$0xff] }
 0x35c   :  { %4658 = vst [vmem:[#allocation49_spill] sm:$0xff] %v4007_v38  ;;  %v2625_v0 = vmul.f32 -1.442695, %v1490_v12  ;;  %v2626_v20 = vmul.f32 -1.442695, %v1546_v22  ;;  %v4023_v12 = vld [vmem:[#allocation6 + $0x98] sm:$0xff]  ;;  %v207_v38 = vadd.f32 %v4650_v61, %v166_v3 }
 0x35d   :  { %1755 = vmatpush.msrb.mxu1 %v4017_v25  ;;  %v4025_v22 = vld [vmem:[#allocation6 + $0x60] sm:$0xff]  ;;  %1811 = vmatpush.msrb.mxu2 %v4019_v40  ;;  %v4036_v25 = vld [vmem:[#allocation6 + $0x78] sm:$0xff]  ;;  %v4042_v3 = vld [vmem:[#allocation6 + $0x48] sm:$0xff] }
 0x35e   :  { %2750 = vpow2.f32 %v2625_v0  ;;  %4662 = vst [vmem:[#allocation53_spill] sm:$0xff] %v4025_v22  ;;  %1849 = vmatpush.msrb.mxu3 %v4023_v12  ;;  %v4034_v0 = vld [vmem:[#allocation6 + $0x70] sm:$0xff]  ;;  %1700 = vmatpush.msrb.mxu0 %v4025_v22  ;;  %v391_v22 = vmul.f32 %v4651_v44, %v3890_v19 }
 0x35f   :  { %2752 = vpow2.f32 %v2626_v20  ;;  %4664 = vst [vmem:[#allocation55_spill] sm:$0xff] %v4034_v0  ;;  %1756 = vmatpush.msrb.mxu1 %v4027_v39  ;;  %1812 = vmatpush.msrb.mxu2 %v4034_v0  ;;  %v4050_v20 = vld [vmem:[#allocation6 + $0x20] sm:$0xff]  ;;  %v4056_v61 = vld [vmem:[#allocation6 + $0x30] sm:$0xff]  ;;  %v4058_v39 = vld [vmem:[#allocation6 + $0x38] sm:$0xff] }
 0x360   :  { %4665 = vst [vmem:[#allocation56_spill] sm:$0xff] %v4036_v25  ;;  %v1637_v34 = vpop.f32.mrf.mxu3  ;;  %1850 = vmatpush.msrb.mxu3 %v4036_v25  ;;  %1701 = vmatpush.msrb.mxu0 %v4038_v36  ;;  %v88_v25 = vld [vmem:[%s4408_s0 + $0x28] sm:$0xff]  ;;  %v4067_v36 = vld [vmem:[#allocation6] sm:$0xff]  ;;  %v4073_v19 = vld [vmem:[#allocation6 + $0x10] sm:$0xff] }
 0x361   :  { %4667 = vst [vmem:[#allocation38_spill] sm:$0xff] %v4042_v3  ;;  %v1640_v13 = vadd.f32 %v1637_v34, %v532_v29  ;;  %1757 = vmatpush.msrb.mxu1 %v4042_v3  ;;  %v315_v34 = vadd.f32 %v283_v50, %v207_v38  ;;  %1813 = vmatpush.msrb.mxu2 %v4044_v28  ;;  %v4071_v0 = vld [vmem:[#allocation6 + $0x8] sm:$0xff] }
 0x362   :  { %4668 = vst [vmem:[#allocation39_spill] sm:$0xff] %v4050_v20  ;;  %1851 = vmatpush.msrb.mxu3 %v4046_v35  ;;  %1702 = vmatpush.msrb.mxu0 %v4050_v20  ;;  %v499_v20 = vmul.f32 %v4652_v7, %v3926_v11 }
 0x363   :  { %v2627_v29 = vmul.f32 -1.442695, %v1640_v13  ;;  %1758 = vmatpush.msrb.mxu1 %v4052_v45  ;;  %1814 = vmatpush.msrb.mxu2 %v4056_v61  ;;  %v4079_v13 = vld [vmem:[#allocation6 + $0x18] sm:$0xff]  ;;  %v423_v45 = vadd.f32 %v391_v22, %v315_v34 }
 0x364   :  { %v2751_v3 = vpop.eup %2750  ;;  %1852 = vmatpush.msrb.mxu3 %v4058_v39  ;;  %242 = vperm.xlu1 %2673, %v88_v25  }
 0x365   :  { %v2753_v38 = vpop.eup %2752  ;;  %v4075_v50 = vadd.f32 1.0, %v2751_v3  ;;  %2754 = vpow2.f32 %v2627_v29  ;;  %1703 = vmatpush.msrb.mxu0 %v4067_v36  ;;  %1759 = vmatpush.msrb.mxu1 %v4071_v0  ;;  %v1599_v3 = vpop.f32.mrf.mxu2  ;;  %v531_v34 = vadd.f32 %v499_v20, %v423_v45 }
 0x366   :  { %v4081_v44 = vadd.f32 1.0, %v2753_v38  ;;  %1815 = vmatpush.msrb.mxu2 %v4073_v19  ;;  %1853 = vmatpush.msrb.mxu3 %v4079_v13 }
 0x367   :  { %2756 = vrcp.f32 %v4075_v50  ;;  %458 = vperm.xlu0 %2675, %v88_v25   ;;  %121 = vperm.xlu2 %2672, %v88_v25   ;;  %v1602_v38 = vadd.f32 %v1599_v3, %v531_v34  ;;  %vm1500_vm2 = vweird.f32 %v4075_v50 }
 0x368   :  { %2758 = vrcp.f32 %v4081_v44  ;;  %1906 = vmatpush.msra.mxu0 %v3850_v53  ;;  %1962 = vmatpush.msra.mxu1 %v3852_v37  ;;  %vm1556_vm3 = vweird.f32 %v4081_v44 }
 0x369   :  { %2018 = vmatpush.msra.mxu2 %v3854_v5  ;;  %2056 = vmatpush.msra.mxu3 %v3862_v52 }
 0x36a   :  { %1907 = vmatpush.msra.mxu0 %v3866_v54  ;;  %1963 = vmatpush.msra.mxu1 %v3868_v56 }
 0x36b   :  { %v2755_v22 = vpop.eup %2754  ;;  %2019 = vmatpush.msra.mxu2 %v3870_v57  ;;  %2057 = vmatpush.msra.mxu3 %v3874_v58  ;;  %v1506_v58 = vand.u32 2147483648, %v4075_v50 }
 0x36c   :  { %v4096_v11 = vadd.f32 1.0, %v2755_v22  ;;  %1908 = vmatpush.msra.mxu0 %v3881_v26  ;;  %1964 = vmatpush.msra.mxu1 %v3883_v42 }
 0x36d   :  { %v2757_v29 = vpop.eup %2756  ;;  %2020 = vmatpush.msra.mxu2 %v3885_v8  ;;  %2058 = vmatpush.msra.mxu3 %v3894_v60  ;;  %v1562_v8 = vand.u32 2147483648, %v4081_v44  ;;  %v1504_v60 = vand.u32 2147483647, %v4075_v50 }
 0x36e   :  { %v2759_v7 = vpop.eup %2758  ;;  %v1496_v5 = vmul.f32 %v2757_v29, %v4075_v50  ;;  %2760 = vrcp.f32 %v4096_v11  ;;  %1909 = vmatpush.msra.mxu0 %v3898_v30  ;;  %1965 = vmatpush.msra.mxu1 %v3900_v9  ;;  %vm1501_vm0 = vweird.f32 %v2757_v29  ;;  %vm1650_vm9 = vweird.f32 %v4096_v11 }
 0x36f   :  { %v1552_v45 = vmul.f32 %v2759_v7, %v4081_v44  ;;  %2021 = vmatpush.msra.mxu2 %v3902_v27  ;;  %2762 = vtanh.f32 %v1602_v38  ;;  %2674 = vset.pattern.permute.xlu2 %v4624_v16  ;;  %vm1557_vm1 = vweird.f32 %v2759_v7  ;;  %v1560_v27 = vand.u32 2147483647, %v4081_v44  ;;  %vm1502_vm4 = vmor %vm1500_vm2, %vm1501_vm0 }
 0x370   :  { %v1497_v52 = vsub.f32 1.0, %v1496_v5  ;;  %2059 = vmatpush.msra.mxu3 %v3906_v10  ;;  %350 = vperm.xlu2 %2674, %v88_v25   ;;  %v1507_v25 = vor.u32 1.1754944e-38, %v1506_v58  ;;  %vm1558_vm5 = vmor %vm1556_vm3, %vm1557_vm1  ;;  %vm1505_vm6 = vcmp.eq.f32.partialorder %v1504_v60, 8.507059e+37  ;;  %v4674_v58 = vmov 0   ;;  %v4677_v60 = vld [vmem:[#allocation53_spill] sm:$0xff] }
 0x371   :  { %v1553_v57 = vsub.f32 1.0, %v1552_v45  ;;  %1910 = vmatpush.msra.mxu0 %v3914_v55  ;;  %1966 = vmatpush.msra.mxu1 %v3916_v43  ;;  %vm1561_vm7 = vcmp.eq.f32.partialorder %v1560_v27, 8.507059e+37 }
 0x372   :  { %v1498_v20 = vmul.f32 %v2757_v29, %v1497_v52  ;;  %2022 = vmatpush.msra.mxu2 %v3918_v47  ;;  %2060 = vmatpush.msra.mxu3 %v3924_v17  ;;  %v1563_v47 = vor.u32 1.1754944e-38, %v1562_v8  ;;  %v4675_v8 = vld [vmem:[#allocation51_spill] sm:$0xff] }
 0x373   :  { %v1554_v3 = vmul.f32 %v2759_v7, %v1553_v57  ;;  %1911 = vmatpush.msra.mxu0 %v3930_v23  ;;  %1967 = vmatpush.msra.mxu1 %v3932_v18  ;;  %v4673_v57 = vld [vmem:[#allocation50_spill] sm:$0xff] }
 0x374   :  { %v4120_v22 = vpop.eup %2760  ;;  %v1499_v10 = vadd.f32 %v2757_v29, %v1498_v20  ;;  %2023 = vmatpush.msra.mxu2 %v3934_v31  ;;  %2061 = vmatpush.msra.mxu3 %v3938_v63  ;;  %v4676_v20 = vld [vmem:[#allocation52_spill] sm:$0xff] }
 0x375   :  { %v1555_v34 = vadd.f32 %v2759_v7, %v1554_v3  ;;  %v1646_v38 = vmul.f32 %v4120_v22, %v4096_v11  ;;  %1912 = vmatpush.msra.mxu0 %v3945_v33  ;;  %v2763_v44 = vpop.eup %2762  ;;  %1968 = vmatpush.msra.mxu1 %v3947_v32  ;;  %vm1651_vm8 = vweird.f32 %v4120_v22  ;;  %v4678_v3 = vld [vmem:[#allocation54_spill] sm:$0xff] }
 0x376   :  { %v1503_v50 = vsel %vm1502_vm4, %v2757_v29, %v1499_v10  ;;  %2024 = vmatpush.msra.mxu2 %v3949_v49  ;;  %2062 = vmatpush.msra.mxu3 %v3957_v48  ;;  %vm1652_vm10 = vmor %vm1650_vm9, %vm1651_vm8  ;;  %v4672_v48 = vld [vmem:[#allocation49_spill] sm:$0xff]  ;;  %v4680_v10 = vld [vmem:[#allocation56_spill] sm:$0xff] }
 0x377   :  { %v1508_v17 = vsel %vm1505_vm6, %v1507_v25, %v1503_v50  ;;  %v1559_v5 = vsel %vm1558_vm5, %v2759_v7, %v1555_v34  ;;  %v1647_v45 = vsub.f32 1.0, %v1646_v38  ;;  %1913 = vmatpush.msra.mxu0 %v3961_v6  ;;  %1969 = vmatpush.msra.mxu1 %v3963_v51  ;;  %v4681_v25 = vld [vmem:[#allocation37_spill] sm:$0xff]  ;;  %v4682_v34 = vld [vmem:[#allocation38_spill] sm:$0xff]  ;;  %v4685_v38 = vmov 1   ;;  %v4697_v50 = vld [vmem:[#allocation27_spill] sm:$0xff] }
 0x378   :  { %v1564_v52 = vsel %vm1561_vm7, %v1563_v47, %v1559_v5  ;;  %v1661_v31 = vmul.f32 %v2763_v44, %v1508_v17  ;;  %2025 = vmatpush.msra.mxu2 %v3965_v14  ;;  %2063 = vmatpush.msra.mxu3 %v3969_v41  ;;  %v1656_v14 = vand.u32 2147483648, %v4096_v11  ;;  %v4698_v5 = vld [vmem:[#allocation28_spill] sm:$0xff] }
 0x379   :  { %v1660_v29 = vmul.f32 %v1564_v52, %v3837_v21  ;;  %v1648_v63 = vmul.f32 %v4120_v22, %v1647_v45  ;;  %1914 = vmatpush.msra.mxu0 %v3975_v62  ;;  %1970 = vmatpush.msra.mxu1 %v3977_v15  ;;  %v4670_v21 = vld [vmem:[#allocation47_spill] sm:$0xff]  ;;  %v4699_v52 = vld [vmem:[#allocation29_spill] sm:$0xff] }
 0x37a   :  { %2026 = vmatpush.msra.mxu2 %v3979_v4  ;;  %2064 = vmatpush.msra.mxu3 %v3983_v1  ;;  %v1654_v4 = vand.u32 2147483647, %v4096_v11  ;;  %v4671_v1 = vld [vmem:[#allocation48_spill] sm:$0xff] }
 0x37b   :  { %v4144_v7 = vadd.f32 %v1661_v31, %v1660_v29  ;;  %v1649_v49 = vadd.f32 %v4120_v22, %v1648_v63  ;;  %1915 = vmatpush.msra.mxu0 %v3987_v59  ;;  %1971 = vmatpush.msra.mxu1 %v3989_v46 }
 0x37c   :  { %2027 = vmatpush.msra.mxu2 %v3991_v24  ;;  %2065 = vmatpush.msra.mxu3 %v3995_v2  ;;  %v1657_v24 = vor.u32 1.1754944e-38, %v1656_v14  ;;  %vm1655_vm11 = vcmp.eq.f32.partialorder %v1654_v4, 8.507059e+37 }
 0x37d   :  { %2764 = vtanh.f32 %v4144_v7  ;;  %1916 = vmatpush.msra.mxu0 %v4670_v21  ;;  %1972 = vmatpush.msra.mxu1 %v4671_v1  ;;  %v1653_v41 = vsel %vm1652_vm10, %v4120_v22, %v1649_v49  ;;  %v4679_v22 = vld [vmem:[#allocation55_spill] sm:$0xff] }
 0x37e   :  { %2028 = vmatpush.msra.mxu2 %v4672_v48  ;;  %2066 = vmatpush.msra.mxu3 %v4673_v57  ;;  %v1658_v11 = vsel %vm1655_vm11, %v1657_v24, %v1653_v41  ;;  %v4700_v48 = vld [vmem:[#allocation30_spill] sm:$0xff] }
 0x37f   :  { %2676 = vset.pattern.permute.xlu1 %v4674_v58  ;;  %1917 = vmatpush.msra.mxu0 %v4675_v8 }
 0x380   :  { %1973 = vmatpush.msra.mxu1 %v4676_v20  ;;  %2029 = vmatpush.msra.mxu2 %v4019_v40  ;;  %v4683_v40 = vld [vmem:[#allocation39_spill] sm:$0xff] }
 0x381   :  { %2067 = vmatpush.msra.mxu3 %v4023_v12  ;;  %1918 = vmatpush.msra.mxu0 %v4677_v60  ;;  %v4684_v12 = vld [vmem:[#allocation40_spill] sm:$0xff] }
 0x382   :  { %1974 = vmatpush.msra.mxu1 %v4678_v3  ;;  %2030 = vmatpush.msra.mxu2 %v4679_v22 }
 0x383   :  { %v2765_v2 = vpop.eup %2764  ;;  %2068 = vmatpush.msra.mxu3 %v4680_v10  ;;  %1919 = vmatpush.msra.mxu0 %v4681_v25 }
 0x384   :  { %v4171_v27 = vmul.f32 %v2765_v2, %v1658_v11  ;;  %1975 = vmatpush.msra.mxu1 %v4682_v34  ;;  %2031 = vmatpush.msra.mxu2 %v4044_v28  ;;  %v4695_v28 = vld [vmem:[#allocation25_spill] sm:$0xff]  ;;  %v89_v2 = vld [vmem:[%s4408_s0 + $0x30] sm:$0xff]  ;;  %v4702_v11 = vld [vmem:[#allocation32_spill] sm:$0xff] }
 0x385   :  { %2069 = vmatpush.msra.mxu3 %v4046_v35  ;;  %1920 = vmatpush.msra.mxu0 %v4683_v40 }
 0x386   :  { %1704 = vmatmul.f32.vlgmr.msrb.gmra.mxu0 %v4171_v27  ;;  %1760 = vmatmul.f32.vlgmr.msrb.gmra.mxu1 %v4171_v27 }
 0x387   :  { %1816 = vmatmul.f32.vlgmr.msrb.gmra.mxu2 %v4171_v27  ;;  %1854 = vmatmul.f32.vlgmr.msrb.gmra.mxu3 %v4171_v27 }
 0x388   :  { %1976 = vmatpush.msra.mxu1 %v4684_v12  ;;  %2032 = vmatpush.msra.mxu2 %v4056_v61 }
 0x389   :  { %2070 = vmatpush.msra.mxu3 %v4058_v39  ;;  %1921 = vmatpush.msra.mxu0 %v4067_v36 }
 0x38a   :  { %1977 = vmatpush.msra.mxu1 %v4071_v0  ;;  %2033 = vmatpush.msra.mxu2 %v4073_v19  ;;  %v4696_v19 = vld [vmem:[#allocation26_spill] sm:$0xff] }
 0x38b   :  { %2071 = vmatpush.msra.mxu3 %v4079_v13  ;;  %2677 = vset.pattern.permute.xlu2 %v4685_v38 }
 0x38c   :  { %2124 = vmatpush.msrb.mxu0 %v3850_v53  ;;  %2180 = vmatpush.msrb.mxu1 %v3852_v37  ;;  %v4689_v53 = vld [vmem:[#allocation20_spill] sm:$0xff] }
 0x38d   :  { %2680 = vset.pattern.permute.xlu0 %v4674_v58  ;;  %v4701_v58 = vld [vmem:[#allocation31_spill] sm:$0xff]  ;;  %126 = vperm.xlu1 %2676, %v89_v2  }
 0x38e   :  { %2125 = vmatpush.msrb.mxu0 %v3866_v54  ;;  %2181 = vmatpush.msrb.mxu1 %v3868_v56  ;;  %v4690_v54 = vld [vmem:[#allocation19_spill] sm:$0xff] }
 0x38f   :  { %246 = vperm.xlu2 %2677, %v89_v2  }
 0x390   :  { %2126 = vmatpush.msrb.mxu0 %v3881_v26  ;;  %2182 = vmatpush.msrb.mxu1 %v3883_v42  ;;  %v4691_v26 = vld [vmem:[#allocation21_spill] sm:$0xff] }
 0x392   :  { %2127 = vmatpush.msrb.mxu0 %v3898_v30  ;;  %2183 = vmatpush.msrb.mxu1 %v3900_v9  ;;  %v4692_v9 = vld [vmem:[#allocation22_spill] sm:$0xff] }
 0x394   :  { %2128 = vmatpush.msrb.mxu0 %v3914_v55  ;;  %2184 = vmatpush.msrb.mxu1 %v3916_v43  ;;  %v4693_v43 = vld [vmem:[#allocation23_spill] sm:$0xff] }
 0x395   :  { %2678 = vset.pattern.permute.xlu1 %v4624_v16 }
 0x396   :  { %2129 = vmatpush.msrb.mxu0 %v3930_v23  ;;  %2185 = vmatpush.msrb.mxu1 %v3932_v18  ;;  %v4694_v18 = vld [vmem:[#allocation24_spill] sm:$0xff] }
 0x397   :  { %354 = vperm.xlu1 %2678, %v89_v2  }
 0x398   :  { %2130 = vmatpush.msrb.mxu0 %v3945_v33  ;;  %2186 = vmatpush.msrb.mxu1 %v3947_v32  ;;  %v4688_v32 = vld [vmem:[#allocation18_spill] sm:$0xff] }
 0x39a   :  { %2131 = vmatpush.msrb.mxu0 %v3961_v6  ;;  %2187 = vmatpush.msrb.mxu1 %v3963_v51 }
 0x39c   :  { %2132 = vmatpush.msrb.mxu0 %v3975_v62  ;;  %2188 = vmatpush.msrb.mxu1 %v3977_v15  ;;  %v4686_v15 = vld [vmem:[#allocation16_spill] sm:$0xff]  ;;  %v4687_v62 = vld [vmem:[#allocation17_spill] sm:$0xff] }
 0x39e   :  { %2133 = vmatpush.msrb.mxu0 %v3987_v59  ;;  %2189 = vmatpush.msrb.mxu1 %v3989_v46 }
 0x39f   :  { %2681 = vset.pattern.permute.xlu1 %v4685_v38 }
 0x3a0   :  { %2134 = vmatpush.msrb.mxu0 %v4670_v21  ;;  %2190 = vmatpush.msrb.mxu1 %v4671_v1 }
 0x3a2   :  { %2135 = vmatpush.msrb.mxu0 %v4675_v8  ;;  %2191 = vmatpush.msrb.mxu1 %v4676_v20 }
 0x3a4   :  { %2136 = vmatpush.msrb.mxu0 %v4677_v60  ;;  %2192 = vmatpush.msrb.mxu1 %v4678_v3  ;;  %v4703_v3 = vld [vmem:[#allocation33_spill] sm:$0xff] }
 0x3a6   :  { %2137 = vmatpush.msrb.mxu0 %v4681_v25  ;;  %2193 = vmatpush.msrb.mxu1 %v4682_v34 }
 0x3a8   :  { %2138 = vmatpush.msrb.mxu0 %v4683_v40  ;;  %2194 = vmatpush.msrb.mxu1 %v4684_v12  ;;  %v4704_v40 = vld [vmem:[#allocation34_spill] sm:$0xff] }
 0x3aa   :  { %2139 = vmatpush.msrb.mxu0 %v4067_v36  ;;  %2195 = vmatpush.msrb.mxu1 %v4071_v0 }
 0x3c1   :  { %v122_v46 = vpop.permute.xlu2 %121 }
 0x3c2   :  { %v168_v51 = vmul.f32 %v4686_v15, %v122_v46  ;;  %v169_v39 = vmul.f32 %v4687_v62, %v122_v46  ;;  %v171_v55 = vmul.f32 %v4692_v9, %v122_v46  ;;  %v170_v41 = vmul.f32 %v4700_v48, %v122_v46 }
 0x3c4   :  { %v209_v33 = vadd.f32 %v4688_v32, %v168_v51  ;;  %v210_v37 = vadd.f32 %v4689_v53, %v169_v39  ;;  %v212_v35 = vadd.f32 %v4695_v28, %v171_v55  ;;  %v211_v60 = vadd.f32 %v4702_v11, %v170_v41 }
 0x3ca   :  { %v351_v30 = vpop.permute.xlu2 %350 }
 0x3cb   :  { %v393_v23 = vmul.f32 %v4693_v43, %v351_v30  ;;  %v394_v6 = vmul.f32 %v4694_v18, %v351_v30  ;;  %v396_v31 = vmul.f32 %v4699_v52, %v351_v30  ;;  %v395_v12 = vmul.f32 %v4704_v40, %v351_v30 }
 0x3d6   :  { %v243_v61 = vpop.permute.xlu1 %242 }
 0x3d7   :  { %v285_v56 = vmul.f32 %v4690_v54, %v243_v61  ;;  %v286_v42 = vmul.f32 %v4691_v26, %v243_v61  ;;  %v288_v13 = vmul.f32 %v4696_v19, %v243_v61  ;;  %v287_v22 = vmul.f32 %v4703_v3, %v243_v61  ;;  %v4706_v61 = vld [vmem:[#allocation35_spill] sm:$0xff] }
 0x3d9   :  { %v317_v59 = vadd.f32 %v285_v56, %v209_v33  ;;  %v318_v36 = vadd.f32 %v286_v42, %v210_v37  ;;  %v459_v0 = vpop.permute.xlu0 %458  ;;  %v320_v29 = vadd.f32 %v288_v13, %v212_v35  ;;  %v319_v46 = vadd.f32 %v287_v22, %v211_v60 }
 0x3da   :  { %v501_v44 = vmul.f32 %v4697_v50, %v459_v0  ;;  %v502_v45 = vmul.f32 %v4698_v5, %v459_v0  ;;  %v504_v24 = vmul.f32 %v4701_v58, %v459_v0  ;;  %v4705_v42 = vmov 3  }
 0x3db   :  { %v425_v47 = vadd.f32 %v393_v23, %v317_v59  ;;  %v426_v17 = vadd.f32 %v394_v6, %v318_v36  ;;  %v428_v57 = vadd.f32 %v396_v31, %v320_v29  ;;  %2679 = vset.pattern.permute.xlu2 %v4705_v42  ;;  %v427_v55 = vadd.f32 %v395_v12, %v319_v46 }
 0x3dc   :  { %v503_v23 = vmul.f32 %v4706_v61, %v459_v0  ;;  %462 = vperm.xlu2 %2679, %v89_v2  }
 0x3dd   :  { %v533_v63 = vadd.f32 %v501_v44, %v425_v47  ;;  %v534_v49 = vadd.f32 %v502_v45, %v426_v17  ;;  %v536_v10 = vadd.f32 %v504_v24, %v428_v57 }
 0x3de   :  { %v535_v59 = vadd.f32 %v503_v23, %v427_v55 }
 0x3e4   :  { %2682 = vset.pattern.permute.xlu2 %v4624_v16 }
 0x403   :  { %v1705_v14 = vpop.f32.mrf.mxu0  ;;  %v1761_v4 = vpop.f32.mrf.mxu1 }
 0x404   :  { %v1708_v21 = vadd.f32 %v1705_v14, %v533_v63  ;;  %v1764_v1 = vadd.f32 %v1761_v4, %v534_v49 }
 0x406   :  { %v2628_v8 = vmul.f32 -1.442695, %v1708_v21  ;;  %v2629_v20 = vmul.f32 -1.442695, %v1764_v1 }
 0x408   :  { %2766 = vpow2.f32 %v2628_v8 }
 0x409   :  { %2768 = vpow2.f32 %v2629_v20 }
 0x40a   :  { %v1855_v25 = vpop.f32.mrf.mxu3  ;;  %v1817_v6 = vpop.f32.mrf.mxu2 }
 0x40b   :  { %v1858_v34 = vadd.f32 %v1855_v25, %v536_v10  ;;  %v1820_v13 = vadd.f32 %v1817_v6, %v535_v59  ;;  %v4264_v6 = vpop.permute.xlu2 %246  ;;  %v2235_v59 = vld [vmem:[#allocation6 + $0x1f0] sm:$0xff] }
 0x40c   :  { %2236 = vmatpush.msrb.mxu2 %v2235_v59  ;;  %v2228_v59 = vld [vmem:[#allocation6 + $0x110] sm:$0xff] }
 0x40d   :  { %v2630_v51 = vmul.f32 -1.442695, %v1858_v34 }
 0x40e   :  { %v2767_v39 = vpop.eup %2766 }
 0x40f   :  { %v2769_v33 = vpop.eup %2768  ;;  %v1712_v37 = vadd.f32 1.0, %v2767_v39  ;;  %2770 = vpow2.f32 %v2630_v51 }
 0x410   :  { %v1768_v56 = vadd.f32 1.0, %v2769_v33 }
 0x411   :  { %2772 = vrcp.f32 %v1712_v37  ;;  %v1724_v0 = vand.u32 2147483648, %v1712_v37  ;;  %v1722_v49 = vand.u32 2147483647, %v1712_v37  ;;  %vm1718_vm14 = vweird.f32 %v1712_v37 }
 0x412   :  { %2774 = vrcp.f32 %v1768_v56  ;;  %v1780_v29 = vand.u32 2147483648, %v1768_v56  ;;  %v1778_v4 = vand.u32 2147483647, %v1768_v56  ;;  %vm1774_vm15 = vweird.f32 %v1768_v56 }
 0x413   :  { %v1725_v41 = vor.u32 1.1754944e-38, %v1724_v0  ;;  %vm1723_vm2 = vcmp.eq.f32.partialorder %v1722_v49, 8.507059e+37  ;;  %v2232_v49 = vld [vmem:[#allocation6 + $0x190] sm:$0xff] }
 0x414   :  { %v1781_v16 = vor.u32 1.1754944e-38, %v1780_v29  ;;  %vm1779_vm3 = vcmp.eq.f32.partialorder %v1778_v4, 8.507059e+37  ;;  %v290_v29 = vmul.f32 %v4691_v26, %v4264_v6 }
 0x415   :  { %v2771_v30 = vpop.eup %2770 }
 0x416   :  { %v1862_v36 = vadd.f32 1.0, %v2771_v30 }
 0x417   :  { %v2773_v35 = vpop.eup %2772 }
 0x418   :  { %v2775_v47 = vpop.eup %2774  ;;  %v1714_v44 = vmul.f32 %v2773_v35, %v1712_v37  ;;  %2776 = vrcp.f32 %v1862_v36  ;;  %vm1719_vm12 = vweird.f32 %v2773_v35  ;;  %v1874_v51 = vand.u32 2147483648, %v1862_v36 }
 0x419   :  { %v1770_v17 = vmul.f32 %v2775_v47, %v1768_v56  ;;  %2778 = vtanh.f32 %v1820_v13  ;;  %vm1775_vm13 = vweird.f32 %v2775_v47  ;;  %vm1720_vm0 = vmor %vm1718_vm14, %vm1719_vm12  ;;  %vm1868_vm5 = vweird.f32 %v1862_v36  ;;  %v2234_v13 = vld [vmem:[#allocation6 + $0x1d0] sm:$0xff] }
 0x41a   :  { %v1715_v45 = vsub.f32 1.0, %v1714_v44  ;;  %vm1776_vm1 = vmor %vm1774_vm15, %vm1775_vm13  ;;  %v1872_v39 = vand.u32 2147483647, %v1862_v36  ;;  %v1875_v37 = vor.u32 1.1754944e-38, %v1874_v51  ;;  %2237 = vmatpush.msrb.mxu2 %v2234_v13  ;;  %v2229_v51 = vld [vmem:[#allocation6 + $0x130] sm:$0xff]  ;;  %v2356_v13 = vld [vmem:[#allocation9 + $0xc8] sm:$0xff] }
 0x41b   :  { %v1771_v31 = vsub.f32 1.0, %v1770_v17  ;;  %v289_v17 = vmul.f32 %v4690_v54, %v4264_v6 }
 0x41c   :  { %v1716_v63 = vmul.f32 %v2773_v35, %v1715_v45  ;;  %vm1873_vm7 = vcmp.eq.f32.partialorder %v1872_v39, 8.507059e+37  ;;  %v2233_v45 = vld [vmem:[#allocation6 + $0x1b0] sm:$0xff]  ;;  %v2267_v39 = vld [vmem:[#allocation6 + $0x138] sm:$0xff] }
 0x41d   :  { %v1772_v14 = vmul.f32 %v2775_v47, %v1771_v31  ;;  %v2271_v31 = vld [vmem:[#allocation6 + $0x1b8] sm:$0xff]  ;;  %2238 = vmatpush.msrb.mxu2 %v2233_v45 }
 0x41e   :  { %v2777_v21 = vpop.eup %2776  ;;  %v1717_v1 = vadd.f32 %v2773_v35, %v1716_v63  ;;  %v2265_v45 = vld [vmem:[#allocation6 + $0xf8] sm:$0xff] }
 0x41f   :  { %v1773_v38 = vadd.f32 %v2775_v47, %v1772_v14  ;;  %v1864_v57 = vmul.f32 %v2777_v21, %v1862_v36  ;;  %v2779_v8 = vpop.eup %2778  ;;  %vm1869_vm4 = vweird.f32 %v2777_v21  ;;  %v2273_v36 = vld [vmem:[#allocation6 + $0x1f8] sm:$0xff]  ;;  %2239 = vmatpush.msrb.mxu2 %v2232_v49 }
 0x420   :  { %v1721_v24 = vsel %vm1720_vm0, %v2773_v35, %v1717_v1  ;;  %vm1870_vm6 = vmor %vm1868_vm5, %vm1869_vm4  ;;  %2274 = vmatpush.msrb.mxu3 %v2273_v36  ;;  %v2270_v14 = vld [vmem:[#allocation6 + $0x198] sm:$0xff]  ;;  %v2231_v1 = vld [vmem:[#allocation6 + $0x170] sm:$0xff] }
 0x421   :  { %v1726_v20 = vsel %vm1723_vm2, %v1725_v41, %v1721_v24  ;;  %v1777_v2 = vsel %vm1776_vm1, %v2775_v47, %v1773_v38  ;;  %v1865_v60 = vsub.f32 1.0, %v1864_v57  ;;  %v2272_v47 = vld [vmem:[#allocation6 + $0x1d8] sm:$0xff]  ;;  %v2361_v38 = vld [vmem:[#allocation9 + $0xf0] sm:$0xff]  ;;  %2240 = vmatpush.msrb.mxu2 %v2231_v1 }
 0x422   :  { %v1782_v22 = vsel %vm1779_vm3, %v1781_v16, %v1777_v2  ;;  %v1879_v10 = vmul.f32 %v2779_v8, %v1726_v20  ;;  %2275 = vmatpush.msrb.mxu3 %v2272_v47  ;;  %v2269_v41 = vld [vmem:[#allocation6 + $0x178] sm:$0xff]  ;;  %v2230_v2 = vld [vmem:[#allocation6 + $0x150] sm:$0xff] }
 0x423   :  { %v1878_v25 = vmul.f32 %v1782_v22, %v4144_v7  ;;  %v1866_v34 = vmul.f32 %v2777_v21, %v1865_v60  ;;  %v4262_v7 = vpop.permute.xlu1 %126  ;;  %v2362_v20 = vld [vmem:[#allocation9 + $0xf8] sm:$0xff]  ;;  %v2359_v22 = vld [vmem:[#allocation9 + $0xe0] sm:$0xff]  ;;  %2241 = vmatpush.msrb.mxu2 %v2230_v2 }
 0x424   :  { %v172_v30 = vmul.f32 %v4686_v15, %v4262_v7  ;;  %v173_v35 = vmul.f32 %v4687_v62, %v4262_v7  ;;  %2276 = vmatpush.msrb.mxu3 %v2271_v31  ;;  %v175_v4 = vmul.f32 %v4692_v9, %v4262_v7  ;;  %v2268_v60 = vld [vmem:[#allocation6 + $0x158] sm:$0xff]  ;;  %v2353_v31 = vld [vmem:[#allocation9 + $0xb0] sm:$0xff] }
 0x425   :  { %v4253_v12 = vadd.f32 %v1879_v10, %v1878_v25  ;;  %v1867_v46 = vadd.f32 %v2777_v21, %v1866_v34  ;;  %v2360_v10 = vld [vmem:[#allocation9 + $0xe8] sm:$0xff]  ;;  %v292_v34 = vmul.f32 %v4696_v19, %v4264_v6  ;;  %2242 = vmatpush.msrb.mxu2 %v2229_v51  ;;  %v2266_v36 = vld [vmem:[#allocation6 + $0x118] sm:$0xff]  ;;  %v2224_v51 = vld [vmem:[#allocation6 + $0x90] sm:$0xff] }
 0x426   :  { %v213_v44 = vadd.f32 %v4688_v32, %v172_v30  ;;  %v214_v0 = vadd.f32 %v4689_v53, %v173_v35  ;;  %2277 = vmatpush.msrb.mxu3 %v2270_v14  ;;  %v216_v25 = vadd.f32 %v4695_v28, %v175_v4  ;;  %v2358_v30 = vld [vmem:[#allocation9 + $0xd8] sm:$0xff]  ;;  %v2355_v35 = vld [vmem:[#allocation9 + $0xc0] sm:$0xff] }
 0x427   :  { %2780 = vtanh.f32 %v4253_v12  ;;  %v1871_v33 = vsel %vm1870_vm6, %v2777_v21, %v1867_v46  ;;  %2243 = vmatpush.msrb.mxu2 %v2228_v59  ;;  %v2354_v49 = vld [vmem:[#allocation9 + $0xb8] sm:$0xff] }
 0x428   :  { %v1876_v55 = vsel %vm1873_vm7, %v1875_v37, %v1871_v33  ;;  %v321_v21 = vadd.f32 %v289_v17, %v213_v44  ;;  %v322_v8 = vadd.f32 %v290_v29, %v214_v0  ;;  %2278 = vmatpush.msrb.mxu3 %v2269_v41  ;;  %v2357_v33 = vld [vmem:[#allocation9 + $0xd0] sm:$0xff]  ;;  %v324_v44 = vadd.f32 %v292_v34, %v216_v25  ;;  %v2264_v1 = vld [vmem:[#allocation6 + $0xd8] sm:$0xff]  ;;  %v2351_v41 = vld [vmem:[#allocation9 + $0xa0] sm:$0xff] }
 0x429   :  { %v2227_v17 = vld [vmem:[#allocation6 + $0xf0] sm:$0xff] }
 0x42a   :  { %2279 = vmatpush.msrb.mxu3 %v2268_v60  ;;  %2244 = vmatpush.msrb.mxu2 %v2227_v17  ;;  %v2225_v60 = vld [vmem:[#allocation6 + $0xb0] sm:$0xff]  ;;  %v2260_v17 = vld [vmem:[#allocation6 + $0x58] sm:$0xff] }
 0x42b   :  { %v4276_v63 = vpop.permute.xlu1 %354 }
 0x42c   :  { %v397_v57 = vmul.f32 %v4693_v43, %v4276_v63  ;;  %v398_v16 = vmul.f32 %v4694_v18, %v4276_v63  ;;  %2280 = vmatpush.msrb.mxu3 %v2267_v39  ;;  %v400_v47 = vmul.f32 %v4699_v52, %v4276_v63  ;;  %v2262_v39 = vld [vmem:[#allocation6 + $0x98] sm:$0xff] }
 0x42d   :  { %v2781_v56 = vpop.eup %2780 }
 0x42e   :  { %v4256_v23 = vmul.f32 %v2781_v56, %v1876_v55  ;;  %v429_v37 = vadd.f32 %v397_v57, %v321_v21  ;;  %v430_v56 = vadd.f32 %v398_v16, %v322_v8  ;;  %2281 = vmatpush.msrb.mxu3 %v2266_v36  ;;  %v2226_v21 = vld [vmem:[#allocation6 + $0xd0] sm:$0xff]  ;;  %v2352_v16 = vld [vmem:[#allocation9 + $0xa8] sm:$0xff]  ;;  %v174_v8 = vmul.f32 %v4700_v48, %v4262_v7  ;;  %v2261_v36 = vld [vmem:[#allocation6 + $0x78] sm:$0xff] }
 0x42f   :  { %2245 = vmatpush.msrb.mxu2 %v2226_v21  ;;  %v2348_v7 = vld [vmem:[#allocation9 + $0x88] sm:$0xff]  ;;  %v2341_v21 = vld [vmem:[#allocation9 + $0x50] sm:$0xff] }
 0x430   :  { %1922 = vmatmul.f32.vlgmr.msra.gmra.mxu0 %v4256_v23  ;;  %1978 = vmatmul.f32.vlgmr.msra.gmra.mxu1 %v4256_v23 }
 0x431   :  { %2034 = vmatmul.f32.vlgmr.msra.gmra.mxu2 %v4256_v23  ;;  %2072 = vmatmul.f32.vlgmr.msra.gmra.mxu3 %v4256_v23 }
 0x432   :  { %2369 = vmatpush.msra.mxu0 %v2361_v38  ;;  %2410 = vmatpush.msra.mxu1 %v2362_v20  ;;  %v432_v20 = vadd.f32 %v400_v47, %v324_v44  ;;  %v2222_v44 = vld [vmem:[#allocation6 + $0x50] sm:$0xff] }
 0x433   :  { %2282 = vmatpush.msrb.mxu3 %v2265_v45  ;;  %2246 = vmatpush.msrb.mxu2 %v2225_v60  ;;  %v2343_v45 = vld [vmem:[#allocation9 + $0x60] sm:$0xff] }
 0x434   :  { %2370 = vmatpush.msra.mxu0 %v2359_v22  ;;  %2411 = vmatpush.msra.mxu1 %v2360_v10  ;;  %v2263_v22 = vld [vmem:[#allocation6 + $0xb8] sm:$0xff]  ;;  %v2349_v10 = vld [vmem:[#allocation9 + $0x90] sm:$0xff] }
 0x435   :  { %2283 = vmatpush.msrb.mxu3 %v2264_v1  ;;  %2247 = vmatpush.msrb.mxu2 %v2224_v51  ;;  %v2342_v1 = vld [vmem:[#allocation9 + $0x58] sm:$0xff] }
 0x436   :  { %v4284_v24 = vpop.permute.xlu2 %462  ;;  %2371 = vmatpush.msra.mxu0 %v2357_v33  ;;  %2412 = vmatpush.msra.mxu1 %v2358_v30  ;;  %v2347_v33 = vld [vmem:[#allocation9 + $0x80] sm:$0xff]  ;;  %v291_v30 = vmul.f32 %v4703_v3, %v4264_v6  ;;  %v2221_v6 = vld [vmem:[#allocation6 + $0x30] sm:$0xff] }
 0x437   :  { %v505_v46 = vmul.f32 %v4697_v50, %v4284_v24  ;;  %v506_v55 = vmul.f32 %v4698_v5, %v4284_v24  ;;  %v508_v2 = vmul.f32 %v4701_v58, %v4284_v24  ;;  %2284 = vmatpush.msrb.mxu3 %v2263_v22  ;;  %v507_v22 = vmul.f32 %v4706_v61, %v4284_v24  ;;  %v2333_v24 = vld [vmem:[#allocation9 + $0x10] sm:$0xff] }
 0x438   :  { %2372 = vmatpush.msra.mxu0 %v2355_v35  ;;  %2413 = vmatpush.msra.mxu1 %v2356_v13  ;;  %v2345_v35 = vld [vmem:[#allocation9 + $0x70] sm:$0xff]  ;;  %v2346_v13 = vld [vmem:[#allocation9 + $0x78] sm:$0xff] }
 0x439   :  { %v537_v0 = vadd.f32 %v505_v46, %v429_v37  ;;  %v538_v29 = vadd.f32 %v506_v55, %v430_v56  ;;  %v2350_v46 = vld [vmem:[#allocation9 + $0x98] sm:$0xff]  ;;  %2285 = vmatpush.msrb.mxu3 %v2262_v39  ;;  %v2223_v56 = vld [vmem:[#allocation6 + $0x70] sm:$0xff]  ;;  %v215_v55 = vadd.f32 %v4702_v11, %v174_v8  ;;  %v540_v59 = vadd.f32 %v508_v2, %v432_v20  ;;  %v2339_v20 = vld [vmem:[#allocation9 + $0x40] sm:$0xff] }
 0x43a   :  { %2373 = vmatpush.msra.mxu0 %v2353_v31  ;;  %2414 = vmatpush.msra.mxu1 %v2354_v49  ;;  %v4302_v37 = vld [vmem:[%s4408_s0 + $0x38] sm:$0xff]  ;;  %v399_v49 = vmul.f32 %v4704_v40, %v4276_v63  ;;  %v2340_v63 = vld [vmem:[#allocation9 + $0x48] sm:$0xff] }
 0x43b   :  { %250 = vperm.xlu1 %2681, %v4302_v37   ;;  %2248 = vmatpush.msrb.mxu2 %v2223_v56 }
 0x43c   :  { %2374 = vmatpush.msra.mxu0 %v2351_v41  ;;  %2415 = vmatpush.msra.mxu1 %v2352_v16 }
 0x43d   :  { %2286 = vmatpush.msrb.mxu3 %v2261_v36  ;;  %2249 = vmatpush.msrb.mxu2 %v2222_v44  ;;  %v2332_v36 = vld [vmem:[#allocation9 + $0x8] sm:$0xff] }
 0x43e   :  { %2375 = vmatpush.msra.mxu0 %v2349_v10  ;;  %2416 = vmatpush.msra.mxu1 %v2350_v46  ;;  %v2337_v10 = vld [vmem:[#allocation9 + $0x30] sm:$0xff]  ;;  %v2336_v46 = vld [vmem:[#allocation9 + $0x28] sm:$0xff] }
 0x43f   :  { %2287 = vmatpush.msrb.mxu3 %v2260_v17  ;;  %131 = vperm.xlu0 %2680, %v4302_v37  }
 0x440   :  { %2376 = vmatpush.msra.mxu0 %v2347_v33  ;;  %2417 = vmatpush.msra.mxu1 %v2348_v7  ;;  %v2334_v7 = vld [vmem:[#allocation9 + $0x18] sm:$0xff] }
 0x441   :  { %2250 = vmatpush.msrb.mxu2 %v2221_v6  ;;  %358 = vperm.xlu2 %2682, %v4302_v37  }
 0x442   :  { %2377 = vmatpush.msra.mxu0 %v2345_v35  ;;  %2418 = vmatpush.msra.mxu1 %v2346_v13 }
 0x443   :  { %2683 = vset.pattern.permute.xlu1 %v4705_v42 }
 0x444   :  { %2378 = vmatpush.msra.mxu0 %v2343_v45  ;;  %466 = vperm.xlu1 %2683, %v4302_v37  }
 0x446   :  { %2379 = vmatpush.msra.mxu0 %v2341_v21 }
 0x447   :  { %2684 = vset.pattern.permute.xlu0 %v4705_v42 }
 0x448   :  { %2380 = vmatpush.msra.mxu0 %v2339_v20 }
 0x44a   :  { %2381 = vmatpush.msra.mxu0 %v2337_v10 }
 0x4ad   :  { %v1923_v14 = vpop.f32.mrf.mxu0  ;;  %v1979_v4 = vpop.f32.mrf.mxu1 }
 0x4ae   :  { %v1926_v38 = vadd.f32 %v1923_v14, %v537_v0  ;;  %v1982_v57 = vadd.f32 %v1979_v4, %v538_v29  ;;  %v2344_v0 = vld [vmem:[#allocation9 + $0x68] sm:$0xff]  ;;  %v2259_v29 = vld [vmem:[#allocation6 + $0x38] sm:$0xff]  ;;  %v323_v14 = vadd.f32 %v291_v30, %v215_v55 }
 0x4af   :  { %2419 = vmatpush.msra.mxu1 %v2344_v0  ;;  %2288 = vmatpush.msrb.mxu3 %v2259_v29 }
 0x4b0   :  { %v2631_v25 = vmul.f32 -1.442695, %v1926_v38  ;;  %v2632_v34 = vmul.f32 -1.442695, %v1982_v57  ;;  %v2220_v38 = vld [vmem:[#allocation6 + $0x10] sm:$0xff]  ;;  %v2258_v57 = vld [vmem:[#allocation6 + $0x18] sm:$0xff]  ;;  %v431_v60 = vadd.f32 %v399_v49, %v323_v14 }
 0x4b1   :  { %2420 = vmatpush.msra.mxu1 %v2342_v1  ;;  %2251 = vmatpush.msrb.mxu2 %v2220_v38 }
 0x4b2   :  { %2782 = vpow2.f32 %v2631_v25  ;;  %2289 = vmatpush.msrb.mxu3 %v2258_v57  ;;  %v2338_v25 = vld [vmem:[#allocation9 + $0x38] sm:$0xff]  ;;  %v539_v33 = vadd.f32 %v507_v22, %v431_v60 }
 0x4b3   :  { %2784 = vpow2.f32 %v2632_v34  ;;  %2421 = vmatpush.msra.mxu1 %v2340_v63  ;;  %v2335_v34 = vld [vmem:[#allocation9 + $0x20] sm:$0xff] }
 0x4b4   :  { %v2073_v47 = vpop.f32.mrf.mxu3  ;;  %v2035_v51 = vpop.f32.mrf.mxu2  ;;  %2382 = vmatpush.msra.mxu0 %v2335_v34 }
 0x4b5   :  { %v2076_v31 = vadd.f32 %v2073_v47, %v540_v59  ;;  %2422 = vmatpush.msra.mxu1 %v2338_v25  ;;  %v2038_v30 = vadd.f32 %v2035_v51, %v539_v33  ;;  %v2331_v59 = vld [vmem:[#allocation9] sm:$0xff] }
 0x4b6   :  { %2383 = vmatpush.msra.mxu0 %v2333_v24 }
 0x4b7   :  { %v2633_v4 = vmul.f32 -1.442695, %v2076_v31  ;;  %2423 = vmatpush.msra.mxu1 %v2336_v46 }
 0x4b8   :  { %v2783_v41 = vpop.eup %2782  ;;  %2384 = vmatpush.msra.mxu0 %v2331_v59  ;;  %v4710_v59 = vld [vmem:[#allocation46_spill] sm:$0xff] }
 0x4b9   :  { %v2785_v16 = vpop.eup %2784  ;;  %v4311_v8 = vadd.f32 1.0, %v2783_v41  ;;  %2786 = vpow2.f32 %v2633_v4  ;;  %2424 = vmatpush.msra.mxu1 %v2334_v7  ;;  %v4708_v7 = vld [vmem:[#allocation44_spill] sm:$0xff] }
 0x4ba   :  { %v4313_v2 = vadd.f32 1.0, %v2785_v16 }
 0x4bb   :  { %2788 = vrcp.f32 %v4311_v8  ;;  %2425 = vmatpush.msra.mxu1 %v2332_v36  ;;  %v1942_v17 = vand.u32 2147483648, %v4311_v8  ;;  %v1940_v42 = vand.u32 2147483647, %v4311_v8  ;;  %vm1936_vm10 = vweird.f32 %v4311_v8  ;;  %v2481_v36 = vld [vmem:[#allocation11 + $0x70] sm:$0xff] }
 0x4bc   :  { %2790 = vrcp.f32 %v4313_v2  ;;  %v1998_v45 = vand.u32 2147483648, %v4313_v2  ;;  %v1996_v6 = vand.u32 2147483647, %v4313_v2  ;;  %vm1992_vm11 = vweird.f32 %v4313_v2 }
 0x4bd   :  { %v1943_v14 = vor.u32 1.1754944e-38, %v1942_v17  ;;  %vm1941_vm14 = vcmp.eq.f32.partialorder %v1940_v42, 8.507059e+37  ;;  %v2478_v17 = vld [vmem:[#allocation11 + $0x58] sm:$0xff]  ;;  %v2476_v42 = vld [vmem:[#allocation11 + $0x48] sm:$0xff] }
 0x4be   :  { %v1999_v1 = vor.u32 1.1754944e-38, %v1998_v45  ;;  %vm1997_vm15 = vcmp.eq.f32.partialorder %v1996_v6, 8.507059e+37  ;;  %v2494_v45 = vld [vmem:[#allocation11 + $0xd8] sm:$0xff]  ;;  %v2491_v6 = vld [vmem:[#allocation11 + $0xc0] sm:$0xff] }
 0x4bf   :  { %v2787_v39 = vpop.eup %2786 }
 0x4c0   :  { %v2080_v56 = vadd.f32 1.0, %v2787_v39 }
 0x4c1   :  { %v2789_v55 = vpop.eup %2788 }
 0x4c2   :  { %v2791_v35 = vpop.eup %2790  ;;  %v1932_v13 = vmul.f32 %v2789_v55, %v4311_v8  ;;  %2792 = vrcp.f32 %v2080_v56  ;;  %vm1937_vm8 = vweird.f32 %v2789_v55  ;;  %v2092_v25 = vand.u32 2147483648, %v2080_v56 }
 0x4c3   :  { %v1988_v47 = vmul.f32 %v2791_v35, %v4313_v2  ;;  %2794 = vtanh.f32 %v2038_v30  ;;  %vm1993_vm9 = vweird.f32 %v2791_v35  ;;  %vm1938_vm12 = vmor %vm1936_vm10, %vm1937_vm8  ;;  %vm2086_vm1 = vweird.f32 %v2080_v56  ;;  %v2498_v30 = vld [vmem:[#allocation11 + $0xf8] sm:$0xff] }
 0x4c4   :  { %v1933_v37 = vsub.f32 1.0, %v1932_v13  ;;  %vm1994_vm13 = vmor %vm1992_vm11, %vm1993_vm9  ;;  %v2090_v34 = vand.u32 2147483647, %v2080_v56  ;;  %v2093_v51 = vor.u32 1.1754944e-38, %v2092_v25  ;;  %2544 = vmatpush.msra.mxu3 %v2498_v30  ;;  %v2480_v13 = vld [vmem:[#allocation11 + $0x68] sm:$0xff]  ;;  %v2483_v25 = vld [vmem:[#allocation11 + $0x80] sm:$0xff] }
 0x4c5   :  { %v1989_v44 = vsub.f32 1.0, %v1988_v47  ;;  %v2496_v47 = vld [vmem:[#allocation11 + $0xe8] sm:$0xff] }
 0x4c6   :  { %v1934_v31 = vmul.f32 %v2789_v55, %v1933_v37  ;;  %vm2091_vm3 = vcmp.eq.f32.partialorder %v2090_v34, 8.507059e+37  ;;  %v2479_v37 = vld [vmem:[#allocation11 + $0x60] sm:$0xff]  ;;  %v251_v34 = vpop.permute.xlu1 %250 }
 0x4c7   :  { %v1990_v0 = vmul.f32 %v2791_v35, %v1989_v44  ;;  %v2495_v44 = vld [vmem:[#allocation11 + $0xe0] sm:$0xff] }
 0x4c8   :  { %v2793_v29 = vpop.eup %2792  ;;  %v1935_v49 = vadd.f32 %v2789_v55, %v1934_v31  ;;  %v2493_v31 = vld [vmem:[#allocation11 + $0xd0] sm:$0xff] }
 0x4c9   :  { %v1991_v4 = vadd.f32 %v2791_v35, %v1990_v0  ;;  %v2082_v21 = vmul.f32 %v2793_v29, %v2080_v56  ;;  %v2795_v38 = vpop.eup %2794  ;;  %vm2087_vm0 = vweird.f32 %v2793_v29  ;;  %v4709_v56 = vld [vmem:[#allocation45_spill] sm:$0xff] }
 0x4ca   :  { %v1939_v41 = vsel %vm1938_vm12, %v2789_v55, %v1935_v49  ;;  %vm2088_vm2 = vmor %vm2086_vm1, %vm2087_vm0  ;;  %v2482_v55 = vld [vmem:[#allocation11 + $0x78] sm:$0xff]  ;;  %v2492_v0 = vld [vmem:[#allocation11 + $0xc8] sm:$0xff] }
 0x4cb   :  { %v1944_v57 = vsel %vm1941_vm14, %v1943_v14, %v1939_v41  ;;  %v1995_v16 = vsel %vm1994_vm13, %v2791_v35, %v1991_v4  ;;  %v2083_v20 = vsub.f32 1.0, %v2082_v21  ;;  %2503 = vmatpush.msra.mxu2 %v2482_v55  ;;  %v2497_v35 = vld [vmem:[#allocation11 + $0xf0] sm:$0xff]  ;;  %v2490_v49 = vld [vmem:[#allocation11 + $0xb8] sm:$0xff]  ;;  %v2472_v21 = vld [vmem:[#allocation11 + $0x28] sm:$0xff] }
 0x4cc   :  { %v2000_v63 = vsel %vm1997_vm15, %v1999_v1, %v1995_v16  ;;  %v2097_v60 = vmul.f32 %v2795_v38, %v1944_v57  ;;  %2545 = vmatpush.msra.mxu3 %v2497_v35  ;;  %v2473_v14 = vld [vmem:[#allocation11 + $0x30] sm:$0xff]  ;;  %v2488_v1 = vld [vmem:[#allocation11 + $0xa8] sm:$0xff]  ;;  %v2471_v41 = vld [vmem:[#allocation11 + $0x20] sm:$0xff] }
 0x4cd   :  { %v2096_v22 = vmul.f32 %v2000_v63, %v4253_v12  ;;  %v2084_v8 = vmul.f32 %v2793_v29, %v2083_v20  ;;  %v4707_v12 = vld [vmem:[#allocation36_spill] sm:$0xff]  ;;  %2504 = vmatpush.msra.mxu2 %v2481_v36  ;;  %v2489_v4 = vld [vmem:[#allocation11 + $0xb0] sm:$0xff]  ;;  %v2470_v57 = vld [vmem:[#allocation11 + $0x18] sm:$0xff] }
 0x4ce   :  { %2546 = vmatpush.msra.mxu3 %v2496_v47  ;;  %v2487_v38 = vld [vmem:[#allocation11 + $0xa0] sm:$0xff]  ;;  %v2486_v16 = vld [vmem:[#allocation11 + $0x98] sm:$0xff]  ;;  %v2469_v20 = vld [vmem:[#allocation11 + $0x10] sm:$0xff] }
 0x4cf   :  { %v4332_v10 = vadd.f32 %v2097_v60, %v2096_v22  ;;  %v2085_v2 = vadd.f32 %v2793_v29, %v2084_v8  ;;  %2505 = vmatpush.msra.mxu2 %v2480_v13  ;;  %v2485_v63 = vld [vmem:[#allocation11 + $0x90] sm:$0xff]  ;;  %v2468_v60 = vld [vmem:[#allocation11 + $0x8] sm:$0xff]  ;;  %v132_v8 = vpop.permute.xlu0 %131 }
 0x4d0   :  { %2547 = vmatpush.msra.mxu3 %v2495_v44  ;;  %v2484_v22 = vld [vmem:[#allocation11 + $0x88] sm:$0xff]  ;;  %v178_v44 = vmul.f32 %v4700_v48, %v132_v8 }
 0x4d1   :  { %2796 = vtanh.f32 %v4332_v10  ;;  %v2089_v46 = vsel %vm2088_vm2, %v2793_v29, %v2085_v2  ;;  %2506 = vmatpush.msra.mxu2 %v2479_v37  ;;  %v2474_v29 = vld [vmem:[#allocation11 + $0x38] sm:$0xff]  ;;  %v2467_v2 = vld [vmem:[#allocation11] sm:$0xff] }
 0x4d2   :  { %v2094_v33 = vsel %vm2091_vm3, %v2093_v51, %v2089_v46  ;;  %2548 = vmatpush.msra.mxu3 %v2494_v45  ;;  %v176_v46 = vmul.f32 %v4686_v15, %v132_v8  ;;  %v177_v51 = vmul.f32 %v4687_v62, %v132_v8  ;;  %v467_v15 = vpop.permute.xlu1 %466  ;;  %v296_v62 = vmul.f32 %v4696_v19, %v251_v34 }
 0x4d3   :  { %2507 = vmatpush.msra.mxu2 %v2478_v17  ;;  %v512_v19 = vmul.f32 %v4701_v58, %v467_v15 }
 0x4d4   :  { %2549 = vmatpush.msra.mxu3 %v2493_v31  ;;  %v219_v31 = vadd.f32 %v4702_v11, %v178_v44 }
 0x4d6   :  { %2550 = vmatpush.msra.mxu3 %v2492_v0 }
 0x4d7   :  { %v2797_v39 = vpop.eup %2796 }
 0x4d8   :  { %v2100_v24 = vmul.f32 %v2797_v39, %v2094_v33  ;;  %2551 = vmatpush.msra.mxu3 %v2491_v6  ;;  %v293_v39 = vmul.f32 %v4690_v54, %v251_v34  ;;  %v294_v33 = vmul.f32 %v4691_v26, %v251_v34  ;;  %v509_v26 = vmul.f32 %v4697_v50, %v467_v15  ;;  %v2363_v50 = vld [vmem:[%s4413_s5] sm:$0x3] }
 0x4d9   :  { %v4370_v0 = vperm.slane %v2363_v50, 1 }
 0x4da   :  { %2140 = vmatmul.f32.vlgmr.msrb.gmra.mxu0 %v2100_v24  ;;  %2196 = vmatmul.f32.vlgmr.msrb.gmra.mxu1 %v2100_v24 }
 0x4db   :  { %2252 = vmatmul.f32.vlgmr.msrb.gmra.mxu2 %v2100_v24  ;;  %2290 = vmatmul.f32.vlgmr.msrb.gmra.mxu3 %v2100_v24 }
 0x4dc   :  { %2552 = vmatpush.msra.mxu3 %v2490_v49 }
 0x4de   :  { %2553 = vmatpush.msra.mxu3 %v2489_v4 }
 0x4e0   :  { %2554 = vmatpush.msra.mxu3 %v2488_v1 }
 0x4e2   :  { %2385 = vmatmul.f32.vlgmr.msra.gmra.mxu0 %v4707_v12  ;;  %2426 = vmatmul.f32.vlgmr.msra.gmra.mxu1 %v4707_v12  ;;  %v218_v12 = vadd.f32 %v4689_v53, %v177_v51 }
 0x4e3   :  { %2555 = vmatpush.msra.mxu3 %v2487_v38 }
 0x4e4   :  { %v326_v36 = vadd.f32 %v294_v33, %v218_v12 }
 0x4e5   :  { %2556 = vmatpush.msra.mxu3 %v2486_v16  ;;  %v511_v16 = vmul.f32 %v4706_v61, %v467_v15 }
 0x4e7   :  { %2557 = vmatpush.msra.mxu3 %v2485_v63 }
 0x4e9   :  { %2558 = vmatpush.msra.mxu3 %v2484_v22 }
 0x4ea   :  { %2388 = vmatmul.f32.gmra.mxu0 %v4708_v7  ;;  %2429 = vmatmul.f32.gmra.mxu1 %v4708_v7  ;;  %v359_v7 = vpop.permute.xlu2 %358 }
 0x4eb   :  { %2559 = vmatpush.msra.mxu3 %v2483_v25  ;;  %v401_v55 = vmul.f32 %v4693_v43, %v359_v7  ;;  %v402_v30 = vmul.f32 %v4694_v18, %v359_v7  ;;  %v404_v13 = vmul.f32 %v4699_v52, %v359_v7  ;;  %v295_v52 = vmul.f32 %v4703_v3, %v251_v34 }
 0x4ec   :  { %v403_v49 = vmul.f32 %v4704_v40, %v359_v7 }
 0x4ed   :  { %v434_v53 = vadd.f32 %v402_v30, %v326_v36 }
 0x4f2   :  { %2391 = vmatmul.f32.gmra.mxu0 %v4709_v56  ;;  %2432 = vmatmul.f32.gmra.mxu1 %v4709_v56  ;;  %v179_v56 = vmul.f32 %v4692_v9, %v132_v8 }
 0x4f4   :  { %v220_v54 = vadd.f32 %v4695_v28, %v179_v56 }
 0x4f6   :  { %v328_v9 = vadd.f32 %v296_v62, %v220_v54 }
 0x4f8   :  { %v436_v28 = vadd.f32 %v404_v13, %v328_v9 }
 0x4fa   :  { %2394 = vmatmul.f32.gmra.mxu0 %v4710_v59  ;;  %2435 = vmatmul.f32.gmra.mxu1 %v4710_v59  ;;  %v544_v48 = vadd.f32 %v512_v19, %v436_v28 }
 0x502   :  { %2397 = vmatmul.f32.gmra.mxu0 %v4171_v27  ;;  %2438 = vmatmul.f32.gmra.mxu1 %v4171_v27  ;;  %v2477_v27 = vld [vmem:[#allocation11 + $0x50] sm:$0xff] }
 0x503   :  { %2508 = vmatpush.msra.mxu2 %v2477_v27 }
 0x505   :  { %2509 = vmatpush.msra.mxu2 %v2476_v42  ;;  %v4368_v42 = vperm.slane %v2363_v50, 0 }
 0x50a   :  { %2400 = vmatmul.f32.gmra.mxu0 %v4256_v23  ;;  %2441 = vmatmul.f32.gmra.mxu1 %v4256_v23  ;;  %v2475_v23 = vld [vmem:[#allocation11 + $0x40] sm:$0xff] }
 0x50b   :  { %2510 = vmatpush.msra.mxu2 %v2475_v23 }
 0x50d   :  { %2511 = vmatpush.msra.mxu2 %v2474_v29 }
 0x50f   :  { %2512 = vmatpush.msra.mxu2 %v2473_v14  ;;  %v327_v14 = vadd.f32 %v295_v52, %v219_v31 }
 0x511   :  { %2513 = vmatpush.msra.mxu2 %v2472_v21  ;;  %v435_v63 = vadd.f32 %v403_v49, %v327_v14 }
 0x512   :  { %2403 = vmatmul.f32.gmra.mxu0 %v2100_v24  ;;  %2444 = vmatmul.f32.gmra.mxu1 %v2100_v24  ;;  %v217_v24 = vadd.f32 %v4688_v32, %v176_v46  ;;  %v510_v32 = vmul.f32 %v4698_v5, %v467_v15 }
 0x513   :  { %2514 = vmatpush.msra.mxu2 %v2471_v41  ;;  %v543_v8 = vadd.f32 %v511_v16, %v435_v63 }
 0x514   :  { %v325_v59 = vadd.f32 %v293_v39, %v217_v24  ;;  %v542_v43 = vadd.f32 %v510_v32, %v434_v53 }
 0x515   :  { %2515 = vmatpush.msra.mxu2 %v2470_v57 }
 0x516   :  { %v433_v35 = vadd.f32 %v401_v55, %v325_v59 }
 0x517   :  { %2516 = vmatpush.msra.mxu2 %v2469_v20 }
 0x518   :  { %v541_v47 = vadd.f32 %v509_v26, %v433_v35 }
 0x519   :  { %2517 = vmatpush.msra.mxu2 %v2468_v60 }
 0x51b   :  { %2518 = vmatpush.msra.mxu2 %v2467_v2 }
 0x557   :  { %v2141_v37 = vpop.f32.mrf.mxu0  ;;  %v2197_v18 = vpop.f32.mrf.mxu1 }
 0x558   :  { %v2144_v17 = vadd.f32 %v2141_v37, %v541_v47  ;;  %v2200_v45 = vadd.f32 %v2197_v18, %v542_v43 }
 0x55a   :  { %v2634_v5 = vmul.f32 -1.442695, %v2144_v17  ;;  %v2635_v27 = vmul.f32 -1.442695, %v2200_v45 }
 0x55c   :  { %2798 = vpow2.f32 %v2634_v5 }
 0x55d   :  { %2800 = vpow2.f32 %v2635_v27 }
 0x55e   :  { %v2291_v23 = vpop.f32.mrf.mxu3  ;;  %v2253_v40 = vpop.f32.mrf.mxu2 }
 0x55f   :  { %v2294_v58 = vadd.f32 %v2291_v23, %v544_v48  ;;  %v2386_v6 = vpop.f32.mrf.mxu0  ;;  %v2427_v29 = vpop.f32.mrf.mxu1  ;;  %v2256_v46 = vadd.f32 %v2253_v40, %v543_v8 }
 0x560   :  { %v2387_v4 = vadd.f32 %v2386_v6, %v4368_v42  ;;  %v2428_v3 = vadd.f32 %v2427_v29, %v4370_v0 }
 0x561   :  { %v2636_v21 = vmul.f32 -1.442695, %v2294_v58 }
 0x562   :  { %v2799_v11 = vpop.eup %2798  ;;  %v2451_v1 = vmax.f32 %v2387_v4, 0.0  ;;  %v2452_v41 = vmax.f32 %v2428_v3, 0.0 }
 0x563   :  { %v2801_v38 = vpop.eup %2800  ;;  %v2148_v57 = vadd.f32 1.0, %v2799_v11  ;;  %2802 = vpow2.f32 %v2636_v21 }
 0x564   :  { %v2204_v20 = vadd.f32 1.0, %v2801_v38  ;;  %2519 = vmatmul.f32.vlgmr.msra.gmra.mxu2 %v2451_v1  ;;  %2560 = vmatmul.f32.vlgmr.msra.gmra.mxu3 %v2452_v41 }
 0x565   :  { %2804 = vrcp.f32 %v2148_v57  ;;  %v2158_v59 = vand.u32 2147483647, %v2148_v57  ;;  %v2160_v36 = vand.u32 2147483648, %v2148_v57  ;;  %vm2154_vm6 = vweird.f32 %v2148_v57 }
 0x566   :  { %2806 = vrcp.f32 %v2204_v20  ;;  %v2216_v30 = vand.u32 2147483648, %v2204_v20  ;;  %v2214_v53 = vand.u32 2147483647, %v2204_v20  ;;  %vm2210_vm7 = vweird.f32 %v2204_v20 }
 0x567   :  { %v2389_v60 = vpop.f32.mrf.mxu0  ;;  %v2430_v22 = vpop.f32.mrf.mxu1  ;;  %v2161_v37 = vor.u32 1.1754944e-38, %v2160_v36  ;;  %vm2159_vm9 = vcmp.eq.f32.partialorder %v2158_v59, 8.507059e+37 }
 0x568   :  { %v2390_v2 = vadd.f32 %v2389_v60, %v4368_v42  ;;  %v2431_v25 = vadd.f32 %v2430_v22, %v4370_v0  ;;  %v2217_v45 = vor.u32 1.1754944e-38, %v2216_v30  ;;  %vm2215_vm11 = vcmp.eq.f32.partialorder %v2214_v53, 8.507059e+37 }
 0x569   :  { %v2803_v34 = vpop.eup %2802 }
 0x56a   :  { %v4378_v51 = vadd.f32 1.0, %v2803_v34  ;;  %v2453_v39 = vmax.f32 %v2390_v2, 0.0  ;;  %v2454_v61 = vmax.f32 %v2431_v25, 0.0 }
 0x56b   :  { %v2805_v33 = vpop.eup %2804 }
 0x56c   :  { %v2807_v24 = vpop.eup %2806  ;;  %v2150_v12 = vmul.f32 %v2805_v33, %v2148_v57  ;;  %2808 = vrcp.f32 %v4378_v51  ;;  %2522 = vmatmul.f32.gmra.mxu2 %v2453_v39  ;;  %2563 = vmatmul.f32.gmra.mxu3 %v2454_v61  ;;  %vm2155_vm4 = vweird.f32 %v2805_v33  ;;  %v2310_v21 = vand.u32 2147483648, %v4378_v51 }
 0x56d   :  { %v2206_v7 = vmul.f32 %v2807_v24, %v2204_v20  ;;  %2810 = vtanh.f32 %v2256_v46  ;;  %vm2211_vm5 = vweird.f32 %v2807_v24  ;;  %vm2156_vm8 = vmor %vm2154_vm6, %vm2155_vm4  ;;  %vm2304_vm13 = vweird.f32 %v4378_v51 }
 0x56e   :  { %v2151_v56 = vsub.f32 1.0, %v2150_v12  ;;  %vm2212_vm10 = vmor %vm2210_vm7, %vm2211_vm5  ;;  %v2308_v11 = vand.u32 2147483647, %v4378_v51  ;;  %v2311_v38 = vor.u32 1.1754944e-38, %v2310_v21 }
 0x56f   :  { %v2207_v55 = vsub.f32 1.0, %v2206_v7  ;;  %v2392_v15 = vpop.f32.mrf.mxu0  ;;  %v2433_v62 = vpop.f32.mrf.mxu1 }
 0x570   :  { %v2152_v54 = vmul.f32 %v2805_v33, %v2151_v56  ;;  %v2393_v26 = vadd.f32 %v2392_v15, %v4368_v42  ;;  %v2434_v32 = vadd.f32 %v2433_v62, %v4370_v0  ;;  %vm2309_vm15 = vcmp.eq.f32.partialorder %v2308_v11, 8.507059e+37  ;;  %v2685_v56 = vld [vmem:[%s4415_s7] ss:$0 sm:$0xff]  ;;  %s2930_s7 = smov [#allocation12]  }
 0x571   :  { %v2208_v35 = vmul.f32 %v2807_v24, %v2207_v55  ;;  %s2597_s22 = sshll.u32 %s2930_s7, 4  ;;  %s2598_s22 = int_to_ptr.vmem [resolvable:$true] %s2597_s22 }
 0x572   :  { %v2809_v13 = vpop.eup %2808  ;;  %v2153_v9 = vadd.f32 %v2805_v33, %v2152_v54  ;;  %v2455_v47 = vmax.f32 %v2393_v26, 0.0  ;;  %v2456_v43 = vmax.f32 %v2434_v32, 0.0 }
 0x573   :  { %v2209_v18 = vadd.f32 %v2807_v24, %v2208_v35  ;;  %v2300_v44 = vmul.f32 %v2809_v13, %v4378_v51  ;;  %v2811_v17 = vpop.eup %2810  ;;  %vm2305_vm12 = vweird.f32 %v2809_v13 }
 0x574   :  { %v2157_v19 = vsel %vm2156_vm8, %v2805_v33, %v2153_v9  ;;  %2525 = vmatmul.f32.gmra.mxu2 %v2455_v47  ;;  %2566 = vmatmul.f32.gmra.mxu3 %v2456_v43  ;;  %vm2306_vm14 = vmor %vm2304_vm13, %vm2305_vm12 }
 0x575   :  { %v2162_v28 = vsel %vm2159_vm9, %v2161_v37, %v2157_v19  ;;  %v2213_v50 = vsel %vm2212_vm10, %v2807_v24, %v2209_v18  ;;  %v2301_v5 = vsub.f32 1.0, %v2300_v44 }
 0x576   :  { %v2315_v27 = vmul.f32 %v2811_v17, %v2162_v28  ;;  %v2218_v52 = vsel %vm2215_vm11, %v2217_v45, %v2213_v50 }
 0x577   :  { %v2395_v31 = vpop.f32.mrf.mxu0  ;;  %v2436_v48 = vpop.f32.mrf.mxu1  ;;  %v2302_v23 = vmul.f32 %v2809_v13, %v2301_v5  ;;  %v2314_v58 = vmul.f32 %v2218_v52, %v4332_v10 }
 0x578   :  { %v2396_v6 = vadd.f32 %v2395_v31, %v4368_v42  ;;  %v2437_v29 = vadd.f32 %v2436_v48, %v4370_v0 }
 0x579   :  { %v2316_v49 = vadd.f32 %v2315_v27, %v2314_v58  ;;  %v2303_v3 = vadd.f32 %v2809_v13, %v2302_v23 }
 0x57a   :  { %v2457_v14 = vmax.f32 %v2396_v6, 0.0  ;;  %v2458_v4 = vmax.f32 %v2437_v29, 0.0 }
 0x57b   :  { %2812 = vtanh.f32 %v2316_v49  ;;  %v2307_v10 = vsel %vm2306_vm14, %v2809_v13, %v2303_v3 }
 0x57c   :  { %2528 = vmatmul.f32.gmra.mxu2 %v2457_v14  ;;  %2569 = vmatmul.f32.gmra.mxu3 %v2458_v4  ;;  %v2312_v63 = vsel %vm2309_vm15, %v2311_v38, %v2307_v10 }
 0x57f   :  { %v2398_v1 = vpop.f32.mrf.mxu0  ;;  %v2439_v41 = vpop.f32.mrf.mxu1 }
 0x580   :  { %v2399_v57 = vadd.f32 %v2398_v1, %v4368_v42  ;;  %v2440_v16 = vadd.f32 %v2439_v41, %v4370_v0 }
 0x581   :  { %v2813_v20 = vpop.eup %2812 }
 0x582   :  { %v2459_v40 = vmax.f32 %v2399_v57, 0.0  ;;  %v2460_v60 = vmax.f32 %v2440_v16, 0.0  ;;  %v2318_v22 = vmul.f32 %v2813_v20, %v2312_v63 }
 0x584   :  { %2406 = vmatmul.f32.gmra.mxu0 %v2318_v22  ;;  %2447 = vmatmul.f32.gmra.mxu1 %v2318_v22 }
 0x585   :  { %2531 = vmatmul.f32.gmra.mxu2 %v2459_v40  ;;  %2572 = vmatmul.f32.gmra.mxu3 %v2460_v60 }
 0x587   :  { %v2401_v8 = vpop.f32.mrf.mxu0  ;;  %v2442_v2 = vpop.f32.mrf.mxu1 }
 0x588   :  { %v2402_v25 = vadd.f32 %v2401_v8, %v4368_v42  ;;  %v2443_v34 = vadd.f32 %v2442_v2, %v4370_v0 }
 0x58a   :  { %v2461_v46 = vmax.f32 %v2402_v25, 0.0  ;;  %v2462_v51 = vmax.f32 %v2443_v34, 0.0 }
 0x58d   :  { %2534 = vmatmul.f32.gmra.mxu2 %v2461_v46  ;;  %2575 = vmatmul.f32.gmra.mxu3 %v2462_v51 }
 0x58f   :  { %v2404_v39 = vpop.f32.mrf.mxu0  ;;  %v2445_v61 = vpop.f32.mrf.mxu1 }
 0x590   :  { %v2405_v33 = vadd.f32 %v2404_v39, %v4368_v42  ;;  %v2446_v24 = vadd.f32 %v2445_v61, %v4370_v0 }
 0x592   :  { %v2463_v12 = vmax.f32 %v2405_v33, 0.0  ;;  %v2464_v7 = vmax.f32 %v2446_v24, 0.0 }
 0x595   :  { %2537 = vmatmul.f32.gmra.mxu2 %v2463_v12  ;;  %2578 = vmatmul.f32.gmra.mxu3 %v2464_v7 }
 0x5e7   :  { %v2520_v55 = vpop.f32.mrf.mxu2  ;;  %v2561_v30 = vpop.f32.mrf.mxu3 }
 0x5e8   :  { %v2521_v59 = vadd.f32 %v2685_v56, %v2520_v55 }
 0x5ea   :  { %v2562_v36 = vadd.f32 %v2561_v30, %v2521_v59 }
 0x5ec   :  { %2585 = vst [vmem:[#allocation12] sm:$0xff] %v2562_v36 }
 0x5ef   :  { %v2523_v15 = vpop.f32.mrf.mxu2  ;;  %v2564_v62 = vpop.f32.mrf.mxu3 }
 0x5f0   :  { %v2524_v54 = vadd.f32 %v2685_v56, %v2523_v15 }
 0x5f2   :  { %v2565_v26 = vadd.f32 %v2564_v62, %v2524_v54 }
 0x5f4   :  { %2586 = vst [vmem:[#allocation12 + $0x8] sm:$0xff] %v2565_v26 }
 0x5f7   :  { %v2526_v32 = vpop.f32.mrf.mxu2  ;;  %v2567_v35 = vpop.f32.mrf.mxu3 }
 0x5f8   :  { %v2527_v53 = vadd.f32 %v2685_v56, %v2526_v32 }
 0x5fa   :  { %v2568_v13 = vadd.f32 %v2567_v35, %v2527_v53 }
 0x5fc   :  { %2587 = vst [vmem:[#allocation12 + $0x10] sm:$0xff] %v2568_v13 }
 0x5ff   :  { %v2529_v9 = vpop.f32.mrf.mxu2  ;;  %v2570_v47 = vpop.f32.mrf.mxu3 }
 0x600   :  { %v2530_v43 = vadd.f32 %v2685_v56, %v2529_v9 }
 0x601   :  { %v2407_v37 = vpop.f32.mrf.mxu0  ;;  %v2448_v18 = vpop.f32.mrf.mxu1 }
 0x602   :  { %v2571_v44 = vadd.f32 %v2570_v47, %v2530_v43  ;;  %v2408_v17 = vadd.f32 %v2407_v37, %v4368_v42  ;;  %v2449_v45 = vadd.f32 %v2448_v18, %v4370_v0 }
 0x604   :  { %2588 = vst [vmem:[#allocation12 + $0x18] sm:$0xff] %v2571_v44  ;;  %v2465_v19 = vmax.f32 %v2408_v17, 0.0  ;;  %v2466_v28 = vmax.f32 %v2449_v45, 0.0 }
 0x606   :  { %2540 = vmatmul.f32.gmra.mxu2 %v2465_v19  ;;  %2581 = vmatmul.f32.gmra.mxu3 %v2466_v28 }
 0x608   :  { %v2532_v50 = vpop.f32.mrf.mxu2  ;;  %v2573_v5 = vpop.f32.mrf.mxu3 }
 0x609   :  { %v2533_v27 = vadd.f32 %v2685_v56, %v2532_v50 }
 0x60b   :  { %v2574_v52 = vadd.f32 %v2573_v5, %v2533_v27 }
 0x60d   :  { %2589 = vst [vmem:[#allocation12 + $0x20] sm:$0xff] %v2574_v52 }
 0x610   :  { %v2535_v31 = vpop.f32.mrf.mxu2  ;;  %v2576_v48 = vpop.f32.mrf.mxu3 }
 0x611   :  { %v2536_v23 = vadd.f32 %v2685_v56, %v2535_v31 }
 0x613   :  { %v2577_v58 = vadd.f32 %v2576_v48, %v2536_v23 }
 0x615   :  { %2590 = vst [vmem:[#allocation12 + $0x28] sm:$0xff] %v2577_v58 }
 0x618   :  { %v2538_v6 = vpop.f32.mrf.mxu2  ;;  %v2579_v42 = vpop.f32.mrf.mxu3 }
 0x619   :  { %v2539_v29 = vadd.f32 %v2685_v56, %v2538_v6 }
 0x61b   :  { %v2580_v49 = vadd.f32 %v2579_v42, %v2539_v29 }
 0x61d   :  { %2591 = vst [vmem:[#allocation12 + $0x30] sm:$0xff] %v2580_v49 }
 0x689   :  { %v2541_v0 = vpop.f32.mrf.mxu2  ;;  %v2582_v4 = vpop.f32.mrf.mxu3 }
 0x68a   :  { %v2542_v14 = vadd.f32 %v2685_v56, %v2541_v0 }
 0x68c   :  { %v2583_v3 = vadd.f32 %v2582_v4, %v2542_v14 }
 0x68e   :  { %2592 = vst [vmem:[#allocation12 + $0x38] sm:$0xff] %v2583_v3 }
 0x68f   :  { %2605 = dma.vmem_to_hbm [thread:$0]  %s2598_s22, 1024, %s2600_s25, [#allocation8], %s2923_s23, %s2923_s23, %s2924_s2  }
 0x690   :  { %2914 = dma.done.wait [#allocation8], 1024  }
 0x691   :  { %2915 = vsyncadd [#allocation8], 4294966272 }
 0x692   :  { %2610 = vsyncpa [#allocation7], 1 }
 0x693   :  { %2611 = vsyncpa [#allocation10], 1 }
 0x694   :  { %2612 = vsyncpa [#allocation8], 1 }

</bundles_post_ra>
